<compile_context>
chip_gen: v6e
topology: v6e:2x2x1
jax: 0.10.0
libtpu: 0.0.40
codegen_flags: <defaults>
</compile_context>

<pallas_src>
import jax
import jax.numpy as jnp
import numpy as np
from jax.experimental import pallas as pl
from jax.experimental.pallas import tpu as pltpu

# ---------------- small synthetic config (ViT-L/14 scaled down) -------------
B        = 8           # batch (images)
B_TILE   = 4           # images per grid step
NB       = B // B_TILE
C        = 3           # image channels
IMG      = 16          # image height/width
PATCH    = 8           # patch size
GRIDP    = IMG // PATCH
N_PATCH  = GRIDP * GRIDP          # 4
SEQ      = N_PATCH + 1            # +1 class token -> 5
SEQ_PAD  = 8                      # padded tokens per image (sublane multiple)
WIDTH    = 32                     # transformer width
HEADS    = 4
HEAD_DIM = WIDTH // HEADS         # 8
LAYERS   = 2
MLP      = 4 * WIDTH              # 128
PROJ_DIM = 16                     # "projection_dim" (feature_dim)
PROJ_PAD = 128                    # lane-dense output width
CPP      = C * PATCH * PATCH      # 192
NT       = B_TILE * SEQ_PAD       # 32 token rows per grid step
EPS      = 1e-5                   # LayerNorm eps (PyTorch default)
NEG_INF  = -1e9                   # additive mask for padded key columns


# ---------------- shared math helpers (pure jnp, used in kernel & ref) ------
def _layernorm(v, g, b):
    mu = jnp.mean(v, axis=-1, keepdims=True)
    var = jnp.mean(jnp.square(v - mu), axis=-1, keepdims=True)
    return (v - mu) * jax.lax.rsqrt(var + EPS) * g + b


def _gelu(x):
    # TODO(synk): OpenCLIP's nn.GELU is the exact erf form; erf lowering is not
    # guaranteed in Mosaic, so the tanh approximation is used (ref matches).
    c = jnp.float32(0.7978845608028654)  # sqrt(2/pi)
    return 0.5 * x * (1.0 + jnp.tanh(c * (x + 0.044715 * x * x * x)))


# ---------------- the Pallas kernel: one transformer layer per grid step ----
def clip_vit_kernel(xp_ref, wpe_ref, add_ref, bias_ref, lnpre_ref,
                    ln1_ref, wq_ref, bq_ref, wk_ref, bk_ref, wv_ref, bv_ref,
                    wo_ref, bo_ref, ln2_ref, wfc_ref, bfc_ref, wpr_ref, bpr_ref,
                    lnpost_ref, proj_ref, out_ref, x_sc):
    f32, bf16 = jnp.float32, jnp.bfloat16
    l = pl.program_id(1)

    # ---- l == 0: patch embedding + cls/pos embedding + ln_pre into scratch.
    #      xp has zero rows for cls/pad tokens, so one aligned matmul yields
    #      the full padded token slab (no concatenates).
    @pl.when(l == 0)
    def _init():
        pe = jnp.dot(xp_ref[...], wpe_ref[...], preferred_element_type=f32)
        x0 = pe.reshape(B_TILE, SEQ_PAD, WIDTH) + add_ref[...][None]
        g = lnpre_ref[...]
        x_sc[...] = _layernorm(x0.reshape(NT, WIDTH), g[0:1], g[1:2])

    x = x_sc[...]                              # f32 residual stream carry

    # ---- attention block (pre-LN). 1/sqrt(head_dim) folded into wq/bq (host).
    g1 = ln1_ref[0]
    y = _layernorm(x, g1[0:1], g1[1:2]).astype(bf16)
    q = jnp.dot(y, wq_ref[0], preferred_element_type=f32) + bq_ref[0]
    k = jnp.dot(y, wk_ref[0], preferred_element_type=f32) + bk_ref[0]
    v = jnp.dot(y, wv_ref[0], preferred_element_type=f32) + bv_ref[0]

    q3 = q.reshape(B_TILE, SEQ_PAD, WIDTH).astype(bf16)
    k3 = k.reshape(B_TILE, SEQ_PAD, WIDTH).astype(bf16)
    v3 = v.reshape(B_TILE, SEQ_PAD, WIDTH).astype(bf16)

    # Gather heads onto the major (batch) axis -> (HEADS*B_TILE, SEQ_PAD, HD)
    # so all heads are handled by a single batched einsum pair.
    # TODO(synk): the per-head lane slices + major concat stand in for a
    # lane->sublane relayout ((B,S,H,D)->(B,H,S,D)); at HEAD_DIM=8 the slices
    # are sub-tile but this keeps every op on known-lowering paths.
    def split_heads(t):
        return jnp.concatenate(
            [t[:, :, h * HEAD_DIM:(h + 1) * HEAD_DIM] for h in range(HEADS)],
            axis=0)

    qh, kh, vh = split_heads(q3), split_heads(k3), split_heads(v3)

    bias_b = bias_ref[...][None]               # hoisted: one broadcast / layer

    s = jnp.einsum('bqd,bkd->bqk', qh, kh, preferred_element_type=f32) + bias_b
    s = s - jnp.max(s, axis=-1, keepdims=True)
    pattn = jnp.exp(s)
    pattn = pattn * pl.reciprocal(jnp.sum(pattn, axis=-1, keepdims=True),
                                  approx=True)
    o = jnp.einsum('bqk,bkd->bqd', pattn.astype(bf16), vh,
                   preferred_element_type=f32)

    # Put heads back on lanes; single K=WIDTH output-projection matmul.
    o_cat = jnp.concatenate(
        [o[h * B_TILE:(h + 1) * B_TILE] for h in range(HEADS)], axis=-1)
    attn = jnp.dot(o_cat.reshape(NT, WIDTH).astype(bf16), wo_ref[0],
                   preferred_element_type=f32)
    x = x + attn + bo_ref[0]

    # ---- MLP block (pre-LN)
    g2 = ln2_ref[0]
    y = _layernorm(x, g2[0:1], g2[1:2]).astype(bf16)
    h_mid = _gelu(jnp.dot(y, wfc_ref[0], preferred_element_type=f32)
                  + bfc_ref[0])
    x = x + jnp.dot(h_mid.astype(bf16), wpr_ref[0],
                    preferred_element_type=f32) + bpr_ref[0]
    x_sc[...] = x                              # carry to next layer step

    # ---- l == last: ln_post + projection of the whole (lane-dense) slab.
    #      cls rows (row 0 of each image's 8-row group) are pooled host-side.
    @pl.when(l == LAYERS - 1)
    def _final():
        gq = lnpost_ref[...]
        xf = _layernorm(x, gq[0:1], gq[1:2])
        out_ref[...] = jnp.dot(xf.astype(bf16), proj_ref[...],
                               preferred_element_type=f32)


# ---------------- glue: patchify + pallas_call wrapper -----------------------
def patchify(x):
    # x: [B, C, H, W] (NCHW); patch flattened (c, ph, pw) to match the PyTorch
    # conv-weight flattening in init_params.
    b, c, h, w = x.shape
    x = x.reshape(b, c, GRIDP, PATCH, GRIDP, PATCH)
    x = x.transpose(0, 2, 4, 1, 3, 5)                 # [B, GH, GW, C, P, P]
    return x.reshape(b, GRIDP * GRIDP, c * PATCH * PATCH)


def clip_encode_image(x_img, p):
    f32, bf16 = jnp.float32, jnp.bfloat16
    xp = patchify(x_img).astype(f32)                  # [B, N_PATCH, CPP]

    # padded token axis: row 0 (cls) and rows SEQ..SEQ_PAD-1 are zero.
    xp_pad = jnp.zeros((B, SEQ_PAD, CPP), f32).at[:, 1:1 + N_PATCH].set(xp)
    xp_pad = xp_pad.reshape(B * SEQ_PAD, CPP).astype(bf16)

    # class-token + positional embedding, per-token (broadcast over B in-kernel)
    add = jnp.zeros((SEQ_PAD, WIDTH), f32)
    add = add.at[0].set(p['cls_emb'] + p['pos_emb'][0])
    add = add.at[1:SEQ].set(p['pos_emb'][1:])

    # additive attention bias masking the padded key columns
    key_pad = (jnp.arange(SEQ_PAD) >= SEQ).astype(f32)
    attn_bias = jnp.broadcast_to(key_pad * NEG_INF, (SEQ_PAD, SEQ_PAD))

    # fold 1/sqrt(head_dim) into the Q projection (one-time, host, f32)
    scale = jnp.float32(HEAD_DIM ** -0.5)
    wq_s = (p['wq'] * scale).astype(bf16)
    bq_s = p['bq'] * scale

    # lane-dense projection matrix (PROJ_DIM padded to 128 output lanes)
    proj_pad = jnp.zeros((WIDTH, PROJ_PAD), f32).at[:, :PROJ_DIM].set(p['proj'])

    inputs = (xp_pad, p['w_patch'].astype(bf16), add, attn_bias, p['ln_pre'],
              p['ln1'], wq_s, bq_s,
              p['wk'].astype(bf16), p['bk'],
              p['wv'].astype(bf16), p['bv'],
              p['wo'].astype(bf16), p['bo'],
              p['ln2'], p['wfc'].astype(bf16), p['bfc'],
              p['wpr'].astype(bf16), p['bpr'],
              p['ln_post'], proj_pad.astype(bf16))

    def full_spec(a):                 # whole array, same block every step
        return pl.BlockSpec(a.shape, lambda b, l: (0,) * a.ndim)

    def layer_spec(a):                # per-layer weight streaming block
        return pl.BlockSpec((1,) + a.shape[1:],
                            lambda b, l: (l,) + (0,) * (a.ndim - 1))

    in_specs = [
        pl.BlockSpec((NT, CPP), lambda b, l: (b, 0)),      # xp (batch-tiled)
        full_spec(p['w_patch']),
        full_spec(add), full_spec(attn_bias), full_spec(p['ln_pre']),
        layer_spec(p['ln1']),
        layer_spec(wq_s), layer_spec(bq_s),
        layer_spec(p['wk']), layer_spec(p['bk']),
        layer_spec(p['wv']), layer_spec(p['bv']),
        layer_spec(p['wo']), layer_spec(p['bo']),
        layer_spec(p['ln2']),
        layer_spec(p['wfc']), layer_spec(p['bfc']),
        layer_spec(p['wpr']), layer_spec(p['bpr']),
        full_spec(p['ln_post']),
        full_spec(proj_pad),
    ]

    out = pl.pallas_call(
        clip_vit_kernel,
        out_shape=jax.ShapeDtypeStruct((B * SEQ_PAD, PROJ_PAD), jnp.float32),
        grid_spec=pltpu.PrefetchScalarGridSpec(
            num_scalar_prefetch=0,
            grid=(NB, LAYERS),                 # batch tiles x layers
            in_specs=in_specs,
            out_specs=pl.BlockSpec((NT, PROJ_PAD), lambda b, l: (b, 0)),
            scratch_shapes=[pltpu.VMEM((NT, WIDTH), jnp.float32)],
        ),
        compiler_params=pltpu.CompilerParams(
            dimension_semantics=("parallel", "arbitrary"),
            vmem_limit_bytes=48 * 1024 * 1024),
    )(*inputs)

    # class-token pooling + un-pad the projection lanes (host side, free)
    return out.reshape(B, SEQ_PAD, PROJ_PAD)[:, 0, :PROJ_DIM]


# ---------------- deterministic synthetic parameters -------------------------
def init_params(key):
    ks = jax.random.split(key, 24)

    def nrm(k, shape, scale=0.02):
        return (scale * jax.random.normal(k, shape)).astype(jnp.float32)

    def ln_param(k):
        kg, kb = jax.random.split(k)
        g = 1.0 + 0.1 * jax.random.normal(kg, (WIDTH,))
        b = 0.1 * jax.random.normal(kb, (WIDTH,))
        return jnp.stack([g, b], axis=0).astype(jnp.float32)   # [2, WIDTH]

    # conv1 weight in PyTorch layout (out, in, kh, kw), bias=False
    w_conv = nrm(ks[0], (WIDTH, C, PATCH, PATCH))
    w_patch = w_conv.reshape(WIDTH, CPP).T                      # [CPP, WIDTH]

    return dict(
        w_patch=w_patch,
        cls_emb=nrm(ks[1], (WIDTH,), scale=WIDTH ** -0.5),
        pos_emb=nrm(ks[2], (SEQ, WIDTH), scale=WIDTH ** -0.5),
        ln_pre=ln_param(ks[3]),
        ln1=jnp.stack([ln_param(k) for k in jax.random.split(ks[4], LAYERS)]),
        wq=nrm(ks[5], (LAYERS, WIDTH, WIDTH)),
        bq=nrm(ks[6], (LAYERS, 1, WIDTH)),
        wk=nrm(ks[7], (LAYERS, WIDTH, WIDTH)),
        bk=nrm(ks[8], (LAYERS, 1, WIDTH)),
        wv=nrm(ks[9], (LAYERS, WIDTH, WIDTH)),
        bv=nrm(ks[10], (LAYERS, 1, WIDTH)),
        wo=nrm(ks[11], (LAYERS, WIDTH, WIDTH)),
        bo=nrm(ks[12], (LAYERS, 1, WIDTH)),
        ln2=jnp.stack([ln_param(k) for k in jax.random.split(ks[13], LAYERS)]),
        wfc=nrm(ks[14], (LAYERS, WIDTH, MLP)),
        bfc=nrm(ks[15], (LAYERS, 1, MLP)),
        wpr=nrm(ks[16], (LAYERS, MLP, WIDTH)),
        bpr=nrm(ks[17], (LAYERS, 1, WIDTH)),
        ln_post=ln_param(ks[18]),
        proj=nrm(ks[19], (WIDTH, PROJ_DIM), scale=WIDTH ** -0.5),
    )


# ---------------- pure-JAX reference (unpadded; same bf16 matmul precision) --
def clip_encode_image_ref(x_img, p):
    f32, bf16 = jnp.float32, jnp.bfloat16

    def mm(a, w):   # bf16 MXU inputs, f32 accumulation (mirrors the kernel)
        return jnp.dot(a.astype(bf16), w.astype(bf16),
                       preferred_element_type=f32)

    xp = patchify(x_img).astype(f32).reshape(B * N_PATCH, CPP)
    pe = mm(xp, p['w_patch']).reshape(B, N_PATCH, WIDTH)
    cls0 = jnp.broadcast_to(p['cls_emb'][None, None, :], (B, 1, WIDTH))
    x = jnp.concatenate([cls0, pe], axis=1) + p['pos_emb'][None]
    x = x.reshape(B * SEQ, WIDTH)
    x = _layernorm(x, p['ln_pre'][0:1], p['ln_pre'][1:2])
    for l in range(LAYERS):
        y = _layernorm(x, p['ln1'][l, 0:1], p['ln1'][l, 1:2])
        q = mm(y, p['wq'][l]) + p['bq'][l]
        k = mm(y, p['wk'][l]) + p['bk'][l]
        v = mm(y, p['wv'][l]) + p['bv'][l]
        q = q.reshape(B, SEQ, HEADS, HEAD_DIM).transpose(0, 2, 1, 3)
        k = k.reshape(B, SEQ, HEADS, HEAD_DIM).transpose(0, 2, 1, 3)
        v = v.reshape(B, SEQ, HEADS, HEAD_DIM).transpose(0, 2, 1, 3)
        s = jnp.einsum('bhqd,bhkd->bhqk', q.astype(bf16), k.astype(bf16),
                       preferred_element_type=f32) * (HEAD_DIM ** -0.5)
        pr = jax.nn.softmax(s, axis=-1)
        a = jnp.einsum('bhqk,bhkd->bhqd', pr.astype(bf16), v.astype(bf16),
                       preferred_element_type=f32)
        a = a.transpose(0, 2, 1, 3).reshape(B * SEQ, WIDTH)
        x = x + mm(a, p['wo'][l]) + p['bo'][l]
        y = _layernorm(x, p['ln2'][l, 0:1], p['ln2'][l, 1:2])
        x = x + mm(_gelu(mm(y, p['wfc'][l]) + p['bfc'][l]), p['wpr'][l]) \
              + p['bpr'][l]
    x = _layernorm(x, p['ln_post'][0:1], p['ln_post'][1:2])
    cls_tok = x.reshape(B, SEQ, WIDTH)[:, 0]
    return mm(cls_tok, p['proj'])


# ---------------- main --------------------------------------------------------
if __name__ == "__main__":
    key = jax.random.PRNGKey(0)
    k_img, k_par = jax.random.split(key)
    x_img = jax.random.normal(k_img, (B, C, IMG, IMG), dtype=jnp.float32)
    params = init_params(k_par)

    out = jax.block_until_ready(clip_encode_image(x_img, params))
    ref = jax.block_until_ready(clip_encode_image_ref(x_img, params))

    max_diff = float(jnp.max(jnp.abs(out - ref)))
    assert out.shape == (B, PROJ_DIM)
    assert np.isfinite(np.asarray(out)).all()
    assert max_diff < 2e-2, f"mismatch vs reference: {max_diff}"

    print("KERNEL_OK")
</pallas_src>

<mosaic_0001>
module attributes {stable_mosaic.version = 11 : i64} {
  func.func @clip_vit_kernel(%arg0: i32, %arg1: i32, %arg2: memref<32x192xbf16, #tpu.memory_space<vmem>>, %arg3: memref<192x32xbf16, #tpu.memory_space<vmem>>, %arg4: memref<8x32xf32, #tpu.memory_space<vmem>>, %arg5: memref<8x8xf32, #tpu.memory_space<vmem>>, %arg6: memref<2x32xf32, #tpu.memory_space<vmem>>, %arg7: memref<1x2x32xf32, #tpu.memory_space<vmem>>, %arg8: memref<1x32x32xbf16, #tpu.memory_space<vmem>>, %arg9: memref<1x1x32xf32, #tpu.memory_space<vmem>>, %arg10: memref<1x32x32xbf16, #tpu.memory_space<vmem>>, %arg11: memref<1x1x32xf32, #tpu.memory_space<vmem>>, %arg12: memref<1x32x32xbf16, #tpu.memory_space<vmem>>, %arg13: memref<1x1x32xf32, #tpu.memory_space<vmem>>, %arg14: memref<1x32x32xbf16, #tpu.memory_space<vmem>>, %arg15: memref<1x1x32xf32, #tpu.memory_space<vmem>>, %arg16: memref<1x2x32xf32, #tpu.memory_space<vmem>>, %arg17: memref<1x32x128xbf16, #tpu.memory_space<vmem>>, %arg18: memref<1x1x128xf32, #tpu.memory_space<vmem>>, %arg19: memref<1x128x32xbf16, #tpu.memory_space<vmem>>, %arg20: memref<1x1x32xf32, #tpu.memory_space<vmem>>, %arg21: memref<2x32xf32, #tpu.memory_space<vmem>>, %arg22: memref<32x128xbf16, #tpu.memory_space<vmem>>, %arg23: memref<32x128xf32, #tpu.memory_space<vmem>>, %arg24: memref<32x32xf32, #tpu.memory_space<vmem>>) attributes {dimension_semantics = [#tpu.dimension_semantics<parallel>, #tpu.dimension_semantics<arbitrary>], iteration_bounds = array<i64: 2, 2>, scalar_prefetch = 0 : i64, scratch_operands = 1 : i64, tpu.core_type = #tpu.core_type<tc>, window_params = [{transform_indices = @transform_0, window_bounds = array<i64: 32, 192>}, {pipeline_mode = #tpu.pipeline_mode<synchronous>, transform_indices = @transform_1, window_bounds = array<i64: 192, 32>}, {pipeline_mode = #tpu.pipeline_mode<synchronous>, transform_indices = @transform_2, window_bounds = array<i64: 8, 32>}, {pipeline_mode = #tpu.pipeline_mode<synchronous>, transform_indices = @transform_3, window_bounds = array<i64: 8, 8>}, {pipeline_mode = #tpu.pipeline_mode<synchronous>, transform_indices = @transform_4, window_bounds = array<i64: 2, 32>}, {transform_indices = @transform_5, window_bounds = array<i64: 1, 2, 32>}, {transform_indices = @transform_6, window_bounds = array<i64: 1, 32, 32>}, {transform_indices = @transform_7, window_bounds = array<i64: 1, 1, 32>}, {transform_indices = @transform_8, window_bounds = array<i64: 1, 32, 32>}, {transform_indices = @transform_9, window_bounds = array<i64: 1, 1, 32>}, {transform_indices = @transform_10, window_bounds = array<i64: 1, 32, 32>}, {transform_indices = @transform_11, window_bounds = array<i64: 1, 1, 32>}, {transform_indices = @transform_12, window_bounds = array<i64: 1, 32, 32>}, {transform_indices = @transform_13, window_bounds = array<i64: 1, 1, 32>}, {transform_indices = @transform_14, window_bounds = array<i64: 1, 2, 32>}, {transform_indices = @transform_15, window_bounds = array<i64: 1, 32, 128>}, {transform_indices = @transform_16, window_bounds = array<i64: 1, 1, 128>}, {transform_indices = @transform_17, window_bounds = array<i64: 1, 128, 32>}, {transform_indices = @transform_18, window_bounds = array<i64: 1, 1, 32>}, {pipeline_mode = #tpu.pipeline_mode<synchronous>, transform_indices = @transform_19, window_bounds = array<i64: 2, 32>}, {pipeline_mode = #tpu.pipeline_mode<synchronous>, transform_indices = @transform_20, window_bounds = array<i64: 32, 128>}, {transform_indices = @transform_21, window_bounds = array<i64: 32, 128>}]} {
    %c0_i32 = arith.constant 0 : i32
    %0 = arith.cmpi eq, %arg1, %c0_i32 : i32
    %1 = arith.extui %0 : i1 to i32
    %c0_i32_0 = arith.constant 0 : i32
    %2 = arith.cmpi ne, %1, %c0_i32_0 : i32
    scf.if %2 {
      %c0_72 = arith.constant 0 : index
      %c0_73 = arith.constant 0 : index
      %165 = vector.load %arg2[%c0_72, %c0_73] : memref<32x192xbf16, #tpu.memory_space<vmem>>, vector<32x192xbf16>
      %c0_74 = arith.constant 0 : index
      %c0_75 = arith.constant 0 : index
      %166 = vector.load %arg3[%c0_74, %c0_75] : memref<192x32xbf16, #tpu.memory_space<vmem>>, vector<192x32xbf16>
      %cst_76 = arith.constant dense<0.000000e+00> : vector<32x32xf32>
      %167 = tpu.matmul %165, %166, %cst_76 {dimension_numbers = #tpu.dot_dimension_numbers<[1], [0], [0], [1], [0, 0, 1, 1], [], []>} : vector<32x192xbf16>, vector<192x32xbf16>, vector<32x32xf32> -> vector<32x32xf32>
      %168 = vector.shape_cast %167 : vector<32x32xf32> to vector<4x8x32xf32>
      %c0_77 = arith.constant 0 : index
      %c0_78 = arith.constant 0 : index
      %169 = vector.load %arg4[%c0_77, %c0_78] : memref<8x32xf32, #tpu.memory_space<vmem>>, vector<8x32xf32>
      %170 = vector.shape_cast %169 : vector<8x32xf32> to vector<1x8x32xf32>
      %171 = vector.broadcast %170 : vector<1x8x32xf32> to vector<4x8x32xf32>
      %172 = arith.addf %168, %171 : vector<4x8x32xf32>
      %c0_79 = arith.constant 0 : index
      %c0_80 = arith.constant 0 : index
      %173 = vector.load %arg6[%c0_79, %c0_80] : memref<2x32xf32, #tpu.memory_space<vmem>>, vector<2x32xf32>
      %174 = vector.shape_cast %172 : vector<4x8x32xf32> to vector<32x32xf32>
      %175 = vector.extract_strided_slice %173 {offsets = [0, 0], sizes = [1, 32], strides = [1, 1]} : vector<2x32xf32> to vector<1x32xf32>
      %176 = vector.extract_strided_slice %173 {offsets = [1, 0], sizes = [1, 32], strides = [1, 1]} : vector<2x32xf32> to vector<1x32xf32>
      %cst_81 = arith.constant dense<0.000000e+00> : vector<32xf32>
      %177 = vector.multi_reduction <add>, %174, %cst_81 [1] : vector<32x32xf32> to vector<32xf32>
      %178 = vector.shape_cast %177 : vector<32xf32> to vector<32x1xf32>
      %cst_82 = arith.constant 3.200000e+01 : f32
      %179 = vector.broadcast %cst_82 : f32 to vector<32x1xf32>
      %180 = arith.divf %178, %179 : vector<32x1xf32>
      %181 = vector.broadcast %180 : vector<32x1xf32> to vector<32x32xf32>
      %182 = arith.subf %174, %181 : vector<32x32xf32>
      %183 = arith.mulf %182, %182 : vector<32x32xf32>
      %cst_83 = arith.constant dense<0.000000e+00> : vector<32xf32>
      %184 = vector.multi_reduction <add>, %183, %cst_83 [1] : vector<32x32xf32> to vector<32xf32>
      %185 = vector.shape_cast %184 : vector<32xf32> to vector<32x1xf32>
      %cst_84 = arith.constant 3.200000e+01 : f32
      %186 = vector.broadcast %cst_84 : f32 to vector<32x1xf32>
      %187 = arith.divf %185, %186 : vector<32x1xf32>
      %188 = vector.broadcast %180 : vector<32x1xf32> to vector<32x32xf32>
      %189 = arith.subf %174, %188 : vector<32x32xf32>
      %cst_85 = arith.constant 9.99999974E-6 : f32
      %190 = vector.broadcast %cst_85 : f32 to vector<32x1xf32>
      %191 = arith.addf %187, %190 : vector<32x1xf32>
      %192 = math.rsqrt %191 : vector<32x1xf32>
      %193 = vector.broadcast %192 : vector<32x1xf32> to vector<32x32xf32>
      %194 = arith.mulf %189, %193 : vector<32x32xf32>
      %195 = vector.broadcast %175 : vector<1x32xf32> to vector<32x32xf32>
      %196 = arith.mulf %194, %195 : vector<32x32xf32>
      %197 = vector.broadcast %176 : vector<1x32xf32> to vector<32x32xf32>
      %198 = arith.addf %196, %197 : vector<32x32xf32>
      %c0_86 = arith.constant 0 : index
      %c0_87 = arith.constant 0 : index
      %199 = vector.load %arg24[%c0_86, %c0_87] : memref<32x32xf32, #tpu.memory_space<vmem>>, vector<32x32xf32>
      tpu.vector_store %arg24[%c0_86, %c0_87], %198 {strides = array<i32>} : memref<32x32xf32, #tpu.memory_space<vmem>>, vector<32x32xf32>,
    } else {
    }
    %c0 = arith.constant 0 : index
    %c0_1 = arith.constant 0 : index
    %3 = vector.load %arg24[%c0, %c0_1] : memref<32x32xf32, #tpu.memory_space<vmem>>, vector<32x32xf32>
    %c0_2 = arith.constant 0 : index
    %c0_3 = arith.constant 0 : index
    %c0_4 = arith.constant 0 : index
    %4 = vector.load %arg7[%c0_2, %c0_3, %c0_4] : memref<1x2x32xf32, #tpu.memory_space<vmem>>, vector<1x2x32xf32>
    %5 = vector.shape_cast %4 : vector<1x2x32xf32> to vector<2x32xf32>
    %6 = vector.extract_strided_slice %5 {offsets = [0, 0], sizes = [1, 32], strides = [1, 1]} : vector<2x32xf32> to vector<1x32xf32>
    %7 = vector.extract_strided_slice %5 {offsets = [1, 0], sizes = [1, 32], strides = [1, 1]} : vector<2x32xf32> to vector<1x32xf32>
    %cst = arith.constant dense<0.000000e+00> : vector<32xf32>
    %8 = vector.multi_reduction <add>, %3, %cst [1] : vector<32x32xf32> to vector<32xf32>
    %9 = vector.shape_cast %8 : vector<32xf32> to vector<32x1xf32>
    %cst_5 = arith.constant 3.200000e+01 : f32
    %10 = vector.broadcast %cst_5 : f32 to vector<32x1xf32>
    %11 = arith.divf %9, %10 : vector<32x1xf32>
    %12 = vector.broadcast %11 : vector<32x1xf32> to vector<32x32xf32>
    %13 = arith.subf %3, %12 : vector<32x32xf32>
    %14 = arith.mulf %13, %13 : vector<32x32xf32>
    %cst_6 = arith.constant dense<0.000000e+00> : vector<32xf32>
    %15 = vector.multi_reduction <add>, %14, %cst_6 [1] : vector<32x32xf32> to vector<32xf32>
    %16 = vector.shape_cast %15 : vector<32xf32> to vector<32x1xf32>
    %cst_7 = arith.constant 3.200000e+01 : f32
    %17 = vector.broadcast %cst_7 : f32 to vector<32x1xf32>
    %18 = arith.divf %16, %17 : vector<32x1xf32>
    %19 = vector.broadcast %11 : vector<32x1xf32> to vector<32x32xf32>
    %20 = arith.subf %3, %19 : vector<32x32xf32>
    %cst_8 = arith.constant 9.99999974E-6 : f32
    %21 = vector.broadcast %cst_8 : f32 to vector<32x1xf32>
    %22 = arith.addf %18, %21 : vector<32x1xf32>
    %23 = math.rsqrt %22 : vector<32x1xf32>
    %24 = vector.broadcast %23 : vector<32x1xf32> to vector<32x32xf32>
    %25 = arith.mulf %20, %24 : vector<32x32xf32>
    %26 = vector.broadcast %6 : vector<1x32xf32> to vector<32x32xf32>
    %27 = arith.mulf %25, %26 : vector<32x32xf32>
    %28 = vector.broadcast %7 : vector<1x32xf32> to vector<32x32xf32>
    %29 = arith.addf %27, %28 : vector<32x32xf32>
    %30 = arith.truncf %29 : vector<32x32xf32> to vector<32x32xbf16>
    %c0_9 = arith.constant 0 : index
    %c0_10 = arith.constant 0 : index
    %c0_11 = arith.constant 0 : index
    %31 = vector.load %arg8[%c0_9, %c0_10, %c0_11] : memref<1x32x32xbf16, #tpu.memory_space<vmem>>, vector<1x32x32xbf16>
    %32 = vector.shape_cast %31 : vector<1x32x32xbf16> to vector<32x32xbf16>
    %cst_12 = arith.constant dense<0.000000e+00> : vector<32x32xf32>
    %33 = tpu.matmul %30, %32, %cst_12 {dimension_numbers = #tpu.dot_dimension_numbers<[1], [0], [0], [1], [0, 0, 1, 1], [], []>} : vector<32x32xbf16>, vector<32x32xbf16>, vector<32x32xf32> -> vector<32x32xf32>
    %c0_13 = arith.constant 0 : index
    %c0_14 = arith.constant 0 : index
    %c0_15 = arith.constant 0 : index
    %34 = vector.load %arg9[%c0_13, %c0_14, %c0_15] : memref<1x1x32xf32, #tpu.memory_space<vmem>>, vector<1x1x32xf32>
    %35 = vector.shape_cast %34 : vector<1x1x32xf32> to vector<1x32xf32>
    %36 = vector.broadcast %35 : vector<1x32xf32> to vector<32x32xf32>
    %37 = arith.addf %33, %36 : vector<32x32xf32>
    %c0_16 = arith.constant 0 : index
    %c0_17 = arith.constant 0 : index
    %c0_18 = arith.constant 0 : index
    %38 = vector.load %arg10[%c0_16, %c0_17, %c0_18] : memref<1x32x32xbf16, #tpu.memory_space<vmem>>, vector<1x32x32xbf16>
    %39 = vector.shape_cast %38 : vector<1x32x32xbf16> to vector<32x32xbf16>
    %cst_19 = arith.constant dense<0.000000e+00> : vector<32x32xf32>
    %40 = tpu.matmul %30, %39, %cst_19 {dimension_numbers = #tpu.dot_dimension_numbers<[1], [0], [0], [1], [0, 0, 1, 1], [], []>} : vector<32x32xbf16>, vector<32x32xbf16>, vector<32x32xf32> -> vector<32x32xf32>
    %c0_20 = arith.constant 0 : index
    %c0_21 = arith.constant 0 : index
    %c0_22 = arith.constant 0 : index
    %41 = vector.load %arg11[%c0_20, %c0_21, %c0_22] : memref<1x1x32xf32, #tpu.memory_space<vmem>>, vector<1x1x32xf32>
    %42 = vector.shape_cast %41 : vector<1x1x32xf32> to vector<1x32xf32>
    %43 = vector.broadcast %42 : vector<1x32xf32> to vector<32x32xf32>
    %44 = arith.addf %40, %43 : vector<32x32xf32>
    %c0_23 = arith.constant 0 : index
    %c0_24 = arith.constant 0 : index
    %c0_25 = arith.constant 0 : index
    %45 = vector.load %arg12[%c0_23, %c0_24, %c0_25] : memref<1x32x32xbf16, #tpu.memory_space<vmem>>, vector<1x32x32xbf16>
    %46 = vector.shape_cast %45 : vector<1x32x32xbf16> to vector<32x32xbf16>
    %cst_26 = arith.constant dense<0.000000e+00> : vector<32x32xf32>
    %47 = tpu.matmul %30, %46, %cst_26 {dimension_numbers = #tpu.dot_dimension_numbers<[1], [0], [0], [1], [0, 0, 1, 1], [], []>} : vector<32x32xbf16>, vector<32x32xbf16>, vector<32x32xf32> -> vector<32x32xf32>
    %c0_27 = arith.constant 0 : index
    %c0_28 = arith.constant 0 : index
    %c0_29 = arith.constant 0 : index
    %48 = vector.load %arg13[%c0_27, %c0_28, %c0_29] : memref<1x1x32xf32, #tpu.memory_space<vmem>>, vector<1x1x32xf32>
    %49 = vector.shape_cast %48 : vector<1x1x32xf32> to vector<1x32xf32>
    %50 = vector.broadcast %49 : vector<1x32xf32> to vector<32x32xf32>
    %51 = arith.addf %47, %50 : vector<32x32xf32>
    %52 = vector.shape_cast %37 : vector<32x32xf32> to vector<4x8x32xf32>
    %53 = arith.truncf %52 : vector<4x8x32xf32> to vector<4x8x32xbf16>
    %54 = vector.shape_cast %44 : vector<32x32xf32> to vector<4x8x32xf32>
    %55 = arith.truncf %54 : vector<4x8x32xf32> to vector<4x8x32xbf16>
    %56 = vector.shape_cast %51 : vector<32x32xf32> to vector<4x8x32xf32>
    %57 = arith.truncf %56 : vector<4x8x32xf32> to vector<4x8x32xbf16>
    %58 = vector.extract_strided_slice %53 {offsets = [0, 0, 0], sizes = [4, 8, 8], strides = [1, 1, 1]} : vector<4x8x32xbf16> to vector<4x8x8xbf16>
    %59 = vector.extract_strided_slice %53 {offsets = [0, 0, 8], sizes = [4, 8, 8], strides = [1, 1, 1]} : vector<4x8x32xbf16> to vector<4x8x8xbf16>
    %60 = vector.extract_strided_slice %53 {offsets = [0, 0, 16], sizes = [4, 8, 8], strides = [1, 1, 1]} : vector<4x8x32xbf16> to vector<4x8x8xbf16>
    %61 = vector.extract_strided_slice %53 {offsets = [0, 0, 24], sizes = [4, 8, 8], strides = [1, 1, 1]} : vector<4x8x32xbf16> to vector<4x8x8xbf16>
    %62 = tpu.concatenate %58, %59, %60, %61 in 0 : vector<4x8x8xbf16>, vector<4x8x8xbf16>, vector<4x8x8xbf16>, vector<4x8x8xbf16> -> vector<16x8x8xbf16>
    %63 = vector.extract_strided_slice %55 {offsets = [0, 0, 0], sizes = [4, 8, 8], strides = [1, 1, 1]} : vector<4x8x32xbf16> to vector<4x8x8xbf16>
    %64 = vector.extract_strided_slice %55 {offsets = [0, 0, 8], sizes = [4, 8, 8], strides = [1, 1, 1]} : vector<4x8x32xbf16> to vector<4x8x8xbf16>
    %65 = vector.extract_strided_slice %55 {offsets = [0, 0, 16], sizes = [4, 8, 8], strides = [1, 1, 1]} : vector<4x8x32xbf16> to vector<4x8x8xbf16>
    %66 = vector.extract_strided_slice %55 {offsets = [0, 0, 24], sizes = [4, 8, 8], strides = [1, 1, 1]} : vector<4x8x32xbf16> to vector<4x8x8xbf16>
    %67 = tpu.concatenate %63, %64, %65, %66 in 0 : vector<4x8x8xbf16>, vector<4x8x8xbf16>, vector<4x8x8xbf16>, vector<4x8x8xbf16> -> vector<16x8x8xbf16>
    %68 = vector.extract_strided_slice %57 {offsets = [0, 0, 0], sizes = [4, 8, 8], strides = [1, 1, 1]} : vector<4x8x32xbf16> to vector<4x8x8xbf16>
    %69 = vector.extract_strided_slice %57 {offsets = [0, 0, 8], sizes = [4, 8, 8], strides = [1, 1, 1]} : vector<4x8x32xbf16> to vector<4x8x8xbf16>
    %70 = vector.extract_strided_slice %57 {offsets = [0, 0, 16], sizes = [4, 8, 8], strides = [1, 1, 1]} : vector<4x8x32xbf16> to vector<4x8x8xbf16>
    %71 = vector.extract_strided_slice %57 {offsets = [0, 0, 24], sizes = [4, 8, 8], strides = [1, 1, 1]} : vector<4x8x32xbf16> to vector<4x8x8xbf16>
    %72 = tpu.concatenate %68, %69, %70, %71 in 0 : vector<4x8x8xbf16>, vector<4x8x8xbf16>, vector<4x8x8xbf16>, vector<4x8x8xbf16> -> vector<16x8x8xbf16>
    %c0_30 = arith.constant 0 : index
    %c0_31 = arith.constant 0 : index
    %73 = vector.load %arg5[%c0_30, %c0_31] : memref<8x8xf32, #tpu.memory_space<vmem>>, vector<8x8xf32>
    %74 = vector.shape_cast %73 : vector<8x8xf32> to vector<1x8x8xf32>
    "tpu.trace_start"() <{level = 10 : i32, message = "bqd,bkd->bqk"}> : () -> ()
    %cst_32 = arith.constant dense<0.000000e+00> : vector<16x8x8xf32>
    %75 = tpu.matmul %62, %67, %cst_32 {dimension_numbers = #tpu.dot_dimension_numbers<[2], [2], [1], [1], [0, 0, 0, 1, 1, 1], [0], [0]>} : vector<16x8x8xbf16>, vector<16x8x8xbf16>, vector<16x8x8xf32> -> vector<16x8x8xf32>
    "tpu.trace_stop"() : () -> ()
    %76 = vector.broadcast %74 : vector<1x8x8xf32> to vector<16x8x8xf32>
    %77 = arith.addf %75, %76 : vector<16x8x8xf32>
    %cst_33 = arith.constant dense<0xFF800000> : vector<16x8xf32>
    %78 = vector.multi_reduction <maximumf>, %77, %cst_33 [2] : vector<16x8x8xf32> to vector<16x8xf32>
    %79 = vector.shape_cast %78 : vector<16x8xf32> to vector<16x8x1xf32>
    %80 = vector.broadcast %79 : vector<16x8x1xf32> to vector<16x8x8xf32>
    %81 = arith.subf %77, %80 : vector<16x8x8xf32>
    %82 = math.exp %81 : vector<16x8x8xf32>
    %cst_34 = arith.constant dense<0.000000e+00> : vector<16x8xf32>
    %83 = vector.multi_reduction <add>, %82, %cst_34 [2] : vector<16x8x8xf32> to vector<16x8xf32>
    %84 = vector.shape_cast %83 : vector<16x8xf32> to vector<16x8x1xf32>
    %85 = tpu.reciprocal %84 {approx = true} : vector<16x8x1xf32> -> vector<16x8x1xf32>
    %86 = vector.broadcast %85 : vector<16x8x1xf32> to vector<16x8x8xf32>
    %87 = arith.mulf %82, %86 : vector<16x8x8xf32>
    %88 = arith.truncf %87 : vector<16x8x8xf32> to vector<16x8x8xbf16>
    "tpu.trace_start"() <{level = 10 : i32, message = "bqk,bkd->bqd"}> : () -> ()
    %cst_35 = arith.constant dense<0.000000e+00> : vector<16x8x8xf32>
    %89 = tpu.matmul %88, %72, %cst_35 {dimension_numbers = #tpu.dot_dimension_numbers<[2], [1], [1], [2], [0, 0, 0, 1, 1, 2], [0], [0]>} : vector<16x8x8xbf16>, vector<16x8x8xbf16>, vector<16x8x8xf32> -> vector<16x8x8xf32>
    "tpu.trace_stop"() : () -> ()
    %90 = vector.extract_strided_slice %89 {offsets = [0, 0, 0], sizes = [4, 8, 8], strides = [1, 1, 1]} : vector<16x8x8xf32> to vector<4x8x8xf32>
    %91 = vector.extract_strided_slice %89 {offsets = [4, 0, 0], sizes = [4, 8, 8], strides = [1, 1, 1]} : vector<16x8x8xf32> to vector<4x8x8xf32>
    %92 = vector.extract_strided_slice %89 {offsets = [8, 0, 0], sizes = [4, 8, 8], strides = [1, 1, 1]} : vector<16x8x8xf32> to vector<4x8x8xf32>
    %93 = vector.extract_strided_slice %89 {offsets = [12, 0, 0], sizes = [4, 8, 8], strides = [1, 1, 1]} : vector<16x8x8xf32> to vector<4x8x8xf32>
    %94 = tpu.concatenate %90, %91, %92, %93 in 2 : vector<4x8x8xf32>, vector<4x8x8xf32>, vector<4x8x8xf32>, vector<4x8x8xf32> -> vector<4x8x32xf32>
    %95 = vector.shape_cast %94 : vector<4x8x32xf32> to vector<32x32xf32>
    %96 = arith.truncf %95 : vector<32x32xf32> to vector<32x32xbf16>
    %c0_36 = arith.constant 0 : index
    %c0_37 = arith.constant 0 : index
    %c0_38 = arith.constant 0 : index
    %97 = vector.load %arg14[%c0_36, %c0_37, %c0_38] : memref<1x32x32xbf16, #tpu.memory_space<vmem>>, vector<1x32x32xbf16>
    %98 = vector.shape_cast %97 : vector<1x32x32xbf16> to vector<32x32xbf16>
    %cst_39 = arith.constant dense<0.000000e+00> : vector<32x32xf32>
    %99 = tpu.matmul %96, %98, %cst_39 {dimension_numbers = #tpu.dot_dimension_numbers<[1], [0], [0], [1], [0, 0, 1, 1], [], []>} : vector<32x32xbf16>, vector<32x32xbf16>, vector<32x32xf32> -> vector<32x32xf32>
    %100 = arith.addf %3, %99 : vector<32x32xf32>
    %c0_40 = arith.constant 0 : index
    %c0_41 = arith.constant 0 : index
    %c0_42 = arith.constant 0 : index
    %101 = vector.load %arg15[%c0_40, %c0_41, %c0_42] : memref<1x1x32xf32, #tpu.memory_space<vmem>>, vector<1x1x32xf32>
    %102 = vector.shape_cast %101 : vector<1x1x32xf32> to vector<1x32xf32>
    %103 = vector.broadcast %102 : vector<1x32xf32> to vector<32x32xf32>
    %104 = arith.addf %100, %103 : vector<32x32xf32>
    %c0_43 = arith.constant 0 : index
    %c0_44 = arith.constant 0 : index
    %c0_45 = arith.constant 0 : index
    %105 = vector.load %arg16[%c0_43, %c0_44, %c0_45] : memref<1x2x32xf32, #tpu.memory_space<vmem>>, vector<1x2x32xf32>
    %106 = vector.shape_cast %105 : vector<1x2x32xf32> to vector<2x32xf32>
    %107 = vector.extract_strided_slice %106 {offsets = [0, 0], sizes = [1, 32], strides = [1, 1]} : vector<2x32xf32> to vector<1x32xf32>
    %108 = vector.extract_strided_slice %106 {offsets = [1, 0], sizes = [1, 32], strides = [1, 1]} : vector<2x32xf32> to vector<1x32xf32>
    %cst_46 = arith.constant dense<0.000000e+00> : vector<32xf32>
    %109 = vector.multi_reduction <add>, %104, %cst_46 [1] : vector<32x32xf32> to vector<32xf32>
    %110 = vector.shape_cast %109 : vector<32xf32> to vector<32x1xf32>
    %cst_47 = arith.constant 3.200000e+01 : f32
    %111 = vector.broadcast %cst_47 : f32 to vector<32x1xf32>
    %112 = arith.divf %110, %111 : vector<32x1xf32>
    %113 = vector.broadcast %112 : vector<32x1xf32> to vector<32x32xf32>
    %114 = arith.subf %104, %113 : vector<32x32xf32>
    %115 = arith.mulf %114, %114 : vector<32x32xf32>
    %cst_48 = arith.constant dense<0.000000e+00> : vector<32xf32>
    %116 = vector.multi_reduction <add>, %115, %cst_48 [1] : vector<32x32xf32> to vector<32xf32>
    %117 = vector.shape_cast %116 : vector<32xf32> to vector<32x1xf32>
    %cst_49 = arith.constant 3.200000e+01 : f32
    %118 = vector.broadcast %cst_49 : f32 to vector<32x1xf32>
    %119 = arith.divf %117, %118 : vector<32x1xf32>
    %120 = vector.broadcast %112 : vector<32x1xf32> to vector<32x32xf32>
    %121 = arith.subf %104, %120 : vector<32x32xf32>
    %cst_50 = arith.constant 9.99999974E-6 : f32
    %122 = vector.broadcast %cst_50 : f32 to vector<32x1xf32>
    %123 = arith.addf %119, %122 : vector<32x1xf32>
    %124 = math.rsqrt %123 : vector<32x1xf32>
    %125 = vector.broadcast %124 : vector<32x1xf32> to vector<32x32xf32>
    %126 = arith.mulf %121, %125 : vector<32x32xf32>
    %127 = vector.broadcast %107 : vector<1x32xf32> to vector<32x32xf32>
    %128 = arith.mulf %126, %127 : vector<32x32xf32>
    %129 = vector.broadcast %108 : vector<1x32xf32> to vector<32x32xf32>
    %130 = arith.addf %128, %129 : vector<32x32xf32>
    %131 = arith.truncf %130 : vector<32x32xf32> to vector<32x32xbf16>
    %c0_51 = arith.constant 0 : index
    %c0_52 = arith.constant 0 : index
    %c0_53 = arith.constant 0 : index
    %132 = vector.load %arg17[%c0_51, %c0_52, %c0_53] : memref<1x32x128xbf16, #tpu.memory_space<vmem>>, vector<1x32x128xbf16>
    %133 = vector.shape_cast %132 : vector<1x32x128xbf16> to vector<32x128xbf16>
    %cst_54 = arith.constant dense<0.000000e+00> : vector<32x128xf32>
    %134 = tpu.matmul %131, %133, %cst_54 {dimension_numbers = #tpu.dot_dimension_numbers<[1], [0], [0], [1], [0, 0, 1, 1], [], []>} : vector<32x32xbf16>, vector<32x128xbf16>, vector<32x128xf32> -> vector<32x128xf32>
    %c0_55 = arith.constant 0 : index
    %c0_56 = arith.constant 0 : index
    %c0_57 = arith.constant 0 : index
    %135 = vector.load %arg18[%c0_55, %c0_56, %c0_57] : memref<1x1x128xf32, #tpu.memory_space<vmem>>, vector<1x1x128xf32>
    %136 = vector.shape_cast %135 : vector<1x1x128xf32> to vector<1x128xf32>
    %137 = vector.broadcast %136 : vector<1x128xf32> to vector<32x128xf32>
    %138 = arith.addf %134, %137 : vector<32x128xf32>
    %cst_58 = arith.constant 5.000000e-01 : f32
    %139 = vector.broadcast %cst_58 : f32 to vector<32x128xf32>
    %140 = arith.mulf %139, %138 : vector<32x128xf32>
    %cst_59 = arith.constant 4.471500e-02 : f32
    %141 = vector.broadcast %cst_59 : f32 to vector<32x128xf32>
    %142 = arith.mulf %141, %138 : vector<32x128xf32>
    %143 = arith.mulf %142, %138 : vector<32x128xf32>
    %144 = arith.mulf %143, %138 : vector<32x128xf32>
    %145 = arith.addf %138, %144 : vector<32x128xf32>
    %cst_60 = arith.constant 0.797884583 : f32
    %146 = vector.broadcast %cst_60 : f32 to vector<32x128xf32>
    %147 = arith.mulf %146, %145 : vector<32x128xf32>
    %148 = math.tanh %147 : vector<32x128xf32>
    %cst_61 = arith.constant 1.000000e+00 : f32
    %149 = vector.broadcast %cst_61 : f32 to vector<32x128xf32>
    %150 = arith.addf %149, %148 : vector<32x128xf32>
    %151 = arith.mulf %140, %150 : vector<32x128xf32>
    %152 = arith.truncf %151 : vector<32x128xf32> to vector<32x128xbf16>
    %c0_62 = arith.constant 0 : index
    %c0_63 = arith.constant 0 : index
    %c0_64 = arith.constant 0 : index
    %153 = vector.load %arg19[%c0_62, %c0_63, %c0_64] : memref<1x128x32xbf16, #tpu.memory_space<vmem>>, vector<1x128x32xbf16>
    %154 = vector.shape_cast %153 : vector<1x128x32xbf16> to vector<128x32xbf16>
    %cst_65 = arith.constant dense<0.000000e+00> : vector<32x32xf32>
    %155 = tpu.matmul %152, %154, %cst_65 {dimension_numbers = #tpu.dot_dimension_numbers<[1], [0], [0], [1], [0, 0, 1, 1], [], []>} : vector<32x128xbf16>, vector<128x32xbf16>, vector<32x32xf32> -> vector<32x32xf32>
    %156 = arith.addf %104, %155 : vector<32x32xf32>
    %c0_66 = arith.constant 0 : index
    %c0_67 = arith.constant 0 : index
    %c0_68 = arith.constant 0 : index
    %157 = vector.load %arg20[%c0_66, %c0_67, %c0_68] : memref<1x1x32xf32, #tpu.memory_space<vmem>>, vector<1x1x32xf32>
    %158 = vector.shape_cast %157 : vector<1x1x32xf32> to vector<1x32xf32>
    %159 = vector.broadcast %158 : vector<1x32xf32> to vector<32x32xf32>
    %160 = arith.addf %156, %159 : vector<32x32xf32>
    %c0_69 = arith.constant 0 : index
    %c0_70 = arith.constant 0 : index
    %161 = vector.load %arg24[%c0_69, %c0_70] : memref<32x32xf32, #tpu.memory_space<vmem>>, vector<32x32xf32>
    tpu.vector_store %arg24[%c0_69, %c0_70], %160 {strides = array<i32>} : memref<32x32xf32, #tpu.memory_space<vmem>>, vector<32x32xf32>,
    %c1_i32 = arith.constant 1 : i32
    %162 = arith.cmpi eq, %arg1, %c1_i32 : i32
    %163 = arith.extui %162 : i1 to i32
    %c0_i32_71 = arith.constant 0 : i32
    %164 = arith.cmpi ne, %163, %c0_i32_71 : i32
    scf.if %164 {
      %c0_72 = arith.constant 0 : index
      %c0_73 = arith.constant 0 : index
      %165 = vector.load %arg21[%c0_72, %c0_73] : memref<2x32xf32, #tpu.memory_space<vmem>>, vector<2x32xf32>
      %166 = vector.extract_strided_slice %165 {offsets = [0, 0], sizes = [1, 32], strides = [1, 1]} : vector<2x32xf32> to vector<1x32xf32>
      %167 = vector.extract_strided_slice %165 {offsets = [1, 0], sizes = [1, 32], strides = [1, 1]} : vector<2x32xf32> to vector<1x32xf32>
      %cst_74 = arith.constant dense<0.000000e+00> : vector<32xf32>
      %168 = vector.multi_reduction <add>, %160, %cst_74 [1] : vector<32x32xf32> to vector<32xf32>
      %169 = vector.shape_cast %168 : vector<32xf32> to vector<32x1xf32>
      %cst_75 = arith.constant 3.200000e+01 : f32
      %170 = vector.broadcast %cst_75 : f32 to vector<32x1xf32>
      %171 = arith.divf %169, %170 : vector<32x1xf32>
      %172 = vector.broadcast %171 : vector<32x1xf32> to vector<32x32xf32>
      %173 = arith.subf %160, %172 : vector<32x32xf32>
      %174 = arith.mulf %173, %173 : vector<32x32xf32>
      %cst_76 = arith.constant dense<0.000000e+00> : vector<32xf32>
      %175 = vector.multi_reduction <add>, %174, %cst_76 [1] : vector<32x32xf32> to vector<32xf32>
      %176 = vector.shape_cast %175 : vector<32xf32> to vector<32x1xf32>
      %cst_77 = arith.constant 3.200000e+01 : f32
      %177 = vector.broadcast %cst_77 : f32 to vector<32x1xf32>
      %178 = arith.divf %176, %177 : vector<32x1xf32>
      %179 = vector.broadcast %171 : vector<32x1xf32> to vector<32x32xf32>
      %180 = arith.subf %160, %179 : vector<32x32xf32>
      %cst_78 = arith.constant 9.99999974E-6 : f32
      %181 = vector.broadcast %cst_78 : f32 to vector<32x1xf32>
      %182 = arith.addf %178, %181 : vector<32x1xf32>
      %183 = math.rsqrt %182 : vector<32x1xf32>
      %184 = vector.broadcast %183 : vector<32x1xf32> to vector<32x32xf32>
      %185 = arith.mulf %180, %184 : vector<32x32xf32>
      %186 = vector.broadcast %166 : vector<1x32xf32> to vector<32x32xf32>
      %187 = arith.mulf %185, %186 : vector<32x32xf32>
      %188 = vector.broadcast %167 : vector<1x32xf32> to vector<32x32xf32>
      %189 = arith.addf %187, %188 : vector<32x32xf32>
      %190 = arith.truncf %189 : vector<32x32xf32> to vector<32x32xbf16>
      %c0_79 = arith.constant 0 : index
      %c0_80 = arith.constant 0 : index
      %191 = vector.load %arg22[%c0_79, %c0_80] : memref<32x128xbf16, #tpu.memory_space<vmem>>, vector<32x128xbf16>
      %cst_81 = arith.constant dense<0.000000e+00> : vector<32x128xf32>
      %192 = tpu.matmul %190, %191, %cst_81 {dimension_numbers = #tpu.dot_dimension_numbers<[1], [0], [0], [1], [0, 0, 1, 1], [], []>} : vector<32x32xbf16>, vector<32x128xbf16>, vector<32x128xf32> -> vector<32x128xf32>
      %c0_82 = arith.constant 0 : index
      %c0_83 = arith.constant 0 : index
      %193 = vector.load %arg23[%c0_82, %c0_83] : memref<32x128xf32, #tpu.memory_space<vmem>>, vector<32x128xf32>
      tpu.vector_store %arg23[%c0_82, %c0_83], %192 {strides = array<i32>} : memref<32x128xf32, #tpu.memory_space<vmem>>, vector<32x128xf32>,
    } else {
    }
    return
  }
  func.func @transform_0(%arg0: i32, %arg1: i32) -> (i32, i32) {
    %c0_i32 = arith.constant 0 : i32
    %c0_i32_0 = arith.constant 0 : i32
    return %arg0, %c0_i32 : i32, i32
  }
  func.func @transform_1(%arg0: i32, %arg1: i32) -> (i32, i32) {
    %c0_i32 = arith.constant 0 : i32
    %c0_i32_0 = arith.constant 0 : i32
    %c0_i32_1 = arith.constant 0 : i32
    return %c0_i32, %c0_i32_0 : i32, i32
  }
  func.func @transform_2(%arg0: i32, %arg1: i32) -> (i32, i32) {
    %c0_i32 = arith.constant 0 : i32
    %c0_i32_0 = arith.constant 0 : i32
    %c0_i32_1 = arith.constant 0 : i32
    return %c0_i32, %c0_i32_0 : i32, i32
  }
  func.func @transform_3(%arg0: i32, %arg1: i32) -> (i32, i32) {
    %c0_i32 = arith.constant 0 : i32
    %c0_i32_0 = arith.constant 0 : i32
    %c0_i32_1 = arith.constant 0 : i32
    return %c0_i32, %c0_i32_0 : i32, i32
  }
  func.func @transform_4(%arg0: i32, %arg1: i32) -> (i32, i32) {
    %c0_i32 = arith.constant 0 : i32
    %c0_i32_0 = arith.constant 0 : i32
    %c0_i32_1 = arith.constant 0 : i32
    return %c0_i32, %c0_i32_0 : i32, i32
  }
  func.func @transform_5(%arg0: i32, %arg1: i32) -> (i32, i32, i32) {
    %c0_i32 = arith.constant 0 : i32
    %c0_i32_0 = arith.constant 0 : i32
    %c0_i32_1 = arith.constant 0 : i32
    return %arg1, %c0_i32, %c0_i32_0 : i32, i32, i32
  }
  func.func @transform_6(%arg0: i32, %arg1: i32) -> (i32, i32, i32) {
    %c0_i32 = arith.constant 0 : i32
    %c0_i32_0 = arith.constant 0 : i32
    %c0_i32_1 = arith.constant 0 : i32
    return %arg1, %c0_i32, %c0_i32_0 : i32, i32, i32
  }
  func.func @transform_7(%arg0: i32, %arg1: i32) -> (i32, i32, i32) {
    %c0_i32 = arith.constant 0 : i32
    %c0_i32_0 = arith.constant 0 : i32
    %c0_i32_1 = arith.constant 0 : i32
    return %arg1, %c0_i32, %c0_i32_0 : i32, i32, i32
  }
  func.func @transform_8(%arg0: i32, %arg1: i32) -> (i32, i32, i32) {
    %c0_i32 = arith.constant 0 : i32
    %c0_i32_0 = arith.constant 0 : i32
    %c0_i32_1 = arith.constant 0 : i32
    return %arg1, %c0_i32, %c0_i32_0 : i32, i32, i32
  }
  func.func @transform_9(%arg0: i32, %arg1: i32) -> (i32, i32, i32) {
    %c0_i32 = arith.constant 0 : i32
    %c0_i32_0 = arith.constant 0 : i32
    %c0_i32_1 = arith.constant 0 : i32
    return %arg1, %c0_i32, %c0_i32_0 : i32, i32, i32
  }
  func.func @transform_10(%arg0: i32, %arg1: i32) -> (i32, i32, i32) {
    %c0_i32 = arith.constant 0 : i32
    %c0_i32_0 = arith.constant 0 : i32
    %c0_i32_1 = arith.constant 0 : i32
    return %arg1, %c0_i32, %c0_i32_0 : i32, i32, i32
  }
  func.func @transform_11(%arg0: i32, %arg1: i32) -> (i32, i32, i32) {
    %c0_i32 = arith.constant 0 : i32
    %c0_i32_0 = arith.constant 0 : i32
    %c0_i32_1 = arith.constant 0 : i32
    return %arg1, %c0_i32, %c0_i32_0 : i32, i32, i32
  }
  func.func @transform_12(%arg0: i32, %arg1: i32) -> (i32, i32, i32) {
    %c0_i32 = arith.constant 0 : i32
    %c0_i32_0 = arith.constant 0 : i32
    %c0_i32_1 = arith.constant 0 : i32
    return %arg1, %c0_i32, %c0_i32_0 : i32, i32, i32
  }
  func.func @transform_13(%arg0: i32, %arg1: i32) -> (i32, i32, i32) {
    %c0_i32 = arith.constant 0 : i32
    %c0_i32_0 = arith.constant 0 : i32
    %c0_i32_1 = arith.constant 0 : i32
    return %arg1, %c0_i32, %c0_i32_0 : i32, i32, i32
  }
  func.func @transform_14(%arg0: i32, %arg1: i32) -> (i32, i32, i32) {
    %c0_i32 = arith.constant 0 : i32
    %c0_i32_0 = arith.constant 0 : i32
    %c0_i32_1 = arith.constant 0 : i32
    return %arg1, %c0_i32, %c0_i32_0 : i32, i32, i32
  }
  func.func @transform_15(%arg0: i32, %arg1: i32) -> (i32, i32, i32) {
    %c0_i32 = arith.constant 0 : i32
    %c0_i32_0 = arith.constant 0 : i32
    %c0_i32_1 = arith.constant 0 : i32
    return %arg1, %c0_i32, %c0_i32_0 : i32, i32, i32
  }
  func.func @transform_16(%arg0: i32, %arg1: i32) -> (i32, i32, i32) {
    %c0_i32 = arith.constant 0 : i32
    %c0_i32_0 = arith.constant 0 : i32
    %c0_i32_1 = arith.constant 0 : i32
    return %arg1, %c0_i32, %c0_i32_0 : i32, i32, i32
  }
  func.func @transform_17(%arg0: i32, %arg1: i32) -> (i32, i32, i32) {
    %c0_i32 = arith.constant 0 : i32
    %c0_i32_0 = arith.constant 0 : i32
    %c0_i32_1 = arith.constant 0 : i32
    return %arg1, %c0_i32, %c0_i32_0 : i32, i32, i32
  }
  func.func @transform_18(%arg0: i32, %arg1: i32) -> (i32, i32, i32) {
    %c0_i32 = arith.constant 0 : i32
    %c0_i32_0 = arith.constant 0 : i32
    %c0_i32_1 = arith.constant 0 : i32
    return %arg1, %c0_i32, %c0_i32_0 : i32, i32, i32
  }
  func.func @transform_19(%arg0: i32, %arg1: i32) -> (i32, i32) {
    %c0_i32 = arith.constant 0 : i32
    %c0_i32_0 = arith.constant 0 : i32
    %c0_i32_1 = arith.constant 0 : i32
    return %c0_i32, %c0_i32_0 : i32, i32
  }
  func.func @transform_20(%arg0: i32, %arg1: i32) -> (i32, i32) {
    %c0_i32 = arith.constant 0 : i32
    %c0_i32_0 = arith.constant 0 : i32
    %c0_i32_1 = arith.constant 0 : i32
    return %c0_i32, %c0_i32_0 : i32, i32
  }
  func.func @transform_21(%arg0: i32, %arg1: i32) -> (i32, i32) {
    %c0_i32 = arith.constant 0 : i32
    %c0_i32_0 = arith.constant 0 : i32
    return %arg0, %c0_i32 : i32, i32
  }
}

</mosaic_0001>

<bundles_post_ra>
// kernel: tpu_custom_call.1
= control target key start
LH: loop header
LB: loop body
LE: loop exit
PB: predicated region body
PF: predicated region fallthrough
CT: control target
= control target key end

     0   :  { %s6105_s0 = inlined_call_operand.vmem [shape: bf16[64,192], index: 0, kind: input, shape index: {}]   ;;  %s6106_s1 = inlined_call_operand.vmem [shape: bf16[192,32], index: 1, kind: input, shape index: {}]   ;;  %s6107_s2 = inlined_call_operand.vmem [shape: f32[8,32], index: 2, kind: input, shape index: {}]   ;;  %s6108_s3 = inlined_call_operand.vmem [shape: f32[8,8], index: 3, kind: input, shape index: {}]   ;;  %s6109_s4 = inlined_call_operand.vmem [shape: f32[2,32], index: 4, kind: input, shape index: {}]   ;;  %s6110_s5 = inlined_call_operand.vmem [shape: f32[2,2,32], index: 5, kind: input, shape index: {}]   ;;  %s6111_s6 = inlined_call_operand.vmem [shape: bf16[2,32,32], index: 6, kind: input, shape index: {}]   ;;  %s6112_s7 = inlined_call_operand.hbm [shape: f32[2,1,32], index: 7, kind: input, shape index: {}]   ;;  %s6113_s8 = inlined_call_operand.vmem [shape: bf16[2,32,32], index: 8, kind: input, shape index: {}]   ;;  %s6114_s9 = inlined_call_operand.vmem [shape: f32[2,1,32], index: 9, kind: input, shape index: {}]   ;;  %s6115_s10 = inlined_call_operand.vmem [shape: bf16[2,32,32], index: 10, kind: input, shape index: {}]   ;;  %s6116_s11 = inlined_call_operand.vmem [shape: f32[2,1,32], index: 11, kind: input, shape index: {}]   ;;  %s6117_s12 = inlined_call_operand.vmem [shape: bf16[2,32,32], index: 12, kind: input, shape index: {}]   ;;  %s6118_s13 = inlined_call_operand.vmem [shape: f32[2,1,32], index: 13, kind: input, shape index: {}]   ;;  %s6119_s14 = inlined_call_operand.vmem [shape: f32[2,2,32], index: 14, kind: input, shape index: {}]   ;;  %s6120_s15 = inlined_call_operand.vmem [shape: bf16[2,32,128], index: 15, kind: input, shape index: {}]   ;;  %s6121_s16 = inlined_call_operand.vmem [shape: f32[2,1,128], index: 16, kind: input, shape index: {}]   ;;  %s6122_s17 = inlined_call_operand.vmem [shape: bf16[2,128,32], index: 17, kind: input, shape index: {}]   ;;  %s6123_s18 = inlined_call_operand.vmem [shape: f32[2,1,32], index: 18, kind: input, shape index: {}]   ;;  %s6124_s19 = inlined_call_operand.vmem [shape: f32[2,32], index: 19, kind: input, shape index: {}]   ;;  %s6125_s20 = inlined_call_operand.vmem [shape: bf16[32,128], index: 20, kind: input, shape index: {}]   ;;  %s6126_s21 = inlined_call_operand.hbm [shape: f32[64,128], index: 21, kind: output, shape index: {}]  }
   0x1   :  { %6147 = sst [smem:[#allocation25_spill]] %s6105_s0 }
   0x2   :  { %6148 = sst [smem:[#allocation26_spill]] %s6106_s1 }
   0x3   :  { %6149 = sst [smem:[#allocation27_spill]] %s6107_s2 }
   0x4   :  { %6150 = sst [smem:[#allocation28_spill]] %s6108_s3 }
   0x5   :  { %6151 = sst [smem:[#allocation29_spill]] %s6109_s4 }
   0x6   :  { %6152 = sst [smem:[#allocation30_spill]] %s6110_s5 }
   0x7   :  { %6153 = sst [smem:[#allocation31_spill]] %s6111_s6 }
   0x8   :  { %6154 = sst [smem:[#allocation32_spill]] %s6112_s7 }
   0x9   :  { %6155 = sst [smem:[#allocation33_spill]] %s6113_s8 }
   0xa   :  { %6156 = sst [smem:[#allocation34_spill]] %s6114_s9 }
   0xb   :  { %6157 = sst [smem:[#allocation35_spill]] %s6115_s10 }
   0xc   :  { %6158 = sst [smem:[#allocation36_spill]] %s6116_s11 }
   0xd   :  { %6159 = sst [smem:[#allocation37_spill]] %s6117_s12 }
   0xe   :  { %6160 = sst [smem:[#allocation38_spill]] %s6118_s13 }
   0xf   :  { %6161 = sst [smem:[#allocation39_spill]] %s6120_s15 }
  0x10   :  { %6162 = sst [smem:[#allocation40_spill]] %s6121_s16 }
  0x11   :  { %6163 = sst [smem:[#allocation41_spill]] %s6122_s17 }
  0x12   :  { %6164 = sst [smem:[#allocation42_spill]] %s6123_s18 }
  0x13   :  { %6165 = sst [smem:[#allocation43_spill]] %s6124_s19 }
  0x14   :  { %6166 = sst [smem:[#allocation44_spill]] %s6125_s20 }
  0x15   :  { %6167 = sst [smem:[#allocation45_spill]] %s6126_s21 }
  0x16   :  { %26 = vsyncpa [#allocation4], 0 }
  0x17   :  { %28 = vsyncpa [#allocation4 + $0x1], 0 }
  0x18   :  { %29 = vsyncpa [#allocation5], 0 }
  0x19   :  { %31 = vsyncpa [#allocation5 + $0x1], 0  ;;  %s5188_s2 = smov 0   ;;  %s5190_s25 = smov 0  }
  0x1a   :  { %s5192_s26 = smov 0   ;;  %s5194_s27 = smov 0  }
  0x1b   :  { %s5196_s3 = smov 0   ;;  %s5198_s28 = smov 0  }
  0x1c   :  { %s5200_s29 = smov 0   ;;  %s5202_s0 = smov 0  }
  0x1d   :  { %s5204_s4 = smov 0   ;;  %s5206_s30 = smov 0  }
  0x1e   :  { %s5208_s5 = smov 0  }
  0x1f LB: > { %6168 = sst [smem:[#allocation9_spill]] %s5024_s2  ;;  %s4119_s22 = sadd.s32 4294967295, %s5064_s5   ;;  %s5064_s5 = sphi %s5208_s5, %s37_s5   ;;  %s5060_s30 = sphi %s5206_s30, %s6237_s30   ;;  %s5056_s4 = sphi %s5204_s4, %s6236_s4   ;;  %s5052_s0 = sphi %s5202_s0, %s6235_s0   ;;  %s5048_s29 = sphi %s5200_s29, %s6234_s29   ;;  %s5044_s28 = sphi %s5198_s28, %s6233_s28   ;;  %s5040_s3 = sphi %s5196_s3, %s6232_s3   ;;  %s5036_s27 = sphi %s5194_s27, %s6231_s27   ;;  %s5032_s26 = sphi %s5192_s26, %s6230_s26   ;;  %s5028_s25 = sphi %s5190_s25, %s6229_s25   ;;  %s5024_s2 = sphi %s5188_s2, %s6228_s2  }
  0x20   : > { %6169 = sst [smem:[#allocation10_spill]] %s5028_s25  ;;  %s4120_s23 = sadd.s32 4294967294, %s5064_s5  }
  0x21   : > { %6170 = sst [smem:[#allocation11_spill]] %s5032_s26  ;;  %s46_s1 = sadd.s32 1, %s5056_s4 }
  0x22   : > { %6171 = sst [smem:[#allocation12_spill]] %s5040_s3  ;;  %s49_s24 = sadd.s32 1, %s5060_s30 }
  0x23   : > { %6172 = sst [smem:[#allocation13_spill]] %s5044_s28  ;;  %p47_p0 = scmp.ge.s32.totalorder %s46_s1, 2 }
  0x24   : > { %6173 = sst [smem:[#allocation14_spill]] %s5052_s0  ;;  %s218_s21 = sadd.s32 1, %s5044_s28 }
  0x25   : > { %6174 = sst [smem:[#allocation15_spill]] %s5056_s4  ;;  %p225_p1 = scmp.ne.s32.totalorder %s5044_s28, %s5040_s3 }
  0x26   : > { %6175 = sst [smem:[#allocation16_spill]] %s5060_s30  ;;  %p226_p2 = scmp.eq.s32.totalorder %s5064_s5, 0 }
  0x27   : > { %6176 = sst [smem:[#allocation17_spill]] %s5064_s5  ;;  %s6239_s1 = smov (%p47_p0, %s46_s1), 0 }
  0x28   : > { %6177 = sst [smem:[#allocation18_spill]] %s6239_s1  ;;  %s6241_s24 = smov (!%p47_p0, %s49_s24), %s5060_s30 }
  0x29   : > { %s215_s19 = ssub.s32 %s5056_s4, %s6239_s1  ;;  %p5254_p3 = por %p226_p2, %p225_p1 }
  0x2a   : > { %p51_p4 = scmp.ge.s32.totalorder %s6241_s24, 2  ;;  %p216_p5 = scmp.eq.s32.totalorder %s215_s19, 0 }
  0x2b   : > { %p231_p6 = scmp.ne.s32.totalorder %s5040_s3, %s5036_s27  ;;  %p232_p7 = scmp.eq.s32.totalorder %s4119_s22, 0 }
  0x2c   : > { %s6243_s24 = smov (%p51_p4, %s6241_s24), 0  ;;  %s572_s16 = sadd.s32 1, %s5032_s26 }
  0x2d   : > { %6179 = sst [smem:[#allocation19_spill]] %s6243_s24  ;;  %p5264_p8 = por %p232_p7, %p231_p6 }
  0x2e   : > { %s5262_s17 = scalar_select %p216_p5, %s5044_s28, %s218_s21  }
  0x2f   : > { %s569_s18 = ssub.s32 %s5060_s30, %s6243_s24  ;;  %p582_p10 = scmp.ne.s32.totalorder %s5032_s26, %s5028_s25 }
  0x30   : > { %6180 = sst [smem:[#allocation20_spill]] %s5262_s17  ;;  %p570_p9 = scmp.eq.s32.totalorder %s569_s18, 0 }
  0x31   : > { %p583_p11 = scmp.eq.s32.totalorder %s4119_s22, 3  ;;  %p588_p13 = scmp.ne.s32.totalorder %s5028_s25, %s5024_s2 }
  0x32   : > { %s5274_s19 = scalar_select %p570_p9, %s5032_s26, %s572_s16  }
  0x33   : > { %p5276_p12 = por %p583_p11, %p582_p10  ;;  %p589_p0 = scmp.eq.s32.totalorder %s4120_s23, 3 }
  0x34   : > { %6182 = sst [smem:[#allocation21_spill]] %s5274_s19  ;;  %p4640_p1 = scmp.lt.s32.totalorder %s5064_s5, 4 }
  0x35   : > { %s6183_s27 = scalar_select %p5276_p12, 1, 0 }
  0x36   : > { %s652_s21 = sand.u32 1, %s5044_s28   ;;  %p5284_p2 = por %p589_p0, %p588_p13 }
  0x37   : > { %6184 = sst [smem:[#allocation22_spill]] %s6183_s27  ;;  %s4123_s18 = sshll.u32 %s5056_s4, 4 }
  0x38   : > { %s6185_s17 = scalar_select %p5284_p2, 1, 0 }
  0x39   : > { %s6187_s7 = sld [smem:[#allocation32_spill]]  ;;  %s655_s22 = scalar_lea.vmem [#allocation3], %s652_s21 }
  0x3a   : > { %6186 = sst [smem:[#allocation23_spill]] %s6185_s17  ;;  %s662_s16 = sshll.u32 %s655_s22, 4  ;;  %s663_s16 = int_to_ptr.vmem [resolvable:$true] %s662_s16 }
  0x3b   : > { %p5294_p4 = pnand %p4640_p1, %p5254_p3  ;;  %p4124_p5 = scmp.ge.s32.totalorder %s5064_s5, 1 }
  0x3c   : > { %p744_p6 = scmp.lt.s32.totalorder %s5064_s5, 5  ;;  %s653_s23 = scalar_lea.sflag [#allocation4], %s652_s21 }
  0x3d   : > { %p4918_p7 = pneg %p5294_p4  ;;  %s4929_s28 = scalar_lea.vmem %s663_s16, 16 }
  0x3e   : > { %p4930_p9 = scmp.ne.s32.totalorder %s663_s16, %s4929_s28  ;;  %s5066_s30 = smov [#allocation3]  }
  0x3f   : > { %s660_s15 = scalar_lea.hbm %s6187_s7, %s4123_s18  ;;  %s4934_s24 = sshll.u32 %s5066_s30, 4  ;;  %s4935_s24 = int_to_ptr.vmem [resolvable:$false] %s4934_s24 }
  0x40   : > { %p4932_p10 = pnand %p4930_p9, %p4918_p7  ;;  %s4936_s18 = scalar_lea.vmem %s4935_s24, 32 }
  0x41   : > { %p4937_p13 = scmp.lt.s32.totalorder %s663_s16, %s4935_s24  ;;  %p4938_p0 = scmp.lt.s32.totalorder %s4936_s18, %s4929_s28 }
  0x42   : > { %p4933_p11 = pneg %p4932_p10 }
  0x43   : > { %p4939_p3 = por %p4938_p0, %p4937_p13 }
  0x45   : > { %p4940_p1 = pnand %p4939_p3, %p4933_p11 }
  0x47   : > { %4943 = shalt.err (!%p4940_p1)
}
  0x48   : > { %4635 = dma.hbm_to_vmem [thread:$0]  (!%p5294_p4), %s660_s15, 16, %s663_s16, %s653_s23  }
  0x49   : > { %p745_p2 = pnand %p4124_p5, %p744_p6 }
  0x4b   : > { %748 = sbr.rel (%p745_p2) target bundleno = 3734 (0xe96), region = 104 }
  0x50   : > { %s750_s20 = sand.u32 1, %s5040_s3  }
  0x51   : > { %s751_s21 = scalar_lea.sflag [#allocation4], %s750_s20  ;;  %s5309_s22 = scalar_lea.vmem [#allocation3], %s750_s20 }
  0x52   : > { %5015 = dma.done.wait (%p5264_p8), %s751_s21, 16  }
  0x53   : > { %5017 = vsyncadd (%p5264_p8), %s751_s21, 4294967280  ;;  %s6134_s15 = sand.u32 1, %s5028_s25   ;;  %s4126_s28 = sshll.u32 %s5052_s0, 2 }
  0x54   : > { %s4125_s19 = sshll.u32 %s6134_s15, 5  ;;  %p871_p2 = scmp.lt.s32.totalorder %s4126_s28, 7 }
  0x55   : > { %p877_p4 = scmp.lt.s32.totalorder %s5048_s29, 1  ;;  %s6189_s24 = sld [smem:[#allocation25_spill]] }
  0x56   : > { %s6245_s28 = smov (!%p871_p2, %s4126_s28), 7  ;;  %s6190_s7 = sld [smem:[#allocation30_spill]] }
  0x57   : > { %s5321_s16 = scalar_select %p877_p4, %s5048_s29, 1 }
  0x58   : > { %s4238_s1 = sshll.u32 %s6245_s28, 3  ;;  %s6191_s6 = sld [smem:[#allocation31_spill]] }
  0x59   : > { %s4129_s20 = sshll.u32 %s5321_s16, 1  ;;  %s4239_s3 = sshll.u32 %s5321_s16, 4 }
  0x5a   : > { %s6192_s8 = sld [smem:[#allocation33_spill]]  ;;  %s5370_s30 = scalar_lea.vmem %s6119_s14, %s4129_s20 }
  0x5b   : > { %s5326_s18 = scalar_lea.vmem %s6189_s24, %s4238_s1  ;;  %s6194_s10 = sld [smem:[#allocation35_spill]] }
  0x5c   : > { %s5332_s4 = scalar_lea.vmem %s6190_s7, %s4129_s20  ;;  %s6196_s12 = sld [smem:[#allocation37_spill]] }
  0x5d   : > { %s6200_s17 = sld [smem:[#allocation40_spill]]  ;;  %s4244_s26 = sshll.u32 %s5321_s16, 6 }
  0x5e   : > { %s5338_s2 = scalar_lea.vmem %s6191_s6, %s4239_s3  ;;  %s6201_s11 = sld [smem:[#allocation42_spill]] }
  0x5f   : > { %s6202_s13 = sld [smem:[#allocation41_spill]]  ;;  %s5391_s20 = scalar_lea.vmem [#allocation6], %s4125_s19 }
  0x60   : > { %s5343_s27 = scalar_lea.vmem %s6192_s8, %s4239_s3  ;;  %p4143_p8 = scmp.ne.s32.totalorder %s5048_s29, 0 }
  0x61   : > { %s5352_s7 = scalar_lea.vmem %s6194_s10, %s4239_s3  ;;  %s6199_s10 = sld [smem:[#allocation39_spill]] }
  0x62   : > { %s5361_s0 = scalar_lea.vmem %s6196_s12, %s4239_s3  ;;  %s6203_s1 = sld [smem:[#allocation26_spill]] (!%p4143_p8) }
  0x63   : > { %6197 = sst [smem:[#allocation24_spill]] %s5361_s0  ;;  %s921_s6 = scalar_lea.vmem %s6200_s17, %s5321_s16 }
  0x64   : > { %s929_s5 = scalar_lea.vmem %s6201_s11, %s5321_s16  ;;  %935 = sbr.rel (%p4143_p8) target bundleno = 666 (0x29a), region = 112 }
  0x65   : > { %s5389_s23 = scalar_lea.vmem %s6202_s13, %s4244_s26  ;;  %s6204_s15 = sld [smem:[#allocation27_spill]] (!%p4143_p8) }
  0x66   : > { %s6205_s26 = sld [smem:[#allocation29_spill]] (!%p4143_p8) }
  0x67   : > { %s5375_s9 = scalar_lea.vmem %s6199_s10, %s4239_s3 }
  0x69   : > { %v4740_v0 = vld [vmem:[%s6203_s1 + $0x38] sm:$0xff]   ;;  %v5067_v1 = vmov 0   ;;  %v4741_v2 = vld [vmem:[%s6203_s1 + $0x30] sm:$0xff]   ;;  %v4742_v3 = vld [vmem:[%s6203_s1 + $0x28] sm:$0xff]   ;;  %vm1054_vm0 = vcmask 523264   ;;  %vm1116_vm1 = vcmask 261120   ;;  %v1170_v59 = vlaneseq }
  0x6a   : > { %1061 = vmatprep.subr.bf16.mxu0 %v5067_v1  ;;  %4604 = vmatprep.subr.bf16.mxu1 %v5067_v1  ;;  %v4743_v4 = vld [vmem:[%s6203_s1 + $0x20] sm:$0xff]   ;;  %v4744_v6 = vld [vmem:[%s6203_s1 + $0x18] sm:$0xff]   ;;  %v4745_v8 = vld [vmem:[%s6203_s1 + $0x10] sm:$0xff]  }
  0x6b   : > { %1062 = vmatpush1.bf16.msra.mxu0 %v4740_v0  ;;  %4616 = vmatpush1.bf16.msra.mxu1 %v4740_v0  ;;  %v4754_v5 = vld [vmem:[%s5326_s18 + $0x4] ss:$8 sps:$4 sm:$0xff]   ;;  %v4757_v7 = vld [vmem:[%s5326_s18 + $0x14] ss:$8 sps:$4 sm:$0xff]   ;;  %v4752_v15 = vld [vmem:[%s5326_s18] ss:$8 sps:$4 sm:$0xff]  }
  0x6c   : > { %1063 = vmatprep.subr.bf16.mxu0 %v5067_v1  ;;  %4605 = vmatprep.subr.bf16.mxu1 %v5067_v1  ;;  %v4746_v9 = vld [vmem:[%s6203_s1 + $0x8] sm:$0xff]   ;;  %v4747_v10 = vld [vmem:[%s6203_s1] sm:$0xff]   ;;  %v4748_v11 = vld [vmem:[%s6203_s1 + $0x58] sm:$0xff]  }
  0x6d   : > { %4160 = vmatprep.mubr.msk.bf16.mxu0 %vm1054_vm0, %v4754_v5  ;;  %4161 = vmatprep.mubr.msk.bf16.mxu1 %vm1054_vm0, %v4757_v7  ;;  %v4749_v12 = vld [vmem:[%s6203_s1 + $0x50] sm:$0xff]   ;;  %v4750_v13 = vld [vmem:[%s6203_s1 + $0x48] sm:$0xff]   ;;  %v4751_v14 = vld [vmem:[%s6203_s1 + $0x40] sm:$0xff]  }
  0x6e   : > { %v4755_v16 = vld [vmem:[%s5326_s18 + $0x10] ss:$8 sps:$4 sm:$0xff]   ;;  %v1110_v17 = vld [vmem:[%s6204_s15] sm:$0xff] }
  0x6f   : > { %1064 = vmatpush1.bf16.msra.mxu0 %v4741_v2  ;;  %4617 = vmatpush1.bf16.msra.mxu1 %v4741_v2  ;;  %v1115_v5 = vld [vmem:[%s6205_s26] sm:$0x3] }
  0x70   : > { %1065 = vmatprep.subr.bf16.mxu0 %v5067_v1  ;;  %4606 = vmatprep.subr.bf16.mxu1 %v5067_v1 }
  0x73   : > { %1066 = vmatpush1.bf16.msra.mxu0 %v4742_v3  ;;  %4618 = vmatpush1.bf16.msra.mxu1 %v4742_v3 }
  0x74   : > { %1067 = vmatprep.subr.bf16.mxu0 %v5067_v1  ;;  %4607 = vmatprep.subr.bf16.mxu1 %v5067_v1 }
  0x77   : > { %1068 = vmatpush1.bf16.msra.mxu0 %v4743_v4  ;;  %4619 = vmatpush1.bf16.msra.mxu1 %v4743_v4 }
  0x78   : > { %1069 = vmatprep.subr.bf16.mxu0 %v5067_v1  ;;  %4608 = vmatprep.subr.bf16.mxu1 %v5067_v1 }
  0x7b   : > { %1070 = vmatpush1.bf16.msra.mxu0 %v4744_v6  ;;  %4620 = vmatpush1.bf16.msra.mxu1 %v4744_v6 }
  0x7c   : > { %1071 = vmatprep.subr.bf16.mxu0 %v5067_v1  ;;  %4609 = vmatprep.subr.bf16.mxu1 %v5067_v1 }
  0x7f   : > { %1072 = vmatpush1.bf16.msra.mxu0 %v4745_v8  ;;  %4621 = vmatpush1.bf16.msra.mxu1 %v4745_v8 }
  0x80   : > { %1073 = vmatprep.subr.bf16.mxu0 %v5067_v1  ;;  %4610 = vmatprep.subr.bf16.mxu1 %v5067_v1 }
  0x83   : > { %1074 = vmatpush1.bf16.msra.mxu0 %v4746_v9  ;;  %4622 = vmatpush1.bf16.msra.mxu1 %v4746_v9 }
  0x84   : > { %1075 = vmatprep.subr.bf16.mxu0 %v5067_v1  ;;  %4611 = vmatprep.subr.bf16.mxu1 %v5067_v1 }
  0x87   : > { %1076 = vmatpush1.bf16.msra.mxu0 %v4747_v10  ;;  %4623 = vmatpush1.bf16.msra.mxu1 %v4747_v10 }
  0x88   : > { %1085 = vmatprep.subr.bf16.mxu0 %v5067_v1  ;;  %4612 = vmatprep.subr.bf16.mxu1 %v5067_v1 }
  0x8b   : > { %1086 = vmatpush2.bf16.msra.mxu0 %v4748_v11  ;;  %4624 = vmatpush2.bf16.msra.mxu1 %v4748_v11 }
  0x8c   : > { %1087 = vmatprep.subr.bf16.mxu0 %v5067_v1  ;;  %4613 = vmatprep.subr.bf16.mxu1 %v5067_v1 }
  0x8f   : > { %1088 = vmatpush2.bf16.msra.mxu0 %v4749_v12  ;;  %4625 = vmatpush2.bf16.msra.mxu1 %v4749_v12 }
  0x90   : > { %1089 = vmatprep.subr.bf16.mxu0 %v5067_v1  ;;  %4614 = vmatprep.subr.bf16.mxu1 %v5067_v1 }
  0x93   : > { %1090 = vmatpush2.bf16.msra.mxu0 %v4750_v13  ;;  %4626 = vmatpush2.bf16.msra.mxu1 %v4750_v13 }
  0x94   : > { %1091 = vmatprep.subr.bf16.mxu0 %v5067_v1  ;;  %4615 = vmatprep.subr.bf16.mxu1 %v5067_v1  ;;  %v1171_v1 = vshrl.u32 %v1170_v59, 7 }
  0x96   : > { %v1172_v4 = vsub.s32 0, %v1171_v1  ;;  %v1180_v6 = vsub.s32 1, %v1171_v1 }
  0x97   : > { %1092 = vmatpush2.bf16.msra.mxu0 %v4751_v14  ;;  %4627 = vmatpush2.bf16.msra.mxu1 %v4751_v14 }
  0x98   : > { %v1173_v7 = vrot.slane %v1115_v5, %v1172_v4  ;;  %v1181_v9 = vrot.slane %v1115_v5, %v1180_v6 }
  0x9a   : > { %1094 = vmatmul.mubr.bf16.vlgmr.msra.gmra.mxu0 %v4752_v15  ;;  %1102 = vmatmul.mubr.bf16.vlgmr.msra.gmra.mxu1 %v4755_v16 }
 0x15a   : > { %v1095_v18 = vpop.f32.mrf.mxu0  ;;  %v1103_v19 = vpop.f32.mrf.mxu1 }
 0x15b   : > { %v1111_v20 = vadd.f32 %v1110_v17, %v1095_v18  ;;  %v1113_v21 = vadd.f32 %v1110_v17, %v1103_v19 }
 0x15c   : > { %v1097_v22 = vpop.f32.mrf.mxu0  ;;  %v1105_v23 = vpop.f32.mrf.mxu1 }
 0x15d   : > { %v1123_v24 = vsel %vm1116_vm1, %v1113_v21, 0.0  ;;  %v1117_v25 = vsel %vm1116_vm1, %v1111_v20, 0.0 }
 0x15e   : > { %1124 = vadd.xlane.f32.xlu1 %v1123_v24  ;;  %v1106_v26 = vpop.f32.mrf.mxu1  ;;  %1118 = vadd.xlane.f32.xlu0 %v1117_v25  ;;  %v1098_v27 = vpop.f32.mrf.mxu0 }
 0x15f   : > { %v1114_v28 = vadd.f32 %v1110_v17, %v1106_v26  ;;  %v1112_v29 = vadd.f32 %v1110_v17, %v1098_v27 }
 0x160   : > { %v1100_v30 = vpop.f32.mrf.mxu0  ;;  %v1108_v31 = vpop.f32.mrf.mxu1 }
 0x161   : > { %v1126_v32 = vsel %vm1116_vm1, %v1114_v28, 0.0  ;;  %v1120_v33 = vsel %vm1116_vm1, %v1112_v29, 0.0 }
 0x162   : > { %1127 = vadd.xlane.f32.xlu1 %v1126_v32  ;;  %1121 = vadd.xlane.f32.xlu0 %v1120_v33 }
 0x1e7   : > { %v1125_v34 = vpop.xlane.xlu1 %1124  ;;  %v1119_v35 = vpop.xlane.xlu0 %1118 }
 0x1e8   : > { %v1132_v36 = vmul.f32 0.03125, %v1125_v34  ;;  %v1130_v37 = vmul.f32 0.03125, %v1119_v35 }
 0x1ea   : > { %v1136_v38 = vsub.f32 %v1113_v21, %v1132_v36  ;;  %v1134_v39 = vsub.f32 %v1111_v20, %v1130_v37 }
 0x1eb   : > { %v1128_v40 = vpop.xlane.xlu1 %1127  ;;  %v1122_v41 = vpop.xlane.xlu0 %1121 }
 0x1ec   : > { %v1133_v42 = vmul.f32 0.03125, %v1128_v40  ;;  %v1131_v43 = vmul.f32 0.03125, %v1122_v41  ;;  %v1138_v44 = vmul.f32 %v1134_v39, %v1134_v39  ;;  %v1140_v48 = vmul.f32 %v1136_v38, %v1136_v38 }
 0x1ee   : > { %v1137_v45 = vsub.f32 %v1114_v28, %v1133_v42  ;;  %v1135_v46 = vsub.f32 %v1112_v29, %v1131_v43  ;;  %v1142_v47 = vsel %vm1116_vm1, %v1138_v44, 0.0  ;;  %v1148_v50 = vsel %vm1116_vm1, %v1140_v48, 0.0 }
 0x1ef   : > { %1143 = vadd.xlane.f32.xlu0 %v1142_v47 }
 0x1f0   : > { %v1139_v49 = vmul.f32 %v1135_v46, %v1135_v46  ;;  %v1141_v52 = vmul.f32 %v1137_v45, %v1137_v45 }
 0x1f2   : > { %v1145_v51 = vsel %vm1116_vm1, %v1139_v49, 0.0  ;;  %v1151_v53 = vsel %vm1116_vm1, %v1141_v52, 0.0 }
 0x1f3   : > { %1149 = vadd.xlane.f32.xlu0 %v1148_v50  ;;  %1146 = vadd.xlane.f32.xlu1 %v1145_v51 }
 0x1f7   : > { %1152 = vadd.xlane.f32.xlu1 %v1151_v53 }
 0x278   : > { %v1144_v54 = vpop.xlane.xlu0 %1143 }
 0x279   : > { %v1154_v55 = vmul.f32 0.03125, %v1144_v54 }
 0x27b   : > { %v1158_v56 = vadd.f32 1e-05, %v1154_v55 }
 0x27c   : > { %v1147_v57 = vpop.xlane.xlu1 %1146  ;;  %v1150_v58 = vpop.xlane.xlu0 %1149 }
 0x27d   : > { %4758 = vrsqrt.f32 %v1158_v56  ;;  %v1155_v60 = vmul.f32 0.03125, %v1147_v57  ;;  %v1156_v61 = vmul.f32 0.03125, %v1150_v58 }
 0x27f   : > { %v1159_v62 = vadd.f32 1e-05, %v1155_v60  ;;  %v1160_v63 = vadd.f32 1e-05, %v1156_v61 }
 0x280   : > { %v1153_v0 = vpop.xlane.xlu1 %1152 }
 0x281   : > { %4760 = vrsqrt.f32 %v1159_v62  ;;  %v1157_v2 = vmul.f32 0.03125, %v1153_v0 }
 0x282   : > { %4762 = vrsqrt.f32 %v1160_v63 }
 0x283   : > { %v1161_v3 = vadd.f32 1e-05, %v1157_v2 }
 0x285   : > { %4764 = vrsqrt.f32 %v1161_v3 }
 0x28a   : > { %v4759_v8 = vpop.eup %4758 }
 0x28b   : > { %v1166_v10 = vmul.f32 %v4759_v8, %v1134_v39 }
 0x28d   : > { %v1174_v11 = vmul.f32 %v1173_v7, %v1166_v10 }
 0x28e   : > { %v4761_v12 = vpop.eup %4760 }
 0x28f   : > { %v4763_v13 = vpop.eup %4762  ;;  %v1182_v14 = vadd.f32 %v1181_v9, %v1174_v11  ;;  %v1167_v15 = vmul.f32 %v4761_v12, %v1135_v46 }
 0x290   : > { %v1168_v16 = vmul.f32 %v4763_v13, %v1136_v38 }
 0x291   : > { %1186 = vst.msk [vmem:[#allocation2] sm:$0xff] %vm1116_vm1, %v1182_v14  ;;  %v1175_v17 = vmul.f32 %v1173_v7, %v1167_v15 }
 0x292   : > { %v4765_v18 = vpop.eup %4764  ;;  %v1176_v19 = vmul.f32 %v1173_v7, %v1168_v16 }
 0x293   : > { %v1183_v20 = vadd.f32 %v1181_v9, %v1175_v17  ;;  %v1169_v21 = vmul.f32 %v4765_v18, %v1137_v45 }
 0x294   : > { %v1184_v22 = vadd.f32 %v1181_v9, %v1176_v19 }
 0x295   : > { %1187 = vst.msk [vmem:[#allocation2 + $0x8] sm:$0xff] %vm1116_vm1, %v1183_v20  ;;  %v1177_v23 = vmul.f32 %v1173_v7, %v1169_v21 }
 0x296   : > { %1188 = vst.msk [vmem:[#allocation2 + $0x10] sm:$0xff] %vm1116_vm1, %v1184_v22 }
 0x297   : > { %v1185_v24 = vadd.f32 %v1181_v9, %v1177_v23 }
 0x299   : > { %1189 = vst.msk [vmem:[#allocation2 + $0x18] sm:$0xff] %vm1116_vm1, %v1185_v24 }
 0x29a PF: > { %v1190_v25 = vld [vmem:[#allocation2] sm:$0xff]  ;;  %vm1195_vm2 = vcmask 261120   ;;  %v4796_v53 = vld [vmem:[%s5338_s2 + $0x8] sm:$0xff]   ;;  %v1249_v1 = vlaneseq  ;;  %vm5069_vm3 = vmmov 0   ;;  %vm1586_vm4 = vcmask 64512   ;;  %s5072_s10 = smov 104  }
 0x29b   : > { %v1196_v28 = vsel %vm1195_vm2, %v1190_v25, 0.0  ;;  %v4797_v54 = vld [vmem:[%s5338_s2] sm:$0xff]   ;;  %4344 = vmatprep.subr.bf16.mxu0 %v4796_v53  ;;  %v4798_v55 = vld [vmem:[%s5343_s27 + $0x8] sm:$0xff]   ;;  %s5070_s2 = smov 120   ;;  %s6208_s12 = sld [smem:[#allocation36_spill]]  ;;  %vm2518_vm5 = vcmask 1043456  }
 0x29c   : > { %v1191_v27 = vld [vmem:[#allocation2 + $0x8] sm:$0xff]  ;;  %1197 = vadd.xlane.f32.xlu0 %v1196_v28  ;;  %4345 = vmatpush3.bf16.msra.mxu0 %v4796_v53  ;;  %v1250_v5 = vshrl.u32 %v1249_v1, 7  ;;  %v1194_v7 = vld [vmem:[%s5332_s4] sm:$0x3]  ;;  %s6210_s19 = sld [smem:[#allocation28_spill]]  ;;  %s5073_s17 = smov 8  }
 0x29d   : > { %v1192_v26 = vld [vmem:[#allocation2 + $0x10] sm:$0xff]  ;;  %v1199_v31 = vsel %vm1195_vm2, %v1191_v27, 0.0  ;;  %4346 = vmatprep.subr.bf16.mxu0 %v4797_v54  ;;  %s6211_s25 = sld [smem:[#allocation24_spill]]  ;;  %s5074_s24 = smov 16   ;;  %vm3304_vm6 = vcmask 130048   ;;  %vm3309_vm7 = vcmask 195584  }
 0x29e   : > { %v1202_v29 = vsel %vm1195_vm2, %v1192_v26, 0.0  ;;  %v5463_v6 = vsub.s32 0, %v1250_v5  ;;  %v5467_v11 = vsub.s32 1, %v1250_v5  ;;  %s5075_s15 = smov 24   ;;  %s6212_s26 = sld [smem:[#allocation38_spill]] }
 0x29f   : > { %1203 = vadd.xlane.f32.xlu1 %v1202_v29  ;;  %v4799_v29 = vld [vmem:[%s5343_s27] sm:$0xff]   ;;  %p4228_p5 = scmp.ne.s32.totalorder %s5048_s29, 1 }
 0x2a0   : > { %v1193_v30 = vld [vmem:[#allocation2 + $0x18] sm:$0xff]  ;;  %1200 = vadd.xlane.f32.xlu0 %v1199_v31  ;;  %4347 = vmatpush3.bf16.msra.mxu0 %v4797_v54  ;;  %v1252_v10 = vrot.slane %v1194_v7, %v5463_v6  ;;  %v1260_v16 = vrot.slane %v1194_v7, %v5467_v11  ;;  %v4801_v31 = vld [vmem:[%s5352_s7] sm:$0xff]   ;;  %s6218_s11 = sld [smem:[#allocation43_spill]] (!%p4228_p5) }
 0x2a1   : > { %v1205_v32 = vsel %vm1195_vm2, %v1193_v30, 0.0  ;;  %4352 = vmatprep.subr.bf16.mxu0 %v4798_v55  ;;  %s6209_s8 = scalar_lea.vmem %s6208_s12, %s5321_s16 }
 0x2a3   : > { %1206 = vadd.xlane.f32.xlu1 %v1205_v32  ;;  %v5068_v32 = vmov 0.0  }
 0x2a4   : > { %4368 = vmatprep.subr.bf16.mxu1 %v5068_v32  ;;  %4370 = vmatprep.mubr.msk.bf16.mxu1 %vm5069_vm3, %v5068_v32 }
 0x325   : > { %v1198_v33 = vpop.xlane.xlu0 %1197 }
 0x326   : > { %v1209_v35 = vmul.f32 0.03125, %v1198_v33 }
 0x328   : > { %v1204_v34 = vpop.xlane.xlu1 %1203  ;;  %v1213_v37 = vsub.f32 %v1190_v25, %v1209_v35 }
 0x329   : > { %v1211_v36 = vmul.f32 0.03125, %v1204_v34  ;;  %v1201_v39 = vpop.xlane.xlu0 %1200  ;;  %v4162_v34 = vld [vmem:[%s5309_s22] ss:$0 sm:$0xff]  ;;  %s5071_s22 = smov 112  }
 0x32a   : > { %v1210_v41 = vmul.f32 0.03125, %v1201_v39  ;;  %v1217_v43 = vmul.f32 %v1213_v37, %v1213_v37 }
 0x32b   : > { %v1215_v38 = vsub.f32 %v1192_v26, %v1211_v36 }
 0x32c   : > { %v1207_v40 = vpop.xlane.xlu1 %1206  ;;  %v1214_v45 = vsub.f32 %v1191_v27, %v1210_v41  ;;  %v1221_v47 = vsel %vm1195_vm2, %v1217_v43, 0.0 }
 0x32d   : > { %v1212_v42 = vmul.f32 0.03125, %v1207_v40  ;;  %v1219_v44 = vmul.f32 %v1215_v38, %v1215_v38  ;;  %1222 = vadd.xlane.f32.xlu0 %v1221_v47 }
 0x32e   : > { %v1218_v49 = vmul.f32 %v1214_v45, %v1214_v45 }
 0x32f   : > { %v1216_v46 = vsub.f32 %v1193_v30, %v1212_v42  ;;  %v1227_v48 = vsel %vm1195_vm2, %v1219_v44, 0.0  ;;  %v4800_v30 = vld [vmem:[%s5352_s7 + $0x8] sm:$0xff]   ;;  %s6206_s7 = sld [smem:[#allocation34_spill]] }
 0x330   : > { %v1224_v51 = vsel %vm1195_vm2, %v1218_v49, 0.0 }
 0x331   : > { %v1220_v50 = vmul.f32 %v1216_v46, %v1216_v46  ;;  %1228 = vadd.xlane.f32.xlu0 %v1227_v48  ;;  %1225 = vadd.xlane.f32.xlu1 %v1224_v51 }
 0x333   : > { %v1230_v52 = vsel %vm1195_vm2, %v1220_v50, 0.0 }
 0x335   : > { %1231 = vadd.xlane.f32.xlu1 %v1230_v52  ;;  %s6207_s28 = scalar_lea.vmem %s6206_s7, %s5321_s16 }
 0x336   : > { %v4167_v41 = vld [vmem:[%s6207_s28] ss:$0 sm:$0xff] }
 0x3b6   : > { %v1223_v56 = vpop.xlane.xlu0 %1222 }
 0x3b7   : > { %v1233_v57 = vmul.f32 0.03125, %v1223_v56 }
 0x3b9   : > { %v1237_v58 = vadd.f32 1e-05, %v1233_v57 }
 0x3ba   : > { %v1226_v59 = vpop.xlane.xlu1 %1225  ;;  %v1229_v60 = vpop.xlane.xlu0 %1228 }
 0x3bb   : > { %4814 = vrsqrt.f32 %v1237_v58  ;;  %v1234_v61 = vmul.f32 0.03125, %v1226_v59  ;;  %v1235_v62 = vmul.f32 0.03125, %v1229_v60 }
 0x3bd   : > { %v1238_v63 = vadd.f32 1e-05, %v1234_v61  ;;  %v1239_v0 = vadd.f32 1e-05, %v1235_v62 }
 0x3be   : > { %v1232_v2 = vpop.xlane.xlu1 %1231 }
 0x3bf   : > { %4816 = vrsqrt.f32 %v1238_v63  ;;  %v1236_v3 = vmul.f32 0.03125, %v1232_v2 }
 0x3c0   : > { %4818 = vrsqrt.f32 %v1239_v0  ;;  %v4172_v0 = vld [vmem:[%s6209_s8] ss:$0 sm:$0xff] }
 0x3c1   : > { %v1240_v4 = vadd.f32 1e-05, %v1236_v3 }
 0x3c3   : > { %4820 = vrsqrt.f32 %v1240_v4 }
 0x3c8   : > { %v4815_v8 = vpop.eup %4814 }
 0x3c9   : > { %v1245_v9 = vmul.f32 %v4815_v8, %v1213_v37 }
 0x3cb   : > { %v1253_v15 = vmul.f32 %v1252_v10, %v1245_v9 }
 0x3cc   : > { %v4817_v12 = vpop.eup %4816 }
 0x3cd   : > { %v4819_v13 = vpop.eup %4818  ;;  %v1246_v14 = vmul.f32 %v4817_v12, %v1214_v45  ;;  %v1261_v20 = vadd.f32 %v1260_v16, %v1253_v15 }
 0x3ce   : > { %v1247_v17 = vmul.f32 %v4819_v13, %v1215_v38 }
 0x3cf   : > { %v1254_v18 = vmul.f32 %v1252_v10, %v1246_v14 }
 0x3d0   : > { %v4821_v19 = vpop.eup %4820  ;;  %v1255_v23 = vmul.f32 %v1252_v10, %v1247_v17 }
 0x3d1   : > { %v1262_v21 = vadd.f32 %v1260_v16, %v1254_v18  ;;  %v1248_v22 = vmul.f32 %v4821_v19, %v1216_v46 }
 0x3d2   : > { %v1263_v26 = vadd.f32 %v1260_v16, %v1255_v23 }
 0x3d3   : > { %v1265_v24 = vpack.c.bf16 %v1262_v21, %v1261_v20  ;;  %v1256_v25 = vmul.f32 %v1252_v10, %v1248_v22 }
 0x3d5   : > { %4348 = vmatprep.mubr.msk.bf16.mxu0 %vm1195_vm2, %v1265_v24  ;;  %v1264_v27 = vadd.f32 %v1260_v16, %v1256_v25 }
 0x3d7   : > { %v1266_v28 = vpack.c.bf16 %v1264_v27, %v1263_v26 }
 0x3d9   : > { %4349 = vmatmul.mubr.msk.bf16.vlgmr.msra.gmra.mxu0 %vm1195_vm2, %v1266_v28 }
 0x3da   : > { %4353 = vmatpush3.bf16.msra.mxu0 %v4798_v55  ;;  %4356 = vmatprep.mubr.msk.bf16.mxu0 %vm1195_vm2, %v1265_v24 }
 0x3db   : > { %4354 = vmatprep.subr.bf16.mxu0 %v4799_v29 }
 0x3de   : > { %4355 = vmatpush3.bf16.msra.mxu0 %v4799_v29 }
 0x3df   : > { %4360 = vmatprep.subr.bf16.mxu0 %v4800_v30 }
 0x3e1   : > { %4357 = vmatmul.mubr.msk.bf16.vlgmr.msra.gmra.mxu0 %vm1195_vm2, %v1266_v28 }
 0x3e2   : > { %4361 = vmatpush3.bf16.msra.mxu0 %v4800_v30  ;;  %4364 = vmatprep.mubr.msk.bf16.mxu0 %vm1195_vm2, %v1265_v24 }
 0x3e3   : > { %4362 = vmatprep.subr.bf16.mxu0 %v4801_v31 }
 0x3e6   : > { %4363 = vmatpush3.bf16.msra.mxu0 %v4801_v31 }
 0x3e7   : > { %4374 = vmatprep.subr.bf16.mxu0 %v5068_v32 }
 0x3e9   : > { %4365 = vmatmul.mubr.msk.bf16.vlgmr.msra.gmra.mxu0 %vm1195_vm2, %v1266_v28 }
 0x3ea   : > { %4376 = vmatprep.mubr.msk.bf16.mxu0 %vm5069_vm3, %v5068_v32 }
 0x499   : > { %v4350_v33 = vpop.f32.mrf.mxu0 }
 0x49a   : > { %v1339_v50 = vadd.f32 %v4350_v33, %v4162_v34 }
 0x49b   : > { %v1330_v35 = vpop.f32.mrf.mxu0 }
 0x49c   : > { %v1331_v36 = vadd.f32 %v4162_v34, %v1330_v35  ;;  %v1491_v56 = vpack.c.bf16 %v1339_v50, %v1339_v50 }
 0x49d   : > { %v4351_v37 = vpop.f32.mrf.mxu0 }
 0x49e   : > { %v1489_v38 = vpack.c.bf16 %v1331_v36, %v1331_v36  ;;  %v1342_v60 = vadd.f32 %v4351_v37, %v4162_v34 }
 0x49f   : > { %v1333_v39 = vpop.f32.mrf.mxu0 }
 0x4a0   : > { %1505 = vrot.lane.b32.xlu1 %v1489_v38, %s5070_s2  ;;  %v1334_v51 = vadd.f32 %v4162_v34, %v1333_v39  ;;  %v1492_v62 = vpack.c.bf16 %v1342_v60, %v1342_v60 }
 0x4a1   : > { %v4358_v40 = vpop.f32.mrf.mxu0 }
 0x4a2   : > { %v1411_v45 = vadd.f32 %v4358_v40, %v4167_v41  ;;  %v1490_v57 = vpack.c.bf16 %v1334_v51, %v1334_v51 }
 0x4a3   : > { %v1402_v42 = vpop.f32.mrf.mxu0 }
 0x4a4   : > { %v1403_v43 = vadd.f32 %v4167_v41, %v1402_v42  ;;  %v1495_v52 = vpack.c.bf16 %v1411_v45, %v1411_v45 }
 0x4a5   : > { %v4359_v44 = vpop.f32.mrf.mxu0 }
 0x4a6   : > { %v1493_v46 = vpack.c.bf16 %v1403_v43, %v1403_v43  ;;  %v1414_v54 = vadd.f32 %v4359_v44, %v4167_v41  ;;  %v1683_v59 = vsel %vm1586_vm4, %v1495_v52, 0 }
 0x4a7   : > { %v1405_v47 = vpop.f32.mrf.mxu0 }
 0x4a8   : > { %v1406_v48 = vadd.f32 %v4167_v41, %v1405_v47  ;;  %1533 = vrot.lane.b32.xlu0 %v1493_v46, %s5070_s2  ;;  %v1591_v49 = vsel %vm1586_vm4, %v1493_v46, 0  ;;  %v1496_v58 = vpack.c.bf16 %v1414_v54, %v1414_v54 }
 0x4a9   : > { %4369 = vmatpush3.bf16.xpose.msra.mxu1 %v1591_v49  ;;  %v4366_v63 = vpop.f32.mrf.mxu0 }
 0x4aa   : > { %v1494_v53 = vpack.c.bf16 %v1406_v48, %v1406_v48  ;;  %4380 = vmatprep.subr.bf16.mxu1 %v5068_v32  ;;  %v1729_v61 = vsel %vm1586_vm4, %v1496_v58, 0  ;;  %v1483_v1 = vadd.f32 %v4366_v63, %v4172_v0 }
 0x4ab   : > { %v1474_v2 = vpop.f32.mrf.mxu0 }
 0x4ac   : > { %1537 = vrot.lane.b32.xlu0 %v1495_v52, %s5070_s2  ;;  %1535 = vrot.lane.b32.xlu1 %v1494_v53, %s5070_s2  ;;  %v1637_v55 = vsel %vm1586_vm4, %v1494_v53, 0  ;;  %v5538_v3 = vpack.c.bf16 %v1483_v1, %v1483_v1  ;;  %v1475_v4 = vadd.f32 %v4172_v0, %v1474_v2 }
 0x4ad   : > { %4375 = vmatpush3.bf16.xpose.msra.mxu0 %v1637_v55  ;;  %v4367_v5 = vpop.f32.mrf.mxu0 }
 0x4ae   : > { %4386 = vmatprep.subr.bf16.mxu0 %v5068_v32  ;;  %v5543_v7 = vpack.c.bf16 %v1475_v4, %v1475_v4  ;;  %v1486_v8 = vadd.f32 %v4367_v5, %v4172_v0 }
 0x4af   : > { %v1477_v9 = vpop.f32.mrf.mxu0 }
 0x4b0   : > { %1509 = vrot.lane.b32.xlu0 %v1491_v56, %s5070_s2  ;;  %1507 = vrot.lane.b32.xlu1 %v1490_v57, %s5070_s2  ;;  %v5548_v10 = vpack.c.bf16 %v1486_v8, %v1486_v8  ;;  %v1478_v12 = vadd.f32 %v4172_v0, %v1477_v9  ;;  %v2520_v50 = vsel %vm2518_vm5, %v5543_v7, 0 }
 0x4b1   : > { %4371 = vmatmul.mubr.msk.bf16.vlgmr.msra.gmra.mxu1 %vm1586_vm4, %v1489_v38 }
 0x4b2   : > { %4381 = vmatpush3.bf16.xpose.msra.mxu1 %v1683_v59  ;;  %4382 = vmatprep.mubr.msk.bf16.mxu1 %vm5069_vm3, %v5068_v32  ;;  %v5552_v13 = vpack.c.bf16 %v1478_v12, %v1478_v12 }
 0x4b3   : > { %4392 = vmatprep.subr.bf16.mxu1 %v5068_v32 }
 0x4b4   : > { %1541 = vrot.lane.b32.xlu0 %v1493_v46, %s5071_s22  ;;  %4377 = vmatmul.mubr.msk.bf16.vlgmr.msra.gmra.mxu0 %vm1586_vm4, %v1490_v57 }
 0x4b5   : > { %1539 = vrot.lane.b32.xlu1 %v1496_v58, %s5070_s2  ;;  %4387 = vmatpush3.bf16.xpose.msra.mxu0 %v1729_v61 }
 0x4b6   : > { %4388 = vmatprep.mubr.msk.bf16.mxu0 %vm5069_vm3, %v5068_v32  ;;  %4398 = vmatprep.subr.bf16.mxu0 %v5068_v32 }
 0x4b8   : > { %1513 = vrot.lane.b32.xlu0 %v1489_v38, %s5071_s22 }
 0x4b9   : > { %1511 = vrot.lane.b32.xlu1 %v1492_v62, %s5070_s2  ;;  %4383 = vmatmul.mubr.msk.bf16.vlgmr.msra.gmra.mxu1 %vm1586_vm4, %v1491_v56 }
 0x4ba   : > { %4394 = vmatprep.mubr.msk.bf16.mxu1 %vm5069_vm3, %v5068_v32 }
 0x4bc   : > { %4389 = vmatmul.mubr.msk.bf16.vlgmr.msra.gmra.mxu0 %vm1586_vm4, %v1492_v62  ;;  %1545 = vrot.lane.b32.xlu0 %v1495_v52, %s5071_s22 }
 0x4bd   : > { %1543 = vrot.lane.b32.xlu1 %v1494_v53, %s5071_s22  ;;  %4400 = vmatprep.mubr.msk.bf16.mxu0 %vm5069_vm3, %v5068_v32 }
 0x4c0   : > { %1517 = vrot.lane.b32.xlu0 %v1491_v56, %s5071_s22 }
 0x4c1   : > { %1515 = vrot.lane.b32.xlu1 %v1490_v57, %s5071_s22 }
 0x4c4   : > { %1549 = vrot.lane.b32.xlu0 %v1493_v46, %s5072_s10 }
 0x4c5   : > { %1547 = vrot.lane.b32.xlu1 %v1496_v58, %s5071_s22 }
 0x4c8   : > { %1521 = vrot.lane.b32.xlu0 %v1489_v38, %s5072_s10 }
 0x4c9   : > { %1519 = vrot.lane.b32.xlu1 %v1492_v62, %s5071_s22 }
 0x4cc   : > { %1553 = vrot.lane.b32.xlu0 %v1495_v52, %s5072_s10  ;;  %v2566_v52 = vsel %vm2518_vm5, %v5552_v13, 0 }
 0x4cd   : > { %1551 = vrot.lane.b32.xlu1 %v1494_v53, %s5072_s10  ;;  %v5625_v53 = vld [vmem:[%s6210_s19] sm:$0xff] }
 0x4d0   : > { %1525 = vrot.lane.b32.xlu0 %v1491_v56, %s5072_s10 }
 0x4d1   : > { %1523 = vrot.lane.b32.xlu1 %v1490_v57, %s5072_s10 }
 0x4d4   : > { %1565 = vrot.lane.b32.xlu0 %v5538_v3, %s5070_s2 }
 0x4d5   : > { %1555 = vrot.lane.b32.xlu1 %v1496_v58, %s5072_s10 }
 0x4d8   : > { %1561 = vrot.lane.b32.xlu0 %v5543_v7, %s5070_s2 }
 0x4d9   : > { %1527 = vrot.lane.b32.xlu1 %v1492_v62, %s5072_s10 }
 0x4dd   : > { %1567 = vrot.lane.b32.xlu1 %v5548_v10, %s5070_s2 }
 0x4e1   : > { %1563 = vrot.lane.b32.xlu1 %v5552_v13, %s5070_s2  ;;  %s6213_s2 = scalar_lea.vmem %s6212_s26, %s5321_s16 }
 0x512   : > { %v1506_v14 = vpop.permute.xlu1 %1505 }
 0x51a   : > { %v1534_v15 = vpop.permute.xlu0 %1533 }
 0x51b   : > { %v1775_v16 = vsel %vm1586_vm4, %v1534_v15, 0 }
 0x51c   : > { %4393 = vmatpush3.bf16.xpose.msra.mxu1 %v1775_v16 }
 0x51d   : > { %4404 = vmatprep.subr.bf16.mxu1 %v5068_v32 }
 0x51e   : > { %v1538_v17 = vpop.permute.xlu0 %1537  ;;  %v1536_v18 = vpop.permute.xlu1 %1535 }
 0x51f   : > { %v1821_v19 = vsel %vm1586_vm4, %v1536_v18, 0  ;;  %v1867_v22 = vsel %vm1586_vm4, %v1538_v17, 0 }
 0x520   : > { %4399 = vmatpush3.bf16.xpose.msra.mxu0 %v1821_v19 }
 0x521   : > { %4410 = vmatprep.subr.bf16.mxu0 %v5068_v32 }
 0x522   : > { %v1510_v20 = vpop.permute.xlu0 %1509  ;;  %v1508_v21 = vpop.permute.xlu1 %1507 }
 0x523   : > { %4395 = vmatmul.mubr.msk.bf16.vlgmr.msra.gmra.mxu1 %vm1586_vm4, %v1506_v14 }
 0x524   : > { %4405 = vmatpush3.bf16.xpose.msra.mxu1 %v1867_v22  ;;  %4406 = vmatprep.mubr.msk.bf16.mxu1 %vm5069_vm3, %v5068_v32 }
 0x525   : > { %4416 = vmatprep.subr.bf16.mxu1 %v5068_v32 }
 0x526   : > { %v1542_v23 = vpop.permute.xlu0 %1541 }
 0x527   : > { %v1540_v24 = vpop.permute.xlu1 %1539  ;;  %4401 = vmatmul.mubr.msk.bf16.vlgmr.msra.gmra.mxu0 %vm1586_vm4, %v1508_v21  ;;  %v1959_v27 = vsel %vm1586_vm4, %v1542_v23, 0 }
 0x528   : > { %v1913_v25 = vsel %vm1586_vm4, %v1540_v24, 0  ;;  %4412 = vmatprep.mubr.msk.bf16.mxu0 %vm5069_vm3, %v5068_v32 }
 0x529   : > { %4411 = vmatpush3.bf16.xpose.msra.mxu0 %v1913_v25 }
 0x52a   : > { %v1514_v26 = vpop.permute.xlu0 %1513  ;;  %4422 = vmatprep.subr.bf16.mxu0 %v5068_v32 }
 0x52b   : > { %v1512_v28 = vpop.permute.xlu1 %1511  ;;  %4407 = vmatmul.mubr.msk.bf16.vlgmr.msra.gmra.mxu1 %vm1586_vm4, %v1510_v20 }
 0x52c   : > { %4417 = vmatpush3.bf16.xpose.msra.mxu1 %v1959_v27  ;;  %4418 = vmatprep.mubr.msk.bf16.mxu1 %vm5069_vm3, %v5068_v32 }
 0x52d   : > { %4428 = vmatprep.subr.bf16.mxu1 %v5068_v32 }
 0x52e   : > { %v1546_v29 = vpop.permute.xlu0 %1545 }
 0x52f   : > { %v1544_v30 = vpop.permute.xlu1 %1543  ;;  %v2051_v34 = vsel %vm1586_vm4, %v1546_v29, 0 }
 0x530   : > { %v2005_v31 = vsel %vm1586_vm4, %v1544_v30, 0  ;;  %4413 = vmatmul.mubr.msk.bf16.vlgmr.msra.gmra.mxu0 %vm1586_vm4, %v1512_v28 }
 0x531   : > { %4423 = vmatpush3.bf16.xpose.msra.mxu0 %v2005_v31  ;;  %4424 = vmatprep.mubr.msk.bf16.mxu0 %vm5069_vm3, %v5068_v32 }
 0x532   : > { %v1518_v33 = vpop.permute.xlu0 %1517  ;;  %4434 = vmatprep.subr.bf16.mxu0 %v5068_v32 }
 0x533   : > { %v1516_v35 = vpop.permute.xlu1 %1515  ;;  %4419 = vmatmul.mubr.msk.bf16.vlgmr.msra.gmra.mxu1 %vm1586_vm4, %v1514_v26 }
 0x534   : > { %4429 = vmatpush3.bf16.xpose.msra.mxu1 %v2051_v34  ;;  %4430 = vmatprep.mubr.msk.bf16.mxu1 %vm5069_vm3, %v5068_v32 }
 0x535   : > { %4440 = vmatprep.subr.bf16.mxu1 %v5068_v32 }
 0x536   : > { %v1550_v36 = vpop.permute.xlu0 %1549 }
 0x537   : > { %v1548_v37 = vpop.permute.xlu1 %1547  ;;  %v2143_v40 = vsel %vm1586_vm4, %v1550_v36, 0 }
 0x538   : > { %v2097_v38 = vsel %vm1586_vm4, %v1548_v37, 0  ;;  %4425 = vmatmul.mubr.msk.bf16.vlgmr.msra.gmra.mxu0 %vm1586_vm4, %v1516_v35 }
 0x539   : > { %4435 = vmatpush3.bf16.xpose.msra.mxu0 %v2097_v38  ;;  %4436 = vmatprep.mubr.msk.bf16.mxu0 %vm5069_vm3, %v5068_v32 }
 0x53a   : > { %v1522_v39 = vpop.permute.xlu0 %1521  ;;  %4446 = vmatprep.subr.bf16.mxu0 %v5068_v32 }
 0x53b   : > { %v1520_v41 = vpop.permute.xlu1 %1519  ;;  %4431 = vmatmul.mubr.msk.bf16.vlgmr.msra.gmra.mxu1 %vm1586_vm4, %v1518_v33 }
 0x53c   : > { %4441 = vmatpush3.bf16.xpose.msra.mxu1 %v2143_v40  ;;  %4442 = vmatprep.mubr.msk.bf16.mxu1 %vm5069_vm3, %v5068_v32 }
 0x53d   : > { %4452 = vmatprep.subr.bf16.mxu1 %v5068_v32 }
 0x53e   : > { %v1554_v43 = vpop.permute.xlu0 %1553 }
 0x53f   : > { %v1552_v42 = vpop.permute.xlu1 %1551  ;;  %v2235_v45 = vsel %vm1586_vm4, %v1554_v43, 0 }
 0x540   : > { %v2189_v44 = vsel %vm1586_vm4, %v1552_v42, 0  ;;  %4437 = vmatmul.mubr.msk.bf16.vlgmr.msra.gmra.mxu0 %vm1586_vm4, %v1520_v41 }
 0x541   : > { %4447 = vmatpush3.bf16.xpose.msra.mxu0 %v2189_v44  ;;  %4448 = vmatprep.mubr.msk.bf16.mxu0 %vm5069_vm3, %v5068_v32 }
 0x542   : > { %4458 = vmatprep.subr.bf16.mxu0 %v5068_v32  ;;  %v1526_v49 = vpop.permute.xlu0 %1525 }
 0x543   : > { %v1524_v46 = vpop.permute.xlu1 %1523  ;;  %4443 = vmatmul.mubr.msk.bf16.vlgmr.msra.gmra.mxu1 %vm1586_vm4, %v1522_v39 }
 0x544   : > { %4453 = vmatpush3.bf16.xpose.msra.mxu1 %v2235_v45  ;;  %4454 = vmatprep.mubr.msk.bf16.mxu1 %vm5069_vm3, %v5068_v32 }
 0x545   : > { %4464 = vmatprep.subr.bf16.mxu1 %v5068_v32 }
 0x547   : > { %v1556_v47 = vpop.permute.xlu1 %1555 }
 0x548   : > { %v2281_v48 = vsel %vm1586_vm4, %v1556_v47, 0  ;;  %4449 = vmatmul.mubr.msk.bf16.vlgmr.msra.gmra.mxu0 %vm1586_vm4, %v1524_v46 }
 0x549   : > { %4459 = vmatpush3.bf16.xpose.msra.mxu0 %v2281_v48  ;;  %4460 = vmatprep.mubr.msk.bf16.mxu0 %vm5069_vm3, %v5068_v32 }
 0x54a   : > { %4470 = vmatprep.subr.bf16.mxu0 %v5068_v32 }
 0x54b   : > { %4455 = vmatmul.mubr.msk.bf16.vlgmr.msra.gmra.mxu1 %vm1586_vm4, %v1526_v49  ;;  %v1528_v51 = vpop.permute.xlu1 %1527 }
 0x54c   : > { %4465 = vmatpush3.bf16.msra.mxu1 %v2520_v50  ;;  %4466 = vmatprep.mubr.msk.bf16.mxu1 %vm5069_vm3, %v5068_v32 }
 0x54d   : > { %4476 = vmatprep.subr.bf16.mxu1 %v5068_v32 }
 0x550   : > { %4461 = vmatmul.mubr.msk.bf16.vlgmr.msra.gmra.mxu0 %vm1586_vm4, %v1528_v51 }
 0x551   : > { %4471 = vmatpush3.bf16.msra.mxu0 %v2566_v52  ;;  %4472 = vmatprep.mubr.msk.bf16.mxu0 %vm5069_vm3, %v5068_v32 }
 0x552   : > { %4482 = vmatprep.subr.bf16.mxu0 %v5068_v32 }
 0x571   : > { %v1627_v54 = vpop.f32.mrf.mxu1 }
 0x572   : > { %v5628_v55 = vadd.f32 %v1627_v54, %v5625_v53 }
 0x573   : > { %v4372_v56 = vpop.f32.mrf.mxu1 }
 0x574   : > { %v1673_v57 = vpop.f32.mrf.mxu0  ;;  %v2323_v58 = vsel %vm1586_vm4, %v5628_v55, -inf }
 0x575   : > { %v5633_v59 = vadd.f32 %v1673_v57, %v5625_v53  ;;  %2324 = vmax.xlane.f32.xlu0 %v2323_v58  ;;  %v1630_v60 = vpop.f32.mrf.mxu1 }
 0x576   : > { %v4378_v61 = vpop.f32.mrf.mxu0 }
 0x577   : > { %v4373_v62 = vpop.f32.mrf.mxu1  ;;  %v2326_v63 = vsel %vm1586_vm4, %v5633_v59, -inf }
 0x578   : > { %v1676_v0 = vpop.f32.mrf.mxu0  ;;  %2327 = vmax.xlane.f32.xlu1 %v2326_v63 }
 0x579   : > { %v1719_v1 = vpop.f32.mrf.mxu1 }
 0x57a   : > { %v5638_v2 = vadd.f32 %v1719_v1, %v5625_v53  ;;  %v4379_v4 = vpop.f32.mrf.mxu0 }
 0x57b   : > { %v4384_v5 = vpop.f32.mrf.mxu1 }
 0x57c   : > { %v1765_v8 = vpop.f32.mrf.mxu0  ;;  %v2329_v9 = vsel %vm1586_vm4, %v5638_v2, -inf }
 0x57d   : > { %v5643_v12 = vadd.f32 %v1765_v8, %v5625_v53  ;;  %2330 = vmax.xlane.f32.xlu0 %v2329_v9  ;;  %v1722_v14 = vpop.f32.mrf.mxu1 }
 0x57e   : > { %v4390_v15 = vpop.f32.mrf.mxu0 }
 0x57f   : > { %v4385_v16 = vpop.f32.mrf.mxu1  ;;  %v2332_v17 = vsel %vm1586_vm4, %v5643_v12, -inf }
 0x580   : > { %v1768_v18 = vpop.f32.mrf.mxu0 }
 0x581   : > { %2333 = vmax.xlane.f32.xlu0 %v2332_v17 }
 0x582   : > { %v4391_v19 = vpop.f32.mrf.mxu0 }
 0x5e3   : > { %v1811_v20 = vpop.f32.mrf.mxu1 }
 0x5e4   : > { %v5648_v21 = vadd.f32 %v1811_v20, %v5625_v53 }
 0x5e5   : > { %v4396_v22 = vpop.f32.mrf.mxu1 }
 0x5e6   : > { %v2335_v23 = vsel %vm1586_vm4, %v5648_v21, -inf }
 0x5e7   : > { %v1857_v24 = vpop.f32.mrf.mxu0  ;;  %2336 = vmax.xlane.f32.xlu0 %v2335_v23  ;;  %v1814_v25 = vpop.f32.mrf.mxu1 }
 0x5e8   : > { %v5653_v26 = vadd.f32 %v1857_v24, %v5625_v53 }
 0x5e9   : > { %v4397_v27 = vpop.f32.mrf.mxu1  ;;  %v4402_v28 = vpop.f32.mrf.mxu0 }
 0x5ea   : > { %v2338_v29 = vsel %vm1586_vm4, %v5653_v26, -inf }
 0x5eb   : > { %2339 = vmax.xlane.f32.xlu1 %v2338_v29  ;;  %v1860_v30 = vpop.f32.mrf.mxu0  ;;  %v1903_v31 = vpop.f32.mrf.mxu1 }
 0x5ec   : > { %v5658_v33 = vadd.f32 %v1903_v31, %v5625_v53 }
 0x5ed   : > { %v4403_v34 = vpop.f32.mrf.mxu0  ;;  %v4408_v35 = vpop.f32.mrf.mxu1 }
 0x5ee   : > { %v2341_v36 = vsel %vm1586_vm4, %v5658_v33, -inf }
 0x5ef   : > { %2342 = vmax.xlane.f32.xlu0 %v2341_v36  ;;  %v1906_v37 = vpop.f32.mrf.mxu1 }
 0x5f0   : > { %v1949_v38 = vpop.f32.mrf.mxu0 }
 0x5f1   : > { %v5663_v39 = vadd.f32 %v1949_v38, %v5625_v53  ;;  %v4409_v40 = vpop.f32.mrf.mxu1 }
 0x5f2   : > { %v4414_v41 = vpop.f32.mrf.mxu0 }
 0x5f3   : > { %v2344_v42 = vsel %vm1586_vm4, %v5663_v39, -inf  ;;  %v1995_v43 = vpop.f32.mrf.mxu1 }
 0x5f4   : > { %2345 = vmax.xlane.f32.xlu1 %v2344_v42  ;;  %v1952_v44 = vpop.f32.mrf.mxu0  ;;  %v5668_v45 = vadd.f32 %v1995_v43, %v5625_v53  ;;  %v5704_v43 = vpop.permute.xlu0 %1565 }
 0x5f5   : > { %v4420_v46 = vpop.f32.mrf.mxu1 }
 0x5f6   : > { %v4415_v47 = vpop.f32.mrf.mxu0  ;;  %v2347_v48 = vsel %vm1586_vm4, %v5668_v45, -inf  ;;  %v5714_v46 = vpop.permute.xlu1 %1567 }
 0x5f7   : > { %2348 = vmax.xlane.f32.xlu0 %v2347_v48  ;;  %v1998_v49 = vpop.f32.mrf.mxu1 }
 0x5f8   : > { %v2041_v50 = vpop.f32.mrf.mxu0  ;;  %v5708_v44 = vpop.permute.xlu0 %1561 }
 0x5f9   : > { %v5673_v51 = vadd.f32 %v2041_v50, %v5625_v53  ;;  %v4421_v52 = vpop.f32.mrf.mxu1 }
 0x5fa   : > { %v4426_v54 = vpop.f32.mrf.mxu0  ;;  %v5717_v50 = vpop.permute.xlu1 %1563 }
 0x5fb   : > { %v2350_v56 = vsel %vm1586_vm4, %v5673_v51, -inf  ;;  %v2087_v57 = vpop.f32.mrf.mxu1 }
 0x5fc   : > { %2351 = vmax.xlane.f32.xlu1 %v2350_v56  ;;  %v2044_v58 = vpop.f32.mrf.mxu0  ;;  %v5678_v60 = vadd.f32 %v2087_v57, %v5625_v53 }
 0x5fd   : > { %v4432_v61 = vpop.f32.mrf.mxu1 }
 0x5fe   : > { %v4427_v62 = vpop.f32.mrf.mxu0  ;;  %v2353_v63 = vsel %vm1586_vm4, %v5678_v60, -inf  ;;  %v2325_v47 = vpop.xlane.xlu0 %2324 }
 0x5ff   : > { %2354 = vmax.xlane.f32.xlu0 %v2353_v63  ;;  %v2090_v0 = vpop.f32.mrf.mxu1  ;;  %v2371_v48 = vsub.f32 %v5628_v55, %v2325_v47 }
 0x600   : > { %v2133_v1 = vpop.f32.mrf.mxu0 }
 0x601   : > { %v5683_v4 = vadd.f32 %v2133_v1, %v5625_v53  ;;  %v4433_v5 = vpop.f32.mrf.mxu1  ;;  %v2387_v52 = vmul.f32 1.442695, %v2371_v48  ;;  %v2328_v56 = vpop.xlane.xlu1 %2327 }
 0x602   : > { %v4438_v8 = vpop.f32.mrf.mxu0  ;;  %v2372_v58 = vsub.f32 %v5633_v59, %v2328_v56 }
 0x603   : > { %v2356_v9 = vsel %vm1586_vm4, %v5683_v4, -inf  ;;  %v2179_v14 = vpop.f32.mrf.mxu1  ;;  %4822 = vpow2.f32 %v2387_v52 }
 0x604   : > { %2357 = vmax.xlane.f32.xlu1 %v2356_v9  ;;  %v2136_v15 = vpop.f32.mrf.mxu0  ;;  %v5688_v16 = vadd.f32 %v2179_v14, %v5625_v53  ;;  %v2389_v62 = vmul.f32 1.442695, %v2372_v58 }
 0x605   : > { %v4444_v17 = vpop.f32.mrf.mxu1 }
 0x606   : > { %v4439_v18 = vpop.f32.mrf.mxu0  ;;  %v2359_v19 = vsel %vm1586_vm4, %v5688_v16, -inf  ;;  %v2331_v49 = vpop.xlane.xlu0 %2330 }
 0x607   : > { %2360 = vmax.xlane.f32.xlu0 %v2359_v19  ;;  %v2182_v20 = vpop.f32.mrf.mxu1  ;;  %v2373_v54 = vsub.f32 %v5638_v2, %v2331_v49 }
 0x608   : > { %v2225_v22 = vpop.f32.mrf.mxu0 }
 0x609   : > { %v5693_v23 = vadd.f32 %v2225_v22, %v5625_v53  ;;  %v4445_v24 = vpop.f32.mrf.mxu1  ;;  %v2391_v57 = vmul.f32 1.442695, %v2373_v54 }
 0x60a   : > { %v4450_v25 = vpop.f32.mrf.mxu0  ;;  %v2334_v61 = vpop.xlane.xlu0 %2333 }
 0x60b   : > { %v2362_v27 = vsel %vm1586_vm4, %v5693_v23, -inf  ;;  %v2271_v28 = vpop.f32.mrf.mxu1  ;;  %4824 = vpow2.f32 %v2391_v57  ;;  %v2374_v63 = vsub.f32 %v5643_v12, %v2334_v61 }
 0x60c   : > { %2363 = vmax.xlane.f32.xlu1 %v2362_v27  ;;  %v2228_v29 = vpop.f32.mrf.mxu0  ;;  %v5698_v30 = vadd.f32 %v2271_v28, %v5625_v53  ;;  %4826 = vpow2.f32 %v2389_v62 }
 0x60d   : > { %v4456_v31 = vpop.f32.mrf.mxu1  ;;  %v2393_v0 = vmul.f32 1.442695, %v2374_v63 }
 0x60e   : > { %v4451_v34 = vpop.f32.mrf.mxu0  ;;  %v2365_v35 = vsel %vm1586_vm4, %v5698_v30, -inf }
 0x60f   : > { %2366 = vmax.xlane.f32.xlu0 %v2365_v35  ;;  %v2274_v36 = vpop.f32.mrf.mxu1  ;;  %4828 = vpow2.f32 %v2393_v0 }
 0x610   : > { %v2317_v37 = vpop.f32.mrf.mxu0  ;;  %v5722_v1 = vpop.eup %4822 }
 0x611   : > { %v4457_v38 = vpop.f32.mrf.mxu1  ;;  %v2419_v55 = vsel %vm1586_vm4, %v5722_v1, 0.0  ;;  %v5729_v2 = vadd.f32 %v2317_v37, %v5625_v53 }
 0x612   : > { %v4462_v40 = vpop.f32.mrf.mxu0 }
 0x613   : > { %v2368_v12 = vsel %vm1586_vm4, %v5729_v2, -inf }
 0x614   : > { %v2320_v41 = vpop.f32.mrf.mxu0 }
 0x616   : > { %v4463_v42 = vpop.f32.mrf.mxu0 }
 0x618   : > { %v5726_v5 = vpop.eup %4824 }
 0x619   : > { %v2425_v59 = vsel %vm1586_vm4, %v5726_v5, 0.0  ;;  %v5735_v8 = vpop.eup %4826 }
 0x61a   : > { %v2422_v9 = vsel %vm1586_vm4, %v5735_v8, 0.0 }
 0x61c   : > { %v5739_v14 = vpop.eup %4828 }
 0x61d   : > { %1571 = vrot.lane.b32.xlu1 %v5552_v13, %s5071_s22  ;;  %v2428_v53 = vsel %vm1586_vm4, %v5739_v14, 0.0 }
 0x621   : > { %1573 = vrot.lane.b32.xlu1 %v5538_v3, %s5071_s22 }
 0x625   : > { %1575 = vrot.lane.b32.xlu1 %v5548_v10, %s5071_s22  ;;  %1569 = vrot.lane.b32.xlu0 %v5543_v7, %s5071_s22 }
 0x644   : > { %2420 = vadd.xlane.f32.xlu0 %v2419_v55 }
 0x648   : > { %2426 = vadd.xlane.f32.xlu0 %v2425_v59 }
 0x649   : > { %2369 = vmax.xlane.f32.xlu1 %v2368_v12 }
 0x64d   : > { %2423 = vadd.xlane.f32.xlu1 %v2422_v9 }
 0x651   : > { %2429 = vadd.xlane.f32.xlu1 %v2428_v53 }
 0x670   : > { %v2337_v15 = vpop.xlane.xlu0 %2336 }
 0x671   : > { %v2375_v17 = vsub.f32 %v5648_v21, %v2337_v15 }
 0x673   : > { %v2395_v18 = vmul.f32 1.442695, %v2375_v17 }
 0x674   : > { %v2340_v19 = vpop.xlane.xlu1 %2339 }
 0x675   : > { %4830 = vpow2.f32 %v2395_v18  ;;  %v2376_v20 = vsub.f32 %v5653_v26, %v2340_v19 }
 0x677   : > { %v2397_v22 = vmul.f32 1.442695, %v2376_v20 }
 0x678   : > { %v2343_v24 = vpop.xlane.xlu0 %2342 }
 0x679   : > { %4832 = vpow2.f32 %v2397_v22  ;;  %v2377_v25 = vsub.f32 %v5658_v33, %v2343_v24 }
 0x67b   : > { %v2399_v27 = vmul.f32 1.442695, %v2377_v25 }
 0x67d   : > { %4834 = vpow2.f32 %v2399_v27  ;;  %v2346_v28 = vpop.xlane.xlu1 %2345 }
 0x67e   : > { %v2378_v29 = vsub.f32 %v5663_v39, %v2346_v28 }
 0x680   : > { %v2401_v31 = vmul.f32 1.442695, %v2378_v29  ;;  %v2349_v34 = vpop.xlane.xlu0 %2348 }
 0x681   : > { %v2379_v35 = vsub.f32 %v5668_v45, %v2349_v34 }
 0x682   : > { %v5748_v21 = vpop.eup %4830  ;;  %4836 = vpow2.f32 %v2401_v31 }
 0x683   : > { %v2403_v36 = vmul.f32 1.442695, %v2379_v35  ;;  %v2431_v26 = vsel %vm1586_vm4, %v5748_v21, 0.0 }
 0x684   : > { %2432 = vadd.xlane.f32.xlu0 %v2431_v26 }
 0x685   : > { %4838 = vpow2.f32 %v2403_v36  ;;  %v2352_v37 = vpop.xlane.xlu1 %2351 }
 0x686   : > { %v5752_v33 = vpop.eup %4832  ;;  %v2380_v38 = vsub.f32 %v5673_v51, %v2352_v37 }
 0x687   : > { %v2434_v39 = vsel %vm1586_vm4, %v5752_v33, 0.0 }
 0x688   : > { %v2405_v40 = vmul.f32 1.442695, %v2380_v38  ;;  %2435 = vadd.xlane.f32.xlu1 %v2434_v39  ;;  %v2355_v45 = vpop.xlane.xlu0 %2354 }
 0x689   : > { %v2381_v41 = vsub.f32 %v5678_v60, %v2355_v45 }
 0x68a   : > { %v5758_v42 = vpop.eup %4834  ;;  %4840 = vpow2.f32 %v2405_v40 }
 0x68b   : > { %v2407_v47 = vmul.f32 1.442695, %v2381_v41  ;;  %v2437_v48 = vsel %vm1586_vm4, %v5758_v42, 0.0 }
 0x68c   : > { %2438 = vadd.xlane.f32.xlu0 %v2437_v48 }
 0x68d   : > { %4842 = vpow2.f32 %v2407_v47  ;;  %v2358_v61 = vpop.xlane.xlu1 %2357 }
 0x68e   : > { %v2382_v62 = vsub.f32 %v5683_v4, %v2358_v61  ;;  %v2750_v61 = vsel %vm2518_vm5, %v5717_v50, 0 }
 0x68f   : > { %v5762_v49 = vpop.eup %4836 }
 0x690   : > { %v2440_v51 = vsel %vm1586_vm4, %v5762_v49, 0.0  ;;  %v2361_v0 = vpop.xlane.xlu0 %2360  ;;  %v2409_v59 = vmul.f32 1.442695, %v2382_v62 }
 0x691   : > { %2441 = vadd.xlane.f32.xlu1 %v2440_v51  ;;  %v2383_v12 = vsub.f32 %v5688_v16, %v2361_v0 }
 0x692   : > { %v5766_v52 = vpop.eup %4838  ;;  %4844 = vpow2.f32 %v2409_v59 }
 0x693   : > { %v2443_v60 = vsel %vm1586_vm4, %v5766_v52, 0.0  ;;  %v2411_v15 = vmul.f32 1.442695, %v2383_v12 }
 0x694   : > { %2444 = vadd.xlane.f32.xlu0 %v2443_v60  ;;  %v2704_v60 = vsel %vm2518_vm5, %v5708_v44, 0 }
 0x695   : > { %v2364_v63 = vpop.xlane.xlu1 %2363 }
 0x696   : > { %v2384_v55 = vsub.f32 %v5693_v23, %v2364_v63 }
 0x697   : > { %v5770_v54 = vpop.eup %4840 }
 0x698   : > { %v2446_v56 = vsel %vm1586_vm4, %v5770_v54, 0.0  ;;  %v2367_v9 = vpop.xlane.xlu0 %2366  ;;  %v2413_v53 = vmul.f32 1.442695, %v2384_v55 }
 0x699   : > { %2447 = vadd.xlane.f32.xlu1 %v2446_v56  ;;  %v2385_v17 = vsub.f32 %v5698_v30, %v2367_v9  ;;  %v5786_v18 = vpop.permute.xlu1 %1571  ;;  %v2796_v9 = vsel %vm2518_vm5, %v5704_v43, 0 }
 0x69a   : > { %v5774_v57 = vpop.eup %4842  ;;  %4846 = vpow2.f32 %v2413_v53 }
 0x69b   : > { %v2449_v58 = vsel %vm1586_vm4, %v5774_v57, 0.0  ;;  %4848 = vpow2.f32 %v2411_v15 }
 0x69c   : > { %2450 = vadd.xlane.f32.xlu0 %v2449_v58  ;;  %v5790_v4 = vpop.permute.xlu0 %1569 }
 0x69f   : > { %v5792_v23 = vpop.eup %4844 }
 0x6a0   : > { %v2452_v16 = vsel %vm1586_vm4, %v5792_v23, 0.0 }
 0x6a7   : > { %v5794_v19 = vpop.eup %4846 }
 0x6a8   : > { %v5798_v22 = vpop.eup %4848  ;;  %v2458_v24 = vsel %vm1586_vm4, %v5794_v19, 0.0 }
 0x6a9   : > { %v2455_v25 = vsel %vm1586_vm4, %v5798_v22, 0.0 }
 0x6aa   : > { %1579 = vrot.lane.b32.xlu1 %v5552_v13, %s5072_s10  ;;  %v2415_v13 = vmul.f32 1.442695, %v2385_v17  ;;  %v2842_v17 = vsel %vm2518_vm5, %v5714_v46, 0 }
 0x6ac   : > { %4850 = vpow2.f32 %v2415_v13 }
 0x6b2   : > { %1577 = vrot.lane.b32.xlu0 %v5543_v7, %s5072_s10  ;;  %v5788_v7 = vpop.permute.xlu1 %1573 }
 0x6b6   : > { %v5800_v30 = vpop.permute.xlu1 %1575 }
 0x6b9   : > { %v5806_v28 = vpop.eup %4850 }
 0x6ba   : > { %v2461_v35 = vsel %vm1586_vm4, %v5806_v28, 0.0 }
 0x6cd   : > { %v2421_v20 = vpop.xlane.xlu0 %2420 }
 0x6ce   : > { %2453 = vadd.xlane.f32.xlu1 %v2452_v16  ;;  %4852 = vrcp.f32 %v2421_v20  ;;  %v2888_v20 = vsel %vm2518_vm5, %v5790_v4, 0 }
 0x6d1   : > { %2459 = vadd.xlane.f32.xlu0 %v2458_v24  ;;  %v2427_v27 = vpop.xlane.xlu0 %2426 }
 0x6d2   : > { %v2370_v29 = vpop.xlane.xlu1 %2369  ;;  %2456 = vadd.xlane.f32.xlu1 %v2455_v25  ;;  %4854 = vrcp.f32 %v2427_v27  ;;  %v2934_v27 = vsel %vm2518_vm5, %v5786_v18, 0 }
 0x6d3   : > { %v2386_v31 = vsub.f32 %v5729_v2, %v2370_v29  ;;  %v2612_v2 = vsel %vm2518_vm5, %v5538_v3, 0  ;;  %v2980_v29 = vsel %vm2518_vm5, %v5788_v7, 0 }
 0x6d5   : > { %v2417_v34 = vmul.f32 1.442695, %v2386_v31 }
 0x6d6   : > { %v2424_v36 = vpop.xlane.xlu1 %2423  ;;  %2462 = vadd.xlane.f32.xlu1 %v2461_v35  ;;  %v3026_v35 = vsel %vm2518_vm5, %v5800_v30, 0 }
 0x6d7   : > { %4856 = vpow2.f32 %v2417_v34 }
 0x6d8   : > { %4858 = vrcp.f32 %v2424_v36 }
 0x6da   : > { %v2430_v26 = vpop.xlane.xlu1 %2429 }
 0x6db   : > { %v4853_v37 = vpop.eup %4852  ;;  %4860 = vrcp.f32 %v2430_v26 }
 0x6dc   : > { %v2483_v38 = vmul.f32 %v4853_v37, %v5722_v1 }
 0x6de   : > { %v2499_v39 = vpack.c.bf16 %v2483_v38, %v2483_v38 }
 0x6df   : > { %v4855_v40 = vpop.eup %4854 }
 0x6e0   : > { %4467 = vmatmul.mubr.msk.bf16.vlgmr.msra.gmra.mxu1 %vm1586_vm4, %v2499_v39  ;;  %v2485_v45 = vmul.f32 %v4855_v40, %v5726_v5 }
 0x6e1   : > { %4477 = vmatpush3.bf16.msra.mxu1 %v2612_v2  ;;  %4478 = vmatprep.mubr.msk.bf16.mxu1 %vm5069_vm3, %v5068_v32 }
 0x6e2   : > { %4488 = vmatprep.subr.bf16.mxu1 %v5068_v32  ;;  %v2501_v51 = vpack.c.bf16 %v2485_v45, %v2485_v45 }
 0x6e4   : > { %v5819_v41 = vpop.eup %4856 }
 0x6e5   : > { %v4859_v47 = vpop.eup %4858  ;;  %v2464_v1 = vsel %vm1586_vm4, %v5819_v41, 0.0 }
 0x6e6   : > { %2465 = vadd.xlane.f32.xlu0 %v2464_v1  ;;  %v2484_v48 = vmul.f32 %v4859_v47, %v5735_v8  ;;  %v2658_v8 = vsel %vm2518_vm5, %v5548_v10, 0 }
 0x6e7   : > { %1583 = vrot.lane.b32.xlu1 %v5548_v10, %s5072_s10 }
 0x6e8   : > { %v2500_v56 = vpack.c.bf16 %v2484_v48, %v2484_v48  ;;  %4479 = vmatmul.mubr.msk.bf16.vlgmr.msra.gmra.mxu1 %vm1586_vm4, %v2501_v51  ;;  %v4861_v5 = vpop.eup %4860 }
 0x6e9   : > { %4489 = vmatpush3.bf16.msra.mxu1 %v2704_v60  ;;  %4490 = vmatprep.mubr.msk.bf16.mxu1 %vm5069_vm3, %v5068_v32  ;;  %v2486_v44 = vmul.f32 %v4861_v5, %v5739_v14 }
 0x6ea   : > { %4473 = vmatmul.mubr.msk.bf16.vlgmr.msra.gmra.mxu0 %vm1586_vm4, %v2500_v56  ;;  %4500 = vmatprep.subr.bf16.mxu1 %v5068_v32 }
 0x6eb   : > { %4483 = vmatpush3.bf16.msra.mxu0 %v2658_v8  ;;  %4484 = vmatprep.mubr.msk.bf16.mxu0 %vm5069_vm3, %v5068_v32  ;;  %v2502_v58 = vpack.c.bf16 %v2486_v44, %v2486_v44 }
 0x6ec   : > { %4494 = vmatprep.subr.bf16.mxu0 %v5068_v32 }
 0x6f2   : > { %4485 = vmatmul.mubr.msk.bf16.vlgmr.msra.gmra.mxu0 %vm1586_vm4, %v2502_v58 }
 0x6f3   : > { %4495 = vmatpush3.bf16.msra.mxu0 %v2750_v61  ;;  %4496 = vmatprep.mubr.msk.bf16.mxu0 %vm5069_vm3, %v5068_v32 }
 0x6f4   : > { %4506 = vmatprep.subr.bf16.mxu0 %v5068_v32 }
 0x6fc   : > { %1581 = vrot.lane.b32.xlu0 %v5538_v3, %s5072_s10 }
 0x70d   : > { %v2433_v10 = vpop.xlane.xlu0 %2432 }
 0x70e   : > { %4862 = vrcp.f32 %v2433_v10 }
 0x711   : > { %v2436_v62 = vpop.xlane.xlu1 %2435 }
 0x712   : > { %4864 = vrcp.f32 %v2436_v62 }
 0x715   : > { %v2439_v14 = vpop.xlane.xlu0 %2438 }
 0x716   : > { %4866 = vrcp.f32 %v2439_v14 }
 0x71a   : > { %v2442_v63 = vpop.xlane.xlu1 %2441 }
 0x71b   : > { %v4863_v0 = vpop.eup %4862  ;;  %4868 = vrcp.f32 %v2442_v63 }
 0x71c   : > { %v2487_v50 = vmul.f32 %v4863_v0, %v5748_v21 }
 0x71d   : > { %v2445_v55 = vpop.xlane.xlu0 %2444 }
 0x71e   : > { %4870 = vrcp.f32 %v2445_v55  ;;  %v2503_v59 = vpack.c.bf16 %v2487_v50, %v2487_v50 }
 0x71f   : > { %v4865_v12 = vpop.eup %4864 }
 0x720   : > { %4491 = vmatmul.mubr.msk.bf16.vlgmr.msra.gmra.mxu1 %vm1586_vm4, %v2503_v59  ;;  %v2488_v3 = vmul.f32 %v4865_v12, %v5752_v33 }
 0x721   : > { %4501 = vmatpush3.bf16.msra.mxu1 %v2796_v9  ;;  %4502 = vmatprep.mubr.msk.bf16.mxu1 %vm5069_vm3, %v5068_v32 }
 0x722   : > { %v2448_v53 = vpop.xlane.xlu1 %2447  ;;  %v2504_v15 = vpack.c.bf16 %v2488_v3, %v2488_v3  ;;  %4512 = vmatprep.subr.bf16.mxu1 %v5068_v32 }
 0x723   : > { %v4867_v21 = vpop.eup %4866  ;;  %4872 = vrcp.f32 %v2448_v53 }
 0x724   : > { %4497 = vmatmul.mubr.msk.bf16.vlgmr.msra.gmra.mxu0 %vm1586_vm4, %v2504_v15  ;;  %v2489_v43 = vmul.f32 %v4867_v21, %v5758_v42 }
 0x725   : > { %4507 = vmatpush3.bf16.msra.mxu0 %v2842_v17  ;;  %v2451_v13 = vpop.xlane.xlu0 %2450  ;;  %4508 = vmatprep.mubr.msk.bf16.mxu0 %vm5069_vm3, %v5068_v32 }
 0x726   : > { %4874 = vrcp.f32 %v2451_v13  ;;  %v2505_v33 = vpack.c.bf16 %v2489_v43, %v2489_v43  ;;  %4518 = vmatprep.subr.bf16.mxu0 %v5068_v32 }
 0x728   : > { %v4869_v16 = vpop.eup %4868  ;;  %4503 = vmatmul.mubr.msk.bf16.vlgmr.msra.gmra.mxu1 %vm1586_vm4, %v2505_v33 }
 0x729   : > { %4513 = vmatpush3.bf16.msra.mxu1 %v2888_v20  ;;  %v2490_v46 = vmul.f32 %v4869_v16, %v5762_v49  ;;  %4514 = vmatprep.mubr.msk.bf16.mxu1 %vm5069_vm3, %v5068_v32  ;;  %v1578_v36 = vpop.permute.xlu0 %1577 }
 0x72a   : > { %4524 = vmatprep.subr.bf16.mxu1 %v5068_v32 }
 0x72b   : > { %v4871_v42 = vpop.eup %4870  ;;  %v2506_v24 = vpack.c.bf16 %v2490_v46, %v2490_v46 }
 0x72c   : > { %v2491_v25 = vmul.f32 %v4871_v42, %v5766_v52 }
 0x72d   : > { %4509 = vmatmul.mubr.msk.bf16.vlgmr.msra.gmra.mxu0 %vm1586_vm4, %v2506_v24 }
 0x72e   : > { %4519 = vmatpush3.bf16.msra.mxu0 %v2934_v27  ;;  %v2507_v4 = vpack.c.bf16 %v2491_v25, %v2491_v25  ;;  %4520 = vmatprep.mubr.msk.bf16.mxu0 %vm5069_vm3, %v5068_v32 }
 0x72f   : > { %4530 = vmatprep.subr.bf16.mxu0 %v5068_v32 }
 0x730   : > { %v4873_v49 = vpop.eup %4872  ;;  %4515 = vmatmul.mubr.msk.bf16.vlgmr.msra.gmra.mxu1 %vm1586_vm4, %v2507_v4 }
 0x731   : > { %4525 = vmatpush3.bf16.msra.mxu1 %v2980_v29  ;;  %v2492_v52 = vmul.f32 %v4873_v49, %v5770_v54  ;;  %4526 = vmatprep.mubr.msk.bf16.mxu1 %vm5069_vm3, %v5068_v32  ;;  %v3072_v54 = vsel %vm2518_vm5, %v1578_v36, 0 }
 0x732   : > { %4536 = vmatprep.subr.bf16.mxu1 %v5068_v32 }
 0x733   : > { %v4875_v18 = vpop.eup %4874  ;;  %v2508_v31 = vpack.c.bf16 %v2492_v52, %v2492_v52 }
 0x734   : > { %v2493_v34 = vmul.f32 %v4875_v18, %v5774_v57  ;;  %v1580_v57 = vpop.permute.xlu1 %1579 }
 0x735   : > { %4521 = vmatmul.mubr.msk.bf16.vlgmr.msra.gmra.mxu0 %vm1586_vm4, %v2508_v31  ;;  %v3118_v1 = vsel %vm2518_vm5, %v1580_v57, 0 }
 0x736   : > { %4531 = vmatpush3.bf16.msra.mxu0 %v3026_v35  ;;  %v2509_v7 = vpack.c.bf16 %v2493_v34, %v2493_v34  ;;  %4532 = vmatprep.mubr.msk.bf16.mxu0 %vm5069_vm3, %v5068_v32 }
 0x737   : > { %4542 = vmatprep.subr.bf16.mxu0 %v5068_v32 }
 0x738   : > { %4527 = vmatmul.mubr.msk.bf16.vlgmr.msra.gmra.mxu1 %vm1586_vm4, %v2509_v7 }
 0x739   : > { %4537 = vmatpush3.bf16.msra.mxu1 %v3072_v54  ;;  %4538 = vmatprep.mubr.msk.bf16.mxu1 %vm5069_vm3, %v5068_v32 }
 0x73a   : > { %4548 = vmatprep.subr.bf16.mxu1 %v5068_v32 }
 0x757   : > { %v2454_v30 = vpop.xlane.xlu1 %2453 }
 0x758   : > { %4876 = vrcp.f32 %v2454_v30 }
 0x75a   : > { %v2460_v26 = vpop.xlane.xlu0 %2459 }
 0x75b   : > { %v2457_v37 = vpop.xlane.xlu1 %2456  ;;  %4878 = vrcp.f32 %v2460_v26 }
 0x75c   : > { %4880 = vrcp.f32 %v2457_v37 }
 0x75f   : > { %v2463_v38 = vpop.xlane.xlu1 %2462 }
 0x760   : > { %4882 = vrcp.f32 %v2463_v38 }
 0x763   : > { %v1584_v56 = vpop.permute.xlu1 %1583 }
 0x765   : > { %v4877_v39 = vpop.eup %4876 }
 0x766   : > { %v2494_v40 = vmul.f32 %v4877_v39, %v5792_v23 }
 0x768   : > { %v4879_v2 = vpop.eup %4878  ;;  %v2510_v45 = vpack.c.bf16 %v2494_v40, %v2494_v40 }
 0x769   : > { %v4881_v47 = vpop.eup %4880  ;;  %v2496_v60 = vmul.f32 %v4879_v2, %v5794_v19 }
 0x76a   : > { %4533 = vmatmul.mubr.msk.bf16.vlgmr.msra.gmra.mxu0 %vm1586_vm4, %v2510_v45  ;;  %v2495_v48 = vmul.f32 %v4881_v47, %v5798_v22  ;;  %v3210_v22 = vsel %vm2518_vm5, %v1584_v56, 0 }
 0x76b   : > { %4543 = vmatpush3.bf16.msra.mxu0 %v3118_v1  ;;  %4544 = vmatprep.mubr.msk.bf16.mxu0 %vm5069_vm3, %v5068_v32  ;;  %v2512_v8 = vpack.c.bf16 %v2496_v60, %v2496_v60 }
 0x76c   : > { %v2511_v51 = vpack.c.bf16 %v2495_v48, %v2495_v48  ;;  %4554 = vmatprep.subr.bf16.mxu0 %v5068_v32 }
 0x76d   : > { %v4883_v23 = vpop.eup %4882 }
 0x76e   : > { %4539 = vmatmul.mubr.msk.bf16.vlgmr.msra.gmra.mxu1 %vm1586_vm4, %v2511_v51  ;;  %v2497_v44 = vmul.f32 %v4883_v23, %v5806_v28  ;;  %v4802_v23 = vld [vmem:[%s6211_s25 + $0x8] sm:$0xff]  }
 0x76f   : > { %v2466_v5 = vpop.xlane.xlu0 %2465  ;;  %4550 = vmatprep.mubr.msk.bf16.mxu1 %vm5069_vm3, %v5068_v32 }
 0x770   : > { %4884 = vrcp.f32 %v2466_v5  ;;  %v2513_v61 = vpack.c.bf16 %v2497_v44, %v2497_v44 }
 0x772   : > { %4545 = vmatmul.mubr.msk.bf16.vlgmr.msra.gmra.mxu0 %vm1586_vm4, %v2512_v8 }
 0x773   : > { %4555 = vmatpush3.bf16.msra.mxu0 %v3210_v22  ;;  %v1582_v58 = vpop.permute.xlu0 %1581  ;;  %4556 = vmatprep.mubr.msk.bf16.mxu0 %vm5069_vm3, %v5068_v32 }
 0x774   : > { %v3164_v19 = vsel %vm2518_vm5, %v1582_v58, 0 }
 0x775   : > { %4549 = vmatpush3.bf16.msra.mxu1 %v3164_v19 }
 0x776   : > { %4560 = vmatprep.subr.bf16.mxu1 %v4802_v23 }
 0x778   : > { %4551 = vmatmul.mubr.msk.bf16.vlgmr.msra.gmra.mxu1 %vm1586_vm4, %v2513_v61 }
 0x779   : > { %4561 = vmatpush3.bf16.msra.mxu1 %v4802_v23 }
 0x77d   : > { %v4885_v10 = vpop.eup %4884 }
 0x77e   : > { %v2498_v62 = vmul.f32 %v4885_v10, %v5819_v41 }
 0x780   : > { %v2514_v14 = vpack.c.bf16 %v2498_v62, %v2498_v62 }
 0x782   : > { %4557 = vmatmul.mubr.msk.bf16.vlgmr.msra.gmra.mxu0 %vm1586_vm4, %v2514_v14 }
 0x7a0   : > { %v5915_v63 = vpop.f32.mrf.mxu1 }
 0x7a2   : > { %v4468_v28 = vpop.f32.mrf.mxu1 }
 0x7a4   : > { %v2559_v0 = vpop.f32.mrf.mxu1 }
 0x7a5   : > { %v4803_v0 = vld [vmem:[%s6211_s25] sm:$0xff]  }
 0x7a6   : > { %v4469_v50 = vpop.f32.mrf.mxu1  ;;  %4562 = vmatprep.subr.bf16.mxu1 %v4803_v0 }
 0x7a7   : > { %4563 = vmatpush3.bf16.msra.mxu1 %v4803_v0 }
 0x7a8   : > { %v5917_v55 = vpop.f32.mrf.mxu1 }
 0x7aa   : > { %v5919_v32 = vpop.f32.mrf.mxu0  ;;  %v4480_v59 = vpop.f32.mrf.mxu1 }
 0x7ac   : > { %v4474_v12 = vpop.f32.mrf.mxu0  ;;  %v2651_v9 = vpop.f32.mrf.mxu1 }
 0x7ae   : > { %v2605_v3 = vpop.f32.mrf.mxu0  ;;  %v4481_v53 = vpop.f32.mrf.mxu1 }
 0x7b0   : > { %v4475_v15 = vpop.f32.mrf.mxu0 }
 0x7b2   : > { %v5921_v21 = vpop.f32.mrf.mxu0 }
 0x7b4   : > { %v4486_v41 = vpop.f32.mrf.mxu0 }
 0x7b6   : > { %v2697_v17 = vpop.f32.mrf.mxu0 }
 0x7b8   : > { %v4487_v43 = vpop.f32.mrf.mxu0 }
 0x7e0   : > { %v2740_v13 = vpop.f32.mrf.mxu1 }
 0x7e2   : > { %v4492_v33 = vpop.f32.mrf.mxu1 }
 0x7e4   : > { %v2743_v16 = vpop.f32.mrf.mxu1  ;;  %v2786_v20 = vpop.f32.mrf.mxu0 }
 0x7e5   : > { %v4766_v46 = vpack.i.bf16 %v2786_v20, %v2740_v13 }
 0x7e6   : > { %v4493_v42 = vpop.f32.mrf.mxu1  ;;  %v4498_v24 = vpop.f32.mrf.mxu0 }
 0x7e7   : > { %4767 = vrot.lane.b32.xlu0 %v4766_v46, %s5073_s17 }
 0x7e8   : > { %v2789_v25 = vpop.f32.mrf.mxu0  ;;  %v2832_v27 = vpop.f32.mrf.mxu1 }
 0x7ea   : > { %v4499_v4 = vpop.f32.mrf.mxu0  ;;  %v4504_v49 = vpop.f32.mrf.mxu1 }
 0x7ec   : > { %v2835_v29 = vpop.f32.mrf.mxu1 }
 0x7ed   : > { %v2878_v52 = vpop.f32.mrf.mxu0 }
 0x7ee   : > { %v4771_v18 = vpack.i.bf16 %v2878_v52, %v2832_v27  ;;  %v4505_v31 = vpop.f32.mrf.mxu1 }
 0x7ef   : > { %v4510_v34 = vpop.f32.mrf.mxu0 }
 0x7f0   : > { %4772 = vrot.lane.b32.xlu1 %v4771_v18, %s5073_s17  ;;  %v2924_v35 = vpop.f32.mrf.mxu1 }
 0x7f1   : > { %v2881_v36 = vpop.f32.mrf.mxu0 }
 0x7f2   : > { %v4516_v7 = vpop.f32.mrf.mxu1 }
 0x7f3   : > { %v4511_v54 = vpop.f32.mrf.mxu0 }
 0x7f4   : > { %v2927_v57 = vpop.f32.mrf.mxu1 }
 0x7f5   : > { %v2970_v30 = vpop.f32.mrf.mxu0 }
 0x7f6   : > { %v4776_v26 = vpack.i.bf16 %v2970_v30, %v2924_v35  ;;  %v4517_v37 = vpop.f32.mrf.mxu1 }
 0x7f7   : > { %v4522_v38 = vpop.f32.mrf.mxu0 }
 0x7f8   : > { %4777 = vrot.lane.b32.xlu0 %v4776_v26, %s5074_s24  ;;  %v3016_v39 = vpop.f32.mrf.mxu1 }
 0x7f9   : > { %v2973_v40 = vpop.f32.mrf.mxu0 }
 0x7fa   : > { %v4528_v2 = vpop.f32.mrf.mxu1 }
 0x7fb   : > { %v4523_v45 = vpop.f32.mrf.mxu0 }
 0x7fc   : > { %v3019_v47 = vpop.f32.mrf.mxu1 }
 0x7fe   : > { %v4529_v1 = vpop.f32.mrf.mxu1 }
 0x82a   : > { %v3062_v48 = vpop.f32.mrf.mxu0 }
 0x82b   : > { %v4781_v51 = vpack.i.bf16 %v3062_v48, %v3016_v39  ;;  %v4903_v48 = vld [vmem:[#allocation2] sm:$0xff] }
 0x82c   : > { %v4534_v60 = vpop.f32.mrf.mxu0 }
 0x82d   : > { %4782 = vrot.lane.b32.xlu1 %v4781_v51, %s5074_s24 }
 0x82e   : > { %v3065_v56 = vpop.f32.mrf.mxu0  ;;  %v3108_v5 = vpop.f32.mrf.mxu1 }
 0x830   : > { %v4535_v8 = vpop.f32.mrf.mxu0  ;;  %v4540_v22 = vpop.f32.mrf.mxu1 }
 0x831   : > { %v4904_v8 = vld [vmem:[#allocation2 + $0x18] sm:$0xff] }
 0x832   : > { %v3111_v44 = vpop.f32.mrf.mxu1  ;;  %v3154_v58 = vpop.f32.mrf.mxu0 }
 0x833   : > { %v4786_v19 = vpack.i.bf16 %v3154_v58, %v3108_v5  ;;  %v4905_v44 = vld [vmem:[#allocation2 + $0x8] sm:$0xff] }
 0x834   : > { %v4541_v61 = vpop.f32.mrf.mxu1  ;;  %v4546_v10 = vpop.f32.mrf.mxu0 }
 0x835   : > { %4787 = vrot.lane.b32.xlu0 %v4786_v19, %s5075_s15 }
 0x836   : > { %v3157_v62 = vpop.f32.mrf.mxu0 }
 0x838   : > { %v4547_v14 = vpop.f32.mrf.mxu0  ;;  %v3200_v28 = vpop.f32.mrf.mxu1 }
 0x83a   : > { %v4552_v50 = vpop.f32.mrf.mxu1 }
 0x83c   : > { %v3203_v59 = vpop.f32.mrf.mxu1 }
 0x83e   : > { %v4553_v12 = vpop.f32.mrf.mxu1 }
 0x842   : > { %v3246_v9 = vpop.f32.mrf.mxu0 }
 0x843   : > { %v4791_v3 = vpack.i.bf16 %v3246_v9, %v3200_v28 }
 0x844   : > { %v4558_v53 = vpop.f32.mrf.mxu0 }
 0x845   : > { %4792 = vrot.lane.b32.xlu1 %v4791_v3, %s5075_s15 }
 0x846   : > { %v3249_v15 = vpop.f32.mrf.mxu0 }
 0x848   : > { %v4559_v41 = vpop.f32.mrf.mxu0 }
 0x859   : > { %v4768_v17 = vpop.permute.xlu0 %4767 }
 0x85a   : > { %v4770_v13 = vunpack.i.h.bf16 %v4768_v17  ;;  %v4769_v33 = vunpack.i.l.bf16 %v4768_v17 }
 0x85c   : > { %v3301_v42 = vsel %vm1586_vm4, %v5919_v32, %v4770_v13  ;;  %v3300_v24 = vsel %vm1586_vm4, %v5915_v63, %v4769_v33 }
 0x862   : > { %v4773_v31 = vpop.permute.xlu1 %4772 }
 0x863   : > { %v4775_v35 = vunpack.i.h.bf16 %v4773_v31  ;;  %v4774_v32 = vunpack.i.l.bf16 %v4773_v31 }
 0x865   : > { %v3303_v54 = vsel %vm1586_vm4, %v5921_v21, %v4775_v35  ;;  %v3302_v57 = vsel %vm1586_vm4, %v5917_v55, %v4774_v32  ;;  %v4902_v21 = vld [vmem:[#allocation2 + $0x10] sm:$0xff]  ;;  %v4213_v55 = vld [vmem:[%s6213_s2] ss:$0 sm:$0xff] }
 0x86a   : > { %v4778_v43 = vpop.permute.xlu0 %4777 }
 0x86b   : > { %v4780_v16 = vunpack.i.h.bf16 %v4778_v43  ;;  %v4779_v20 = vunpack.i.l.bf16 %v4778_v43 }
 0x86d   : > { %v3306_v4 = vsel %vm3304_vm6, %v3301_v42, %v4780_v16  ;;  %v3305_v49 = vsel %vm3304_vm6, %v3300_v24, %v4779_v20 }
 0x89f   : > { %v4783_v34 = vpop.permute.xlu1 %4782 }
 0x8a0   : > { %v4785_v36 = vunpack.i.h.bf16 %v4783_v34  ;;  %v4784_v7 = vunpack.i.l.bf16 %v4783_v34 }
 0x8a2   : > { %v3308_v37 = vsel %vm3304_vm6, %v3303_v54, %v4785_v36  ;;  %v3307_v38 = vsel %vm3304_vm6, %v3302_v57, %v4784_v7 }
 0x8a7   : > { %v4788_v46 = vpop.permute.xlu0 %4787 }
 0x8a8   : > { %v4790_v25 = vunpack.i.h.bf16 %v4788_v46  ;;  %v4789_v27 = vunpack.i.l.bf16 %v4788_v46 }
 0x8aa   : > { %v3311_v29 = vsel %vm3309_vm7, %v3306_v4, %v4790_v25  ;;  %v3310_v52 = vsel %vm3309_vm7, %v3305_v49, %v4789_v27  ;;  %v4804_v4 = vld [vmem:[%s5375_s9 + $0x8] sm:$0xff]   ;;  %v4805_v49 = vld [vmem:[%s5375_s9] sm:$0xff]  }
 0x8ab   : > { %v3314_v18 = vpack.c.bf16 %v3311_v29, %v3310_v52  ;;  %4568 = vmatprep.subr.bf16.mxu0 %v4804_v4 }
 0x8ac   : > { %4569 = vmatpush3.bf16.msra.mxu0 %v4804_v4 }
 0x8ad   : > { %4564 = vmatprep.mubr.msk.bf16.mxu1 %vm1195_vm2, %v3314_v18  ;;  %4570 = vmatprep.subr.bf16.mxu0 %v4805_v49 }
 0x8b0   : > { %4571 = vmatpush3.bf16.msra.mxu0 %v4805_v49 }
 0x8b7   : > { %v4793_v63 = vpop.permute.xlu1 %4792 }
 0x8b8   : > { %v4795_v30 = vunpack.i.h.bf16 %v4793_v63  ;;  %v4794_v26 = vunpack.i.l.bf16 %v4793_v63 }
 0x8ba   : > { %v3313_v39 = vsel %vm3309_vm7, %v3308_v37, %v4795_v30  ;;  %v3312_v40 = vsel %vm3309_vm7, %v3307_v38, %v4794_v26  ;;  %v3402_v30 = vld [vmem:[%s5370_s30] sm:$0x3] }
 0x8bb   : > { %v3315_v2 = vpack.c.bf16 %v3313_v39, %v3312_v40  ;;  %v3458_v38 = vrot.slane %v3402_v30, %v5463_v6 }
 0x8bd   : > { %4565 = vmatmul.mubr.msk.bf16.vlgmr.msra.gmra.mxu1 %vm1195_vm2, %v3315_v2 }
 0x97d   : > { %v4566_v45 = vpop.f32.mrf.mxu1 }
 0x97e   : > { %v3389_v1 = vadd.f32 %v4902_v21, %v4566_v45  ;;  %v3466_v21 = vrot.slane %v3402_v30, %v5467_v11 }
 0x97f   : > { %v3372_v47 = vpop.f32.mrf.mxu1 }
 0x980   : > { %v3387_v51 = vadd.f32 %v4903_v48, %v3372_v47  ;;  %v5952_v5 = vadd.f32 %v4213_v55, %v3389_v1 }
 0x981   : > { %v4567_v60 = vpop.f32.mrf.mxu1 }
 0x982   : > { %v5950_v23 = vadd.f32 %v4213_v55, %v3387_v51  ;;  %v3390_v22 = vadd.f32 %v4904_v8, %v4567_v60  ;;  %v3409_v62 = vsel %vm1195_vm2, %v5952_v5, 0.0 }
 0x983   : > { %v3375_v56 = vpop.f32.mrf.mxu1 }
 0x984   : > { %v3388_v58 = vadd.f32 %v4905_v44, %v3375_v56  ;;  %v3403_v19 = vsel %vm1195_vm2, %v5950_v23, 0.0  ;;  %v5958_v10 = vadd.f32 %v4213_v55, %v3390_v22 }
 0x985   : > { %3404 = vadd.xlane.f32.xlu0 %v3403_v19 }
 0x986   : > { %v5956_v61 = vadd.f32 %v4213_v55, %v3388_v58  ;;  %v3412_v28 = vsel %vm1195_vm2, %v5958_v10, 0.0 }
 0x988   : > { %v3406_v14 = vsel %vm1195_vm2, %v5956_v61, 0.0 }
 0x989   : > { %3410 = vadd.xlane.f32.xlu0 %v3409_v62  ;;  %3407 = vadd.xlane.f32.xlu1 %v3406_v14  ;;  %v4806_v62 = vld [vmem:[%s5389_s23 + $0x38] sm:$0xff]   ;;  %v4807_v14 = vld [vmem:[%s5389_s23 + $0x30] sm:$0xff]  }
 0x98a   : > { %4576 = vmatprep.subr.bf16.mxu1 %v4806_v62 }
 0x98b   : > { %4577 = vmatpush3.bf16.msra.mxu1 %v4806_v62 }
 0x98c   : > { %4578 = vmatprep.subr.bf16.mxu1 %v4807_v14 }
 0x98d   : > { %3413 = vadd.xlane.f32.xlu0 %v3412_v28  ;;  %v4808_v28 = vld [vmem:[%s5389_s23 + $0x28] sm:$0xff]  }
 0x98f   : > { %4579 = vmatpush3.bf16.msra.mxu1 %v4807_v14 }
 0x990   : > { %4580 = vmatprep.subr.bf16.mxu1 %v4808_v28 }
 0x993   : > { %4581 = vmatpush3.bf16.msra.mxu1 %v4808_v28 }
 0xa0e   : > { %v3405_v0 = vpop.xlane.xlu0 %3404 }
 0xa0f   : > { %v3415_v50 = vmul.f32 0.03125, %v3405_v0  ;;  %v4809_v0 = vld [vmem:[%s5389_s23 + $0x20] sm:$0xff]  }
 0xa10   : > { %4582 = vmatprep.subr.bf16.mxu1 %v4809_v0 }
 0xa11   : > { %v3419_v59 = vsub.f32 %v5950_v23, %v3415_v50  ;;  %v4810_v50 = vld [vmem:[%s5389_s23 + $0x18] sm:$0xff]   ;;  %4583 = vmatpush3.bf16.msra.mxu1 %v4809_v0 }
 0xa12   : > { %v3411_v12 = vpop.xlane.xlu0 %3410  ;;  %v3408_v9 = vpop.xlane.xlu1 %3407  ;;  %4584 = vmatprep.subr.bf16.mxu1 %v4810_v50 }
 0xa13   : > { %v3417_v3 = vmul.f32 0.03125, %v3411_v12  ;;  %v3416_v53 = vmul.f32 0.03125, %v3408_v9  ;;  %v3423_v15 = vmul.f32 %v3419_v59, %v3419_v59  ;;  %v4812_v12 = vld [vmem:[%s5389_s23 + $0x8] sm:$0xff]   ;;  %v4813_v9 = vld [vmem:[%s5389_s23] sm:$0xff]  }
 0xa15   : > { %v3421_v41 = vsub.f32 %v5952_v5, %v3417_v3  ;;  %v3420_v17 = vsub.f32 %v5956_v61, %v3416_v53  ;;  %v3427_v43 = vsel %vm1195_vm2, %v3423_v15, 0.0  ;;  %4585 = vmatpush3.bf16.msra.mxu1 %v4810_v50  ;;  %v4214_v3 = vld [vmem:[%s921_s6] ss:$0 sm:$0xff] }
 0xa16   : > { %3428 = vadd.xlane.f32.xlu0 %v3427_v43  ;;  %v3414_v13 = vpop.xlane.xlu0 %3413 }
 0xa17   : > { %v3418_v33 = vmul.f32 0.03125, %v3414_v13  ;;  %v3425_v16 = vmul.f32 %v3421_v41, %v3421_v41  ;;  %v3424_v20 = vmul.f32 %v3420_v17, %v3420_v17 }
 0xa19   : > { %v3422_v46 = vsub.f32 %v5958_v10, %v3418_v33  ;;  %v3433_v42 = vsel %vm1195_vm2, %v3425_v16, 0.0  ;;  %v3430_v24 = vsel %vm1195_vm2, %v3424_v20, 0.0 }
 0xa1a   : > { %3434 = vadd.xlane.f32.xlu0 %v3433_v42  ;;  %3431 = vadd.xlane.f32.xlu1 %v3430_v24 }
 0xa1b   : > { %v3426_v25 = vmul.f32 %v3422_v46, %v3422_v46 }
 0xa1d   : > { %v3436_v27 = vsel %vm1195_vm2, %v3426_v25, 0.0 }
 0xa1e   : > { %3437 = vadd.xlane.f32.xlu1 %v3436_v27 }
 0xa9f   : > { %v3429_v29 = vpop.xlane.xlu0 %3428 }
 0xaa0   : > { %v3439_v52 = vmul.f32 0.03125, %v3429_v29 }
 0xaa2   : > { %v3443_v18 = vadd.f32 1e-05, %v3439_v52 }
 0xaa3   : > { %v3435_v31 = vpop.xlane.xlu0 %3434  ;;  %v3432_v34 = vpop.xlane.xlu1 %3431 }
 0xaa4   : > { %4886 = vrsqrt.f32 %v3443_v18  ;;  %v3441_v35 = vmul.f32 0.03125, %v3435_v31  ;;  %v3440_v32 = vmul.f32 0.03125, %v3432_v34 }
 0xaa6   : > { %v3445_v36 = vadd.f32 1e-05, %v3441_v35  ;;  %v3444_v7 = vadd.f32 1e-05, %v3440_v32 }
 0xaa7   : > { %v3438_v63 = vpop.xlane.xlu1 %3437 }
 0xaa8   : > { %4888 = vrsqrt.f32 %v3445_v36  ;;  %v3442_v54 = vmul.f32 0.03125, %v3438_v63 }
 0xaa9   : > { %4890 = vrsqrt.f32 %v3444_v7 }
 0xaaa   : > { %v3446_v57 = vadd.f32 1e-05, %v3442_v54 }
 0xaac   : > { %4892 = vrsqrt.f32 %v3446_v57 }
 0xab1   : > { %v4887_v26 = vpop.eup %4886 }
 0xab2   : > { %v3451_v37 = vmul.f32 %v4887_v26, %v3419_v59  ;;  %v4811_v59 = vld [vmem:[%s5389_s23 + $0x10] sm:$0xff]  }
 0xab3   : > { %4586 = vmatprep.subr.bf16.mxu1 %v4811_v59 }
 0xab4   : > { %v3459_v47 = vmul.f32 %v3458_v38, %v3451_v37  ;;  %4587 = vmatpush3.bf16.msra.mxu1 %v4811_v59 }
 0xab5   : > { %v4889_v39 = vpop.eup %4888  ;;  %4588 = vmatprep.subr.bf16.mxu1 %v4812_v12 }
 0xab6   : > { %v4891_v40 = vpop.eup %4890  ;;  %v3453_v2 = vmul.f32 %v4889_v39, %v3421_v41  ;;  %v3467_v60 = vadd.f32 %v3466_v21, %v3459_v47 }
 0xab7   : > { %v3452_v45 = vmul.f32 %v4891_v40, %v3420_v17 }
 0xab8   : > { %v3461_v55 = vmul.f32 %v3458_v38, %v3453_v2  ;;  %4589 = vmatpush3.bf16.msra.mxu1 %v4812_v12 }
 0xab9   : > { %v4893_v1 = vpop.eup %4892  ;;  %v3460_v48 = vmul.f32 %v3458_v38, %v3452_v45  ;;  %4590 = vmatprep.subr.bf16.mxu1 %v4813_v9 }
 0xaba   : > { %v3454_v51 = vmul.f32 %v4893_v1, %v3422_v46  ;;  %v3469_v44 = vadd.f32 %v3466_v21, %v3461_v55 }
 0xabb   : > { %v3468_v56 = vadd.f32 %v3466_v21, %v3460_v48 }
 0xabc   : > { %v3462_v8 = vmul.f32 %v3458_v38, %v3454_v51  ;;  %4591 = vmatpush3.bf16.msra.mxu1 %v4813_v9 }
 0xabd   : > { %v3471_v22 = vpack.c.bf16 %v3468_v56, %v3467_v60 }
 0xabe   : > { %v3470_v58 = vadd.f32 %v3466_v21, %v3462_v8 }
 0xabf   : > { %4572 = vmatprep.mubr.msk.bf16.mxu0 %vm1195_vm2, %v3471_v22 }
 0xac0   : > { %v3472_v19 = vpack.c.bf16 %v3470_v58, %v3469_v44  ;;  %v4227_v58 = vld [vmem:[%s929_s5] ss:$0 sm:$0xff]  ;;  %s6216_s5 = sld [smem:[#allocation44_spill]] (!%p4228_p5) }
 0xac2   : > { %4573 = vmatmul.mubr.msk.bf16.vlgmr.msra.gmra.mxu0 %vm1195_vm2, %v3472_v19 }
 0xac6   : > { %s6217_s7 = smov (!%p4228_p5), %s6216_s5 }
 0xb82   : > { %v4574_v53 = vpop.f32.mrf.mxu0 }
 0xb83   : > { %v3545_v15 = vadd.f32 %v4574_v53, %v4214_v3 }
 0xb84   : > { %v3536_v41 = vpop.f32.mrf.mxu0 }
 0xb85   : > { %v3557_v17 = vmul.f32 0.044715, %v3545_v15  ;;  %v3537_v43 = vadd.f32 %v4214_v3, %v3536_v41  ;;  %v3553_v48 = vmul.f32 0.5, %v3545_v15 }
 0xb86   : > { %v4575_v13 = vpop.f32.mrf.mxu0 }
 0xb87   : > { %v3561_v33 = vmul.f32 %v3557_v17, %v3545_v15  ;;  %v3555_v16 = vmul.f32 0.044715, %v3537_v43  ;;  %v3548_v20 = vadd.f32 %v4575_v13, %v4214_v3  ;;  %v3551_v47 = vmul.f32 0.5, %v3537_v43 }
 0xb88   : > { %v3539_v46 = vpop.f32.mrf.mxu0 }
 0xb89   : > { %v3565_v42 = vmul.f32 %v3561_v33, %v3545_v15  ;;  %v3559_v24 = vmul.f32 %v3555_v16, %v3537_v43  ;;  %v3558_v25 = vmul.f32 0.044715, %v3548_v20  ;;  %v3540_v27 = vadd.f32 %v4214_v3, %v3539_v46 }
 0xb8a   : > { %v3554_v2 = vmul.f32 0.5, %v3548_v20 }
 0xb8b   : > { %v3569_v4 = vadd.f32 %v3565_v42, %v3545_v15  ;;  %v3563_v49 = vmul.f32 %v3559_v24, %v3537_v43  ;;  %v3562_v29 = vmul.f32 %v3558_v25, %v3548_v20  ;;  %v3556_v52 = vmul.f32 0.044715, %v3540_v27 }
 0xb8c   : > { %v3552_v21 = vmul.f32 0.5, %v3540_v27 }
 0xb8d   : > { %v3566_v18 = vmul.f32 %v3562_v29, %v3548_v20  ;;  %v3560_v31 = vmul.f32 %v3556_v52, %v3540_v27  ;;  %v3567_v34 = vadd.f32 %v3563_v49, %v3537_v43  ;;  %v3573_v35 = vmul.f32 0.7978846, %v3569_v4 }
 0xb8f   : > { %v3570_v32 = vadd.f32 %v3566_v18, %v3548_v20  ;;  %v3564_v36 = vmul.f32 %v3560_v31, %v3540_v27  ;;  %v3571_v7 = vmul.f32 0.7978846, %v3567_v34 }
 0xb91   : > { %v3574_v63 = vmul.f32 0.7978846, %v3570_v32  ;;  %v3568_v54 = vadd.f32 %v3564_v36, %v3540_v27  ;;  %4894 = vtanh.f32 %v3571_v7 }
 0xb92   : > { %4896 = vtanh.f32 %v3573_v35 }
 0xb93   : > { %4898 = vtanh.f32 %v3574_v63  ;;  %v3572_v57 = vmul.f32 0.7978846, %v3568_v54 }
 0xb95   : > { %4900 = vtanh.f32 %v3572_v57 }
 0xb9e   : > { %v4895_v30 = vpop.eup %4894 }
 0xb9f   : > { %v4897_v26 = vpop.eup %4896  ;;  %v3579_v38 = vadd.f32 1.0, %v4895_v30 }
 0xba0   : > { %v4899_v37 = vpop.eup %4898  ;;  %v3581_v45 = vadd.f32 1.0, %v4897_v26 }
 0xba1   : > { %v3582_v39 = vadd.f32 1.0, %v4899_v37  ;;  %v3583_v55 = vmul.f32 %v3579_v38, %v3551_v47 }
 0xba2   : > { %v4901_v40 = vpop.eup %4900  ;;  %v3585_v56 = vmul.f32 %v3581_v45, %v3553_v48 }
 0xba3   : > { %v3580_v1 = vadd.f32 1.0, %v4901_v40  ;;  %v3586_v51 = vmul.f32 %v3582_v39, %v3554_v2 }
 0xba5   : > { %v3584_v60 = vmul.f32 %v3580_v1, %v3552_v21  ;;  %v3588_v22 = vpack.c.bf16 %v3586_v51, %v3585_v56 }
 0xba7   : > { %v3587_v8 = vpack.c.bf16 %v3584_v60, %v3583_v55 }
 0xba9   : > { %4592 = vmatprep.mubr.bf16.mxu1 %v3587_v8 }
 0xbaa   : > { %4593 = vmatmul.mubr.bf16.vlgmr.msra.gmra.mxu1 %v3588_v22 }
 0xc6a   : > { %v4594_v44 = vpop.f32.mrf.mxu1 }
 0xc6b   : > { %v3704_v19 = vadd.f32 %v4594_v44, %v5952_v5 }
 0xc6c   : > { %v3687_v62 = vpop.f32.mrf.mxu1 }
 0xc6d   : > { %v3715_v14 = vadd.f32 %v4227_v58, %v3704_v19  ;;  %v3702_v28 = vadd.f32 %v3687_v62, %v5950_v23 }
 0xc6e   : > { %v4595_v0 = vpop.f32.mrf.mxu1 }
 0xc6f   : > { %3719 = vst.msk [vmem:[#allocation2 + $0x10] sm:$0xff] %vm1195_vm2, %v3715_v14  ;;  %v3713_v50 = vadd.f32 %v4227_v58, %v3702_v28  ;;  %v3705_v59 = vadd.f32 %v4595_v0, %v5958_v10 }
 0xc70   : > { %v3690_v12 = vpop.f32.mrf.mxu1 }
 0xc71   : > { %3717 = vst.msk [vmem:[#allocation2] sm:$0xff] %vm1195_vm2, %v3713_v50  ;;  %v3716_v9 = vadd.f32 %v4227_v58, %v3705_v59  ;;  %v3703_v3 = vadd.f32 %v3690_v12, %v5956_v61  ;;  %3724 = sbr.rel (%p4228_p5) target bundleno = 3708 (0xe7c), region = 116 }
 0xc73   : > { %3720 = vst.msk [vmem:[#allocation2 + $0x18] sm:$0xff] %vm1195_vm2, %v3716_v9  ;;  %v3714_v53 = vadd.f32 %v4227_v58, %v3703_v3 }
 0xc75   : > { %3718 = vst.msk [vmem:[#allocation2 + $0x8] sm:$0xff] %vm1195_vm2, %v3714_v53 }
 0xc76   : > { %v3726_v23 = vsel %vm1195_vm2, %v3713_v50, 0.0  ;;  %v3732_v5 = vsel %vm1195_vm2, %v3715_v14, 0.0  ;;  %v3729_v10 = vsel %vm1195_vm2, %v3714_v53, 0.0  ;;  %v3735_v15 = vsel %vm1195_vm2, %v3716_v9, 0.0  ;;  %v4906_v35 = vld [vmem:[%s6216_s5 + $0x8] sm:$0xff]   ;;  %v4907_v32 = vld [vmem:[%s6217_s7] sm:$0xff]  }
 0xc77   : > { %3727 = vadd.xlane.f32.xlu0 %v3726_v23  ;;  %3733 = vadd.xlane.f32.xlu1 %v3732_v5  ;;  %v3725_v45 = vld [vmem:[%s6218_s11] sm:$0x3] }
 0xc78   : > { %4596 = vmatprep.subr.bf16.mxu0 %v4906_v35  ;;  %v3781_v1 = vrot.slane %v3725_v45, %v5463_v6  ;;  %v3789_v56 = vrot.slane %v3725_v45, %v5467_v11 }
 0xc79   : > { %4597 = vmatpush3.bf16.msra.mxu0 %v4906_v35 }
 0xc7a   : > { %4598 = vmatprep.subr.bf16.mxu0 %v4907_v32 }
 0xc7b   : > { %3730 = vadd.xlane.f32.xlu0 %v3729_v10  ;;  %3736 = vadd.xlane.f32.xlu1 %v3735_v15 }
 0xc7d   : > { %4599 = vmatpush3.bf16.msra.mxu0 %v4907_v32 }
 0xd00   : > { %v3728_v61 = vpop.xlane.xlu0 %3727  ;;  %v3734_v41 = vpop.xlane.xlu1 %3733 }
 0xd01   : > { %v3738_v17 = vmul.f32 0.03125, %v3728_v61  ;;  %v3740_v43 = vmul.f32 0.03125, %v3734_v41 }
 0xd03   : > { %v3742_v13 = vsub.f32 %v3713_v50, %v3738_v17  ;;  %v3744_v33 = vsub.f32 %v3715_v14, %v3740_v43 }
 0xd04   : > { %v3731_v16 = vpop.xlane.xlu0 %3730  ;;  %v3737_v20 = vpop.xlane.xlu1 %3736 }
 0xd05   : > { %v3739_v46 = vmul.f32 0.03125, %v3731_v16  ;;  %v3741_v42 = vmul.f32 0.03125, %v3737_v20  ;;  %v3746_v24 = vmul.f32 %v3742_v13, %v3742_v13  ;;  %v3748_v25 = vmul.f32 %v3744_v33, %v3744_v33 }
 0xd07   : > { %v3743_v27 = vsub.f32 %v3714_v53, %v3739_v46  ;;  %v3745_v4 = vsub.f32 %v3716_v9, %v3741_v42  ;;  %v3750_v49 = vsel %vm1195_vm2, %v3746_v24, 0.0  ;;  %v3756_v29 = vsel %vm1195_vm2, %v3748_v25, 0.0 }
 0xd08   : > { %3751 = vadd.xlane.f32.xlu0 %v3750_v49 }
 0xd09   : > { %v3747_v52 = vmul.f32 %v3743_v27, %v3743_v27  ;;  %v3749_v18 = vmul.f32 %v3745_v4, %v3745_v4 }
 0xd0b   : > { %v3753_v31 = vsel %vm1195_vm2, %v3747_v52, 0.0  ;;  %v3759_v34 = vsel %vm1195_vm2, %v3749_v18, 0.0 }
 0xd0c   : > { %3757 = vadd.xlane.f32.xlu0 %v3756_v29  ;;  %3754 = vadd.xlane.f32.xlu1 %v3753_v31 }
 0xd10   : > { %3760 = vadd.xlane.f32.xlu1 %v3759_v34 }
 0xd91   : > { %v3752_v36 = vpop.xlane.xlu0 %3751 }
 0xd92   : > { %v3762_v7 = vmul.f32 0.03125, %v3752_v36 }
 0xd94   : > { %v3766_v63 = vadd.f32 1e-05, %v3762_v7 }
 0xd95   : > { %v3755_v54 = vpop.xlane.xlu1 %3754  ;;  %v3758_v57 = vpop.xlane.xlu0 %3757 }
 0xd96   : > { %4908 = vrsqrt.f32 %v3766_v63  ;;  %v3763_v30 = vmul.f32 0.03125, %v3755_v54  ;;  %v3764_v26 = vmul.f32 0.03125, %v3758_v57 }
 0xd98   : > { %v3767_v37 = vadd.f32 1e-05, %v3763_v30  ;;  %v3768_v38 = vadd.f32 1e-05, %v3764_v26 }
 0xd99   : > { %v3761_v39 = vpop.xlane.xlu1 %3760 }
 0xd9a   : > { %4910 = vrsqrt.f32 %v3767_v37  ;;  %v3765_v40 = vmul.f32 0.03125, %v3761_v39 }
 0xd9b   : > { %4912 = vrsqrt.f32 %v3768_v38 }
 0xd9c   : > { %v3769_v2 = vadd.f32 1e-05, %v3765_v40 }
 0xd9e   : > { %4914 = vrsqrt.f32 %v3769_v2 }
 0xda3   : > { %v4909_v47 = vpop.eup %4908 }
 0xda4   : > { %v3774_v21 = vmul.f32 %v4909_v47, %v3742_v13 }
 0xda6   : > { %v3782_v60 = vmul.f32 %v3781_v1, %v3774_v21 }
 0xda7   : > { %v4911_v48 = vpop.eup %4910 }
 0xda8   : > { %v4913_v51 = vpop.eup %4912  ;;  %v3775_v55 = vmul.f32 %v4911_v48, %v3743_v27  ;;  %v3790_v58 = vadd.f32 %v3789_v56, %v3782_v60 }
 0xda9   : > { %v3776_v8 = vmul.f32 %v4913_v51, %v3744_v33 }
 0xdaa   : > { %v3783_v22 = vmul.f32 %v3781_v1, %v3775_v55 }
 0xdab   : > { %v4915_v44 = vpop.eup %4914  ;;  %v3784_v14 = vmul.f32 %v3781_v1, %v3776_v8 }
 0xdac   : > { %v3791_v19 = vadd.f32 %v3789_v56, %v3783_v22  ;;  %v3777_v62 = vmul.f32 %v4915_v44, %v3745_v4 }
 0xdad   : > { %v3792_v6 = vadd.f32 %v3789_v56, %v3784_v14 }
 0xdae   : > { %v3794_v28 = vpack.c.bf16 %v3791_v19, %v3790_v58  ;;  %v3785_v0 = vmul.f32 %v3781_v1, %v3777_v62 }
 0xdb0   : > { %4600 = vmatprep.mubr.msk.bf16.mxu0 %vm1195_vm2, %v3794_v28  ;;  %v3793_v50 = vadd.f32 %v3789_v56, %v3785_v0 }
 0xdb2   : > { %v3795_v59 = vpack.c.bf16 %v3793_v50, %v3792_v6 }
 0xdb4   : > { %4601 = vmatmul.mubr.msk.bf16.vlgmr.msra.gmra.mxu0 %vm1195_vm2, %v3795_v59 }
 0xe74   : > { %v4602_v11 = vpop.f32.mrf.mxu0 }
 0xe75   : > { %3869 = vst [vmem:[%s5391_s20 + $0x10] sm:$0xff] %v4602_v11 }
 0xe76   : > { %v3852_v12 = vpop.f32.mrf.mxu0 }
 0xe77   : > { %3867 = vst [vmem:[%s5391_s20] sm:$0xff] %v3852_v12 }
 0xe78   : > { %v4603_v9 = vpop.f32.mrf.mxu0 }
 0xe79   : > { %3870 = vst [vmem:[%s5391_s20 + $0x18] sm:$0xff] %v4603_v9 }
 0xe7a   : > { %v3855_v3 = vpop.f32.mrf.mxu0 }
 0xe7b   : > { %3868 = vst [vmem:[%s5391_s20 + $0x8] sm:$0xff] %v3855_v3 }
 0xe7c PF: > { %s6219_s12 = sld [smem:[#allocation14_spill]]  ;;  %s3885_s18 = sshll.u32 %s5391_s20, 4  ;;  %s6040_s18 = int_to_ptr.vmem [resolvable:$true] %s3885_s18 }
 0xe7d   : > { %s6220_s8 = sld [smem:[#allocation10_spill]]  ;;  %s4944_s2 = scalar_lea.vmem %s6040_s18, 512 }
 0xe7e   : > { %s6222_s24 = sld [smem:[#allocation45_spill]]  ;;  %p4945_p6 = scmp.ne.s32.totalorder %s6040_s18, %s4944_s2 }
 0xe7f   : > { %s5076_s9 = smov [#allocation6]  }
 0xe80   : > { %p4946_p7 = pnand %p4945_p6, %p5276_p12  ;;  %s4948_s30 = sshll.u32 %s5076_s9, 4  ;;  %s4949_s30 = int_to_ptr.vmem [resolvable:$false] %s4948_s30 }
 0xe81   : > { %s4950_s4 = scalar_lea.vmem %s4949_s30, 1024  ;;  %p4951_p10 = scmp.lt.s32.totalorder %s6040_s18, %s4949_s30 }
 0xe82   : > { %s4245_s0 = sshll.u32 %s6219_s12, 9  ;;  %p4947_p9 = pneg %p4946_p7 }
 0xe83   : > { %s6223_s21 = sand.u32 1, %s6220_s8   ;;  %p4952_p11 = scmp.lt.s32.totalorder %s4950_s4, %s4944_s2 }
 0xe84   : > { %s6037_s15 = scalar_lea.hbm %s6222_s24, %s4245_s0  ;;  %s6044_s26 = scalar_lea.sflag [#allocation5], %s6223_s21 }
 0xe85   : > { %p4953_p13 = por %p4952_p11, %p4951_p10 }
 0xe87   : > { %p4954_p0 = pnand %p4953_p13, %p4947_p9 }
 0xe89   : > { %4957 = shalt.err (!%p4954_p0)
}
 0xe8a   : > { %s4958_s20 = scalar_lea.hbm %s6037_s15, 512  ;;  %s4962_s27 = scalar_lea.hbm %s6222_s24, 1024 }
 0xe8b   : > { %p4959_p3 = scmp.ne.s32.totalorder %s6037_s15, %s4958_s20  ;;  %p4963_p4 = scmp.lt.s32.totalorder %s6037_s15, %s6222_s24 }
 0xe8c   : > { %p4964_p8 = scmp.lt.s32.totalorder %s4962_s27, %s4958_s20 }
 0xe8d   : > { %p4960_p1 = pnand %p4959_p3, %p5276_p12 }
 0xe8e   : > { %p4965_p5 = por %p4964_p8, %p4963_p4 }
 0xe8f   : > { %p4961_p2 = pneg %p4960_p1 }
 0xe91   : > { %p4966_p6 = pnand %p4965_p5, %p4961_p2 }
 0xe93   : > { %4969 = shalt.err (!%p4966_p6)
}
 0xe94   : > { %s5077_s5 = smov 128  }
 0xe95   : > { %4630 = dma.vmem_to_hbm [thread:$0]  (%p5276_p12), %s6040_s18, 512, %s6037_s15, %s6044_s26, %s5077_s5, %s5077_s5, %s5073_s17  }
 0xe96 PF: > { %s6224_s28 = sld [smem:[#allocation17_spill]] }
 0xe97   : > { %s6225_s22 = sld [smem:[#allocation9_spill]] }
 0xe98   : > { %s6226_s10 = sld [smem:[#allocation23_spill]] }
 0xe9c   : > { %p4641_p7 = scmp.ge.s32.totalorder %s6224_s28, 2 }
 0xe9d   : > { %s3900_s3 = sand.u32 1, %s6225_s22  }
 0xe9e   : > { %p6227_p9 = scmp.ne.s32.totalorder %s6226_s10, 0  ;;  %s3901_s11 = scalar_lea.sflag [#allocation5], %s3900_s3 }
 0xea0   : > { %p4637_p10 = pnand %p4641_p7, %p6227_p9 }
 0xea2   : > { %p4638_p11 = pneg %p4637_p10 }
 0xea4   : > { %5019 = dma.done.wait (%p4638_p11), %s3901_s11, 512  }
 0xea5   : > { %5021 = vsyncadd (%p4638_p11), %s3901_s11, 4294966784  ;;  %s37_s5 = sadd.s32 1, %s6224_s28   ;;  %s6228_s2 = sld [smem:[#allocation10_spill]] }
 0xea6   : > { %p34_p13 = scmp.ge.s32.totalorder %s37_s5, 6   ;;  %s6229_s25 = sld [smem:[#allocation11_spill]] }
 0xea7   : > { %s6230_s26 = sld [smem:[#allocation21_spill]] }
 0xea8   : > { %s6231_s27 = sld [smem:[#allocation12_spill]] }
 0xea9   : > { %s6232_s3 = sld [smem:[#allocation13_spill]] }
 0xeaa   : > { %s6233_s28 = sld [smem:[#allocation20_spill]]  ;;  %36 = sbr.rel (!%p34_p13) target bundleno = 31 (0x1f), region = 199 }
 0xeab   : > { %s6234_s29 = sld [smem:[#allocation15_spill]] }
 0xeac   : > { %s6235_s0 = sld [smem:[#allocation16_spill]] }
 0xead   : > { %s6236_s4 = sld [smem:[#allocation18_spill]] }
 0xeae   : > { %s6237_s30 = sld [smem:[#allocation19_spill]] }
 0xeaf   :  { %3906 = vsyncpa [#allocation4], 1 }
 0xeb0   :  { %3908 = vsyncpa [#allocation4 + $0x1], 1 }
 0xeb1   :  { %3909 = vsyncpa [#allocation5], 1 }
 0xeb2   :  { %3911 = vsyncpa [#allocation5 + $0x1], 1 }

</bundles_post_ra>
